<compile_context>
chip_gen: v7x
topology: tpu7x:2x2x1
jax: 0.10.0
libtpu: 0.0.40
codegen_flags: <defaults>
</compile_context>

<pallas_src>
import functools

import jax
import jax.numpy as jnp
import numpy as np
from jax import lax
from jax.experimental import pallas as pl
from jax.experimental.pallas import tpu as pltpu

# ----- config mirroring ConvexRidgeRegularizer defaults -----------------------
CHANNELS = [1, 8, 32]
KSIZE = 3
PAD = KSIZE // 2
KNOTS_RANGE = 0.1
N_KNOTS = 21
GRID = 2.0 * KNOTS_RANGE / (N_KNOTS - 1)   # uniform knot spacing
HALF = N_KNOTS // 2
N_SEG = N_KNOTS - 1                        # 20 linear segments

N_TAP = KSIZE * KSIZE                      # 9 taps per conv stage
N_TAP_PAD = 16                             # sublane-friendly pad for 1->C1 stack
TAPS = [(dh, dw) for dh in range(-PAD, PAD + 1) for dw in range(-PAD, PAD + 1)]

# lanes packed per grid step; live dense f32 intermediates are ~130*Lp*4 bytes
# (~4.3 MiB at 8192 lanes), comfortably inside the raised scoped-VMEM limit on
# v5e/v6e/v7x while keeping per-step pipeline overhead amortized.
LANE_BUDGET = 8192
VMEM_LIMIT_BYTES = 32 * 1024 * 1024

# TODO(synk): MultiConv2d's zero-mean / spectral-norm weight parametrization and
# LinearSpline's coefficient projection are parameter-space transforms outside
# the forward hot path; synthetic raw weights/coefficients are consumed directly.
# TODO(synk): very large single images (H*W*C2*4 bytes approaching VMEM) would
# need spatial row-tiling with a 1-row halo per stage; not required at these sizes.


def crr_kernel(x_ref, mask_ref, w1f_ref, w2f_ref, w2t_ref, w1t_ref, sp_ref,
               o_ref, *, W):
    """CRR-NN forward on a lane-packed block of images.

    x_ref   : (1, 1, Lp)          flattened pixels of the packed images (zero-padded)
    mask_ref: (N_TAP_PAD, Lp)     f32 boundary masks; row t = validity of tap t
    w1f_ref : (C1, N_TAP_PAD)     conv1 weights, columns = taps (zero padded)
    w2f_ref : (C2, N_TAP*C1)      conv2 weights, columns = tap*C1 + c1
    w2t_ref : (N_TAP*C1, C2)      conv2 adjoint (contraction-first) weights
    w1t_ref : (N_TAP_PAD, C1)     conv1 adjoint weights, rows = taps
    sp_ref  : (C2, N_SEG + 1)     spline hinge table [b0, s0, ds_1..ds_19]
    o_ref   : (1, 1, Lp)
    """
    Lp = x_ref.shape[-1]
    C1 = w1f_ref.shape[0]
    C2 = w2f_ref.shape[0]
    hp = jax.lax.Precision.HIGHEST

    x = x_ref[0]                                   # (1, Lp)
    mask = mask_ref[...]                           # (16, Lp)
    w1f = w1f_ref[...]
    w2f = w2f_ref[...]
    w2t = w2t_ref[...]
    w1t = w1t_ref[...]
    sp = sp_ref[...]

    offs = [dh * W + dw for (dh, dw) in TAPS]

    # ---- conv1 (1 -> C1): shifted+masked tap stack, one MXU matmul ----------
    rows = [(x if o == 0 else pltpu.roll(x, shift=(-o) % Lp, axis=1))
            * mask[t:t + 1, :] for t, o in enumerate(offs)]
    rows.append(jnp.zeros((N_TAP_PAD - N_TAP, Lp), jnp.float32))
    xstack = jnp.concatenate(rows, axis=0)                           # (16, Lp)
    y1 = jnp.dot(w1f, xstack, preferred_element_type=jnp.float32,
                 precision=hp)                                       # (C1, Lp)

    # ---- conv2 (C1 -> C2): shifted+masked tap stack, one MXU matmul ---------
    blocks = [(y1 if o == 0 else pltpu.roll(y1, shift=(-o) % Lp, axis=1))
              * mask[t:t + 1, :] for t, o in enumerate(offs)]
    ystack = jnp.concatenate(blocks, axis=0)                         # (9*C1, Lp)
    y2 = jnp.dot(w2f, ystack, preferred_element_type=jnp.float32,
                 precision=hp)                                       # (C2, Lp)

    # ---- per-channel linear spline, exact ReLU-hinge form -------------------
    act = sp[:, 0:1] + sp[:, 1:2] * y2
    for k in range(1, N_SEG):
        tk = float(-KNOTS_RANGE + k * GRID)
        act = act + sp[:, k + 1:k + 2] * jnp.maximum(y2 - tk, 0.0)

    # ---- conv2^T (C2 -> C1): contraction-first matmul, then roll+mask+acc ---
    u = jnp.dot(w2t, act, preferred_element_type=jnp.float32,
                precision=hp)                                        # (9*C1, Lp)
    z2 = jnp.zeros((C1, Lp), jnp.float32)
    for t, o in enumerate(offs):
        blk = u[t * C1:(t + 1) * C1, :]
        if o != 0:
            blk = pltpu.roll(blk, shift=o % Lp, axis=1)
        z2 = z2 + blk * mask[N_TAP - 1 - t:N_TAP - t, :]             # adjoint mask

    # ---- conv1^T (C1 -> 1): contraction-first matmul, roll+mask, sublane sum
    v = jnp.dot(w1t, z2, preferred_element_type=jnp.float32,
                precision=hp)                                        # (16, Lp)
    vrows = []
    for t, o in enumerate(offs):
        row = v[t:t + 1, :]
        if o != 0:
            row = pltpu.roll(row, shift=o % Lp, axis=1)
        vrows.append(row * mask[N_TAP - 1 - t:N_TAP - t, :])
    vstack = jnp.concatenate(vrows, axis=0)                          # (9, Lp)
    o_ref[0] = jnp.sum(vstack, axis=0, keepdims=True)


def crr_forward(x_nchw, w1_hwio, w2_hwio, coeff):
    """x_nchw: (N,1,H,W); w1_hwio: (3,3,1,C1); w2_hwio: (3,3,C1,C2); coeff: (21,C2)."""
    N, Cin, H, W = x_nchw.shape
    assert Cin == CHANNELS[0] == 1
    HW = H * W
    C1 = w2_hwio.shape[2]
    C2 = w2_hwio.shape[3]

    # ---- tap-major weight matrices (stages kept separate, NOT fused) --------
    w1_taps = w1_hwio[:, :, 0, :].reshape(N_TAP, C1).astype(jnp.float32)  # (9,C1)
    w1f = jnp.zeros((C1, N_TAP_PAD), jnp.float32).at[:, :N_TAP].set(w1_taps.T)
    w1t = jnp.zeros((N_TAP_PAD, C1), jnp.float32).at[:N_TAP, :].set(w1_taps)
    w2_taps = w2_hwio.astype(jnp.float32).reshape(N_TAP * C1, C2)   # row=t*C1+c1
    w2f = w2_taps.T                                                  # (C2, 9*C1)
    w2t = w2_taps                                                    # (9*C1, C2)

    # ---- spline hinge table: [b0, s0, ds_1 .. ds_{N_SEG-1}] per channel ------
    coeff = coeff.astype(jnp.float32)
    slopes = (coeff[1:] - coeff[:-1]) / GRID                         # (N_SEG, C2)
    b0 = coeff[0] - slopes[0] * (-KNOTS_RANGE)                       # c0 - s0*t0
    ds = slopes[1:] - slopes[:-1]                                    # (N_SEG-1, C2)
    sp = jnp.concatenate([b0[None, :], slopes[0:1], ds], axis=0).T   # (C2, 21)

    # ---- lane-dense packed layout: BN images per grid step along lanes ------
    if HW >= LANE_BUDGET:
        BN = 1
    else:
        BN = max(1, min(LANE_BUDGET // HW, N))
        if N >= 2:
            BN = min(BN, -(-N // 2))   # keep >=2 grid blocks (both v7x TCs busy)
    G = -(-N // BN)
    Np = G * BN
    L = BN * HW
    Lp = max(128, -(-L // 128) * 128)

    x_flat = x_nchw.astype(jnp.float32).reshape(N, HW)
    if Np != N:
        x_flat = jnp.pad(x_flat, ((0, Np - N), (0, 0)))
    x_lanes = x_flat.reshape(G, 1, L)
    if Lp != L:
        x_lanes = jnp.pad(x_lanes, ((0, 0), (0, 0), (0, Lp - L)))

    # ---- static boundary-validity mask stack (shared by all grid steps) -----
    p = np.arange(Lp)
    q = p % HW
    hh = q // W
    ww = q % W
    inside = p < L
    mask_np = np.zeros((N_TAP_PAD, Lp), np.float32)
    for t, (dh, dw) in enumerate(TAPS):
        ok = (hh + dh >= 0) & (hh + dh < H) & (ww + dw >= 0) & (ww + dw < W) & inside
        mask_np[t] = ok
    mask = jnp.asarray(mask_np)

    kernel = functools.partial(crr_kernel, W=W)
    out = pl.pallas_call(
        kernel,
        out_shape=jax.ShapeDtypeStruct((G, 1, Lp), jnp.float32),
        grid_spec=pltpu.PrefetchScalarGridSpec(
            num_scalar_prefetch=0,
            grid=(G,),
            in_specs=[
                pl.BlockSpec((1, 1, Lp), lambda g: (g, 0, 0)),
                pl.BlockSpec(mask.shape, lambda g: (0, 0)),
                pl.BlockSpec(w1f.shape, lambda g: (0, 0)),
                pl.BlockSpec(w2f.shape, lambda g: (0, 0)),
                pl.BlockSpec(w2t.shape, lambda g: (0, 0)),
                pl.BlockSpec(w1t.shape, lambda g: (0, 0)),
                pl.BlockSpec(sp.shape, lambda g: (0, 0)),
            ],
            out_specs=pl.BlockSpec((1, 1, Lp), lambda g: (g, 0, 0)),
        ),
        compiler_params=pltpu.CompilerParams(
            dimension_semantics=("parallel",),   # batch blocks are independent
            vmem_limit_bytes=VMEM_LIMIT_BYTES,
        ),
    )(x_lanes, mask, w1f, w2f, w2t, w1t, sp)

    out = out.reshape(G, Lp)[:, :L].reshape(Np, HW)[:N]
    return out.reshape(N, 1, H, W)


# --------------------------- pure-JAX reference (unfused) ---------------------
def crr_forward_ref(x_nchw, w1_hwio, w2_hwio, coeff):
    dn = ('NHWC', 'HWIO', 'NHWC')
    hp = lax.Precision.HIGHEST
    x = jnp.transpose(x_nchw, (0, 2, 3, 1))
    y = lax.conv_general_dilated(x, w1_hwio, (1, 1), 'SAME',
                                 dimension_numbers=dn, precision=hp)
    y = lax.conv_general_dilated(y, w2_hwio, (1, 1), 'SAME',
                                 dimension_numbers=dn, precision=hp)
    # linear spline (gather form, as in LinearSpline_Func)
    y_cl = jnp.clip(y, -GRID * HALF, GRID * (HALF - 1))
    floored = jnp.clip(jnp.floor(y_cl / GRID), -HALF, HALF - 1)
    frac = y / GRID - floored
    idx = (floored + HALF).astype(jnp.int32)
    chan = jnp.arange(coeff.shape[1])[None, None, None, :]
    a = coeff[idx, chan] * (1.0 - frac) + coeff[idx + 1, chan] * frac
    # adjoint convs (== conv_transpose2d, stride=1, padding=1), reverse order
    w2_adj = jnp.flip(w2_hwio, axis=(0, 1)).transpose(0, 1, 3, 2)
    w1_adj = jnp.flip(w1_hwio, axis=(0, 1)).transpose(0, 1, 3, 2)
    z = lax.conv_general_dilated(a, w2_adj, (1, 1), 'SAME',
                                 dimension_numbers=dn, precision=hp)
    z = lax.conv_general_dilated(z, w1_adj, (1, 1), 'SAME',
                                 dimension_numbers=dn, precision=hp)
    return jnp.transpose(z, (0, 3, 1, 2))


if __name__ == "__main__":
    key = jax.random.PRNGKey(0)
    k1, k2, k3, k4 = jax.random.split(key, 4)

    N, H, W = 2, 16, 16
    x = jax.random.normal(k1, (N, CHANNELS[0], H, W), jnp.float32)

    fan1 = CHANNELS[0] * KSIZE * KSIZE
    fan2 = CHANNELS[1] * KSIZE * KSIZE
    w1_oihw = (1.0 / np.sqrt(fan1)) * jax.random.normal(
        k2, (CHANNELS[1], CHANNELS[0], KSIZE, KSIZE), jnp.float32)
    w2_oihw = (1.0 / np.sqrt(fan2)) * jax.random.normal(
        k3, (CHANNELS[2], CHANNELS[1], KSIZE, KSIZE), jnp.float32)
    w1_hwio = jnp.transpose(w1_oihw, (2, 3, 1, 0))            # (3,3,1,8)
    w2_hwio = jnp.transpose(w2_oihw, (2, 3, 1, 0))            # (3,3,8,32)

    # LinearSpline coefficients (size x num_activations): identity init + jitter
    grid_tensor = jnp.linspace(-KNOTS_RANGE, KNOTS_RANGE, N_KNOTS, dtype=jnp.float32)
    coeff = grid_tensor[:, None] + 0.01 * jax.random.normal(
        k4, (N_KNOTS, CHANNELS[2]), jnp.float32)

    out = crr_forward(x, w1_hwio, w2_hwio, coeff)
    out = jax.block_until_ready(out)

    ref = crr_forward_ref(x, w1_hwio, w2_hwio, coeff)
    err = float(jnp.max(jnp.abs(out - ref)))
    scale = float(jnp.max(jnp.abs(ref))) + 1e-6
    assert out.shape == x.shape, (out.shape, x.shape)
    assert err <= 2e-5 * scale + 1e-6, f"mismatch: max_abs_err={err}, scale={scale}"
    print("KERNEL_OK")
</pallas_src>

<mosaic_0001>
module attributes {stable_mosaic.version = 11 : i64} {
  func.func @crr_kernel(%arg0: i32, %arg1: memref<1x1x256xf32, #tpu.memory_space<vmem>>, %arg2: memref<16x256xf32, #tpu.memory_space<vmem>>, %arg3: memref<8x16xf32, #tpu.memory_space<vmem>>, %arg4: memref<32x72xf32, #tpu.memory_space<vmem>>, %arg5: memref<72x32xf32, #tpu.memory_space<vmem>>, %arg6: memref<16x8xf32, #tpu.memory_space<vmem>>, %arg7: memref<32x21xf32, #tpu.memory_space<vmem>>, %arg8: memref<1x1x256xf32, #tpu.memory_space<vmem>>) attributes {dimension_semantics = [#tpu.dimension_semantics<parallel>], iteration_bounds = array<i64: 2>, scalar_prefetch = 0 : i64, scratch_operands = 0 : i64, tpu.core_type = #tpu.core_type<tc>, window_params = [{transform_indices = @transform_0, window_bounds = array<i64: 1, 1, 256>}, {pipeline_mode = #tpu.pipeline_mode<synchronous>, transform_indices = @transform_1, window_bounds = array<i64: 16, 256>}, {pipeline_mode = #tpu.pipeline_mode<synchronous>, transform_indices = @transform_2, window_bounds = array<i64: 8, 16>}, {pipeline_mode = #tpu.pipeline_mode<synchronous>, transform_indices = @transform_3, window_bounds = array<i64: 32, 72>}, {pipeline_mode = #tpu.pipeline_mode<synchronous>, transform_indices = @transform_4, window_bounds = array<i64: 72, 32>}, {pipeline_mode = #tpu.pipeline_mode<synchronous>, transform_indices = @transform_5, window_bounds = array<i64: 16, 8>}, {pipeline_mode = #tpu.pipeline_mode<synchronous>, transform_indices = @transform_6, window_bounds = array<i64: 32, 21>}, {transform_indices = @transform_7, window_bounds = array<i64: 1, 1, 256>}]} {
    %c0 = arith.constant 0 : index
    %c0_0 = arith.constant 0 : index
    %c0_1 = arith.constant 0 : index
    %0 = vector.load %arg1[%c0, %c0_0, %c0_1] : memref<1x1x256xf32, #tpu.memory_space<vmem>>, vector<1x1x256xf32>
    %1 = vector.shape_cast %0 : vector<1x1x256xf32> to vector<1x256xf32>
    %c0_2 = arith.constant 0 : index
    %c0_3 = arith.constant 0 : index
    %2 = vector.load %arg2[%c0_2, %c0_3] : memref<16x256xf32, #tpu.memory_space<vmem>>, vector<16x256xf32>
    %c0_4 = arith.constant 0 : index
    %c0_5 = arith.constant 0 : index
    %3 = vector.load %arg3[%c0_4, %c0_5] : memref<8x16xf32, #tpu.memory_space<vmem>>, vector<8x16xf32>
    %c0_6 = arith.constant 0 : index
    %c0_7 = arith.constant 0 : index
    %4 = vector.load %arg4[%c0_6, %c0_7] : memref<32x72xf32, #tpu.memory_space<vmem>>, vector<32x72xf32>
    %c0_8 = arith.constant 0 : index
    %c0_9 = arith.constant 0 : index
    %5 = vector.load %arg5[%c0_8, %c0_9] : memref<72x32xf32, #tpu.memory_space<vmem>>, vector<72x32xf32>
    %c0_10 = arith.constant 0 : index
    %c0_11 = arith.constant 0 : index
    %6 = vector.load %arg6[%c0_10, %c0_11] : memref<16x8xf32, #tpu.memory_space<vmem>>, vector<16x8xf32>
    %c0_12 = arith.constant 0 : index
    %c0_13 = arith.constant 0 : index
    %7 = vector.load %arg7[%c0_12, %c0_13] : memref<32x21xf32, #tpu.memory_space<vmem>>, vector<32x21xf32>
    %c17_i32 = arith.constant 17 : i32
    %8 = tpu.dynamic_rotate %1 by %c17_i32 dim 1 : vector<1x256xf32>, i32 -> vector<1x256xf32>
    %9 = vector.extract_strided_slice %2 {offsets = [0, 0], sizes = [1, 256], strides = [1, 1]} : vector<16x256xf32> to vector<1x256xf32>
    %10 = arith.mulf %8, %9 : vector<1x256xf32>
    %c16_i32 = arith.constant 16 : i32
    %11 = tpu.dynamic_rotate %1 by %c16_i32 dim 1 : vector<1x256xf32>, i32 -> vector<1x256xf32>
    %12 = vector.extract_strided_slice %2 {offsets = [1, 0], sizes = [1, 256], strides = [1, 1]} : vector<16x256xf32> to vector<1x256xf32>
    %13 = arith.mulf %11, %12 : vector<1x256xf32>
    %c15_i32 = arith.constant 15 : i32
    %14 = tpu.dynamic_rotate %1 by %c15_i32 dim 1 : vector<1x256xf32>, i32 -> vector<1x256xf32>
    %15 = vector.extract_strided_slice %2 {offsets = [2, 0], sizes = [1, 256], strides = [1, 1]} : vector<16x256xf32> to vector<1x256xf32>
    %16 = arith.mulf %14, %15 : vector<1x256xf32>
    %c1_i32 = arith.constant 1 : i32
    %17 = tpu.dynamic_rotate %1 by %c1_i32 dim 1 : vector<1x256xf32>, i32 -> vector<1x256xf32>
    %18 = vector.extract_strided_slice %2 {offsets = [3, 0], sizes = [1, 256], strides = [1, 1]} : vector<16x256xf32> to vector<1x256xf32>
    %19 = arith.mulf %17, %18 : vector<1x256xf32>
    %20 = vector.extract_strided_slice %2 {offsets = [4, 0], sizes = [1, 256], strides = [1, 1]} : vector<16x256xf32> to vector<1x256xf32>
    %21 = arith.mulf %1, %20 : vector<1x256xf32>
    %c255_i32 = arith.constant 255 : i32
    %22 = tpu.dynamic_rotate %1 by %c255_i32 dim 1 : vector<1x256xf32>, i32 -> vector<1x256xf32>
    %23 = vector.extract_strided_slice %2 {offsets = [5, 0], sizes = [1, 256], strides = [1, 1]} : vector<16x256xf32> to vector<1x256xf32>
    %24 = arith.mulf %22, %23 : vector<1x256xf32>
    %c241_i32 = arith.constant 241 : i32
    %25 = tpu.dynamic_rotate %1 by %c241_i32 dim 1 : vector<1x256xf32>, i32 -> vector<1x256xf32>
    %26 = vector.extract_strided_slice %2 {offsets = [6, 0], sizes = [1, 256], strides = [1, 1]} : vector<16x256xf32> to vector<1x256xf32>
    %27 = arith.mulf %25, %26 : vector<1x256xf32>
    %c240_i32 = arith.constant 240 : i32
    %28 = tpu.dynamic_rotate %1 by %c240_i32 dim 1 : vector<1x256xf32>, i32 -> vector<1x256xf32>
    %29 = vector.extract_strided_slice %2 {offsets = [7, 0], sizes = [1, 256], strides = [1, 1]} : vector<16x256xf32> to vector<1x256xf32>
    %30 = arith.mulf %28, %29 : vector<1x256xf32>
    %c239_i32 = arith.constant 239 : i32
    %31 = tpu.dynamic_rotate %1 by %c239_i32 dim 1 : vector<1x256xf32>, i32 -> vector<1x256xf32>
    %32 = vector.extract_strided_slice %2 {offsets = [8, 0], sizes = [1, 256], strides = [1, 1]} : vector<16x256xf32> to vector<1x256xf32>
    %33 = arith.mulf %31, %32 : vector<1x256xf32>
    %cst = arith.constant 0.000000e+00 : f32
    %34 = vector.broadcast %cst : f32 to vector<7x256xf32>
    %35 = tpu.concatenate %10, %13, %16, %19, %21, %24, %27, %30, %33, %34 in 0 : vector<1x256xf32>, vector<1x256xf32>, vector<1x256xf32>, vector<1x256xf32>, vector<1x256xf32>, vector<1x256xf32>, vector<1x256xf32>, vector<1x256xf32>, vector<1x256xf32>, vector<7x256xf32> -> vector<16x256xf32>
    %cst_14 = arith.constant dense<0.000000e+00> : vector<8x256xf32>
    %36 = tpu.matmul %3, %35, %cst_14 {dimension_numbers = #tpu.dot_dimension_numbers<[1], [0], [0], [1], [0, 0, 1, 1], [], []>, precision = #tpu.contract_precision<fp32>} : vector<8x16xf32>, vector<16x256xf32>, vector<8x256xf32> -> vector<8x256xf32>
    %c17_i32_15 = arith.constant 17 : i32
    %37 = tpu.dynamic_rotate %36 by %c17_i32_15 dim 1 : vector<8x256xf32>, i32 -> vector<8x256xf32>
    %38 = vector.extract_strided_slice %2 {offsets = [0, 0], sizes = [1, 256], strides = [1, 1]} : vector<16x256xf32> to vector<1x256xf32>
    %39 = vector.broadcast %38 : vector<1x256xf32> to vector<8x256xf32>
    %40 = arith.mulf %37, %39 : vector<8x256xf32>
    %c16_i32_16 = arith.constant 16 : i32
    %41 = tpu.dynamic_rotate %36 by %c16_i32_16 dim 1 : vector<8x256xf32>, i32 -> vector<8x256xf32>
    %42 = vector.extract_strided_slice %2 {offsets = [1, 0], sizes = [1, 256], strides = [1, 1]} : vector<16x256xf32> to vector<1x256xf32>
    %43 = vector.broadcast %42 : vector<1x256xf32> to vector<8x256xf32>
    %44 = arith.mulf %41, %43 : vector<8x256xf32>
    %c15_i32_17 = arith.constant 15 : i32
    %45 = tpu.dynamic_rotate %36 by %c15_i32_17 dim 1 : vector<8x256xf32>, i32 -> vector<8x256xf32>
    %46 = vector.extract_strided_slice %2 {offsets = [2, 0], sizes = [1, 256], strides = [1, 1]} : vector<16x256xf32> to vector<1x256xf32>
    %47 = vector.broadcast %46 : vector<1x256xf32> to vector<8x256xf32>
    %48 = arith.mulf %45, %47 : vector<8x256xf32>
    %c1_i32_18 = arith.constant 1 : i32
    %49 = tpu.dynamic_rotate %36 by %c1_i32_18 dim 1 : vector<8x256xf32>, i32 -> vector<8x256xf32>
    %50 = vector.extract_strided_slice %2 {offsets = [3, 0], sizes = [1, 256], strides = [1, 1]} : vector<16x256xf32> to vector<1x256xf32>
    %51 = vector.broadcast %50 : vector<1x256xf32> to vector<8x256xf32>
    %52 = arith.mulf %49, %51 : vector<8x256xf32>
    %53 = vector.extract_strided_slice %2 {offsets = [4, 0], sizes = [1, 256], strides = [1, 1]} : vector<16x256xf32> to vector<1x256xf32>
    %54 = vector.broadcast %53 : vector<1x256xf32> to vector<8x256xf32>
    %55 = arith.mulf %36, %54 : vector<8x256xf32>
    %c255_i32_19 = arith.constant 255 : i32
    %56 = tpu.dynamic_rotate %36 by %c255_i32_19 dim 1 : vector<8x256xf32>, i32 -> vector<8x256xf32>
    %57 = vector.extract_strided_slice %2 {offsets = [5, 0], sizes = [1, 256], strides = [1, 1]} : vector<16x256xf32> to vector<1x256xf32>
    %58 = vector.broadcast %57 : vector<1x256xf32> to vector<8x256xf32>
    %59 = arith.mulf %56, %58 : vector<8x256xf32>
    %c241_i32_20 = arith.constant 241 : i32
    %60 = tpu.dynamic_rotate %36 by %c241_i32_20 dim 1 : vector<8x256xf32>, i32 -> vector<8x256xf32>
    %61 = vector.extract_strided_slice %2 {offsets = [6, 0], sizes = [1, 256], strides = [1, 1]} : vector<16x256xf32> to vector<1x256xf32>
    %62 = vector.broadcast %61 : vector<1x256xf32> to vector<8x256xf32>
    %63 = arith.mulf %60, %62 : vector<8x256xf32>
    %c240_i32_21 = arith.constant 240 : i32
    %64 = tpu.dynamic_rotate %36 by %c240_i32_21 dim 1 : vector<8x256xf32>, i32 -> vector<8x256xf32>
    %65 = vector.extract_strided_slice %2 {offsets = [7, 0], sizes = [1, 256], strides = [1, 1]} : vector<16x256xf32> to vector<1x256xf32>
    %66 = vector.broadcast %65 : vector<1x256xf32> to vector<8x256xf32>
    %67 = arith.mulf %64, %66 : vector<8x256xf32>
    %c239_i32_22 = arith.constant 239 : i32
    %68 = tpu.dynamic_rotate %36 by %c239_i32_22 dim 1 : vector<8x256xf32>, i32 -> vector<8x256xf32>
    %69 = vector.extract_strided_slice %2 {offsets = [8, 0], sizes = [1, 256], strides = [1, 1]} : vector<16x256xf32> to vector<1x256xf32>
    %70 = vector.broadcast %69 : vector<1x256xf32> to vector<8x256xf32>
    %71 = arith.mulf %68, %70 : vector<8x256xf32>
    %72 = tpu.concatenate %40, %44, %48, %52, %55, %59, %63, %67, %71 in 0 : vector<8x256xf32>, vector<8x256xf32>, vector<8x256xf32>, vector<8x256xf32>, vector<8x256xf32>, vector<8x256xf32>, vector<8x256xf32>, vector<8x256xf32>, vector<8x256xf32> -> vector<72x256xf32>
    %cst_23 = arith.constant dense<0.000000e+00> : vector<32x256xf32>
    %73 = tpu.matmul %4, %72, %cst_23 {dimension_numbers = #tpu.dot_dimension_numbers<[1], [0], [0], [1], [0, 0, 1, 1], [], []>, precision = #tpu.contract_precision<fp32>} : vector<32x72xf32>, vector<72x256xf32>, vector<32x256xf32> -> vector<32x256xf32>
    %74 = vector.extract_strided_slice %7 {offsets = [0, 0], sizes = [32, 1], strides = [1, 1]} : vector<32x21xf32> to vector<32x1xf32>
    %75 = vector.extract_strided_slice %7 {offsets = [0, 1], sizes = [32, 1], strides = [1, 1]} : vector<32x21xf32> to vector<32x1xf32>
    %76 = vector.broadcast %75 : vector<32x1xf32> to vector<32x256xf32>
    %77 = arith.mulf %76, %73 : vector<32x256xf32>
    %78 = vector.broadcast %74 : vector<32x1xf32> to vector<32x256xf32>
    %79 = arith.addf %78, %77 : vector<32x256xf32>
    %80 = vector.extract_strided_slice %7 {offsets = [0, 2], sizes = [32, 1], strides = [1, 1]} : vector<32x21xf32> to vector<32x1xf32>
    %cst_24 = arith.constant -9.000000e-02 : f32
    %81 = vector.broadcast %cst_24 : f32 to vector<32x256xf32>
    %82 = arith.subf %73, %81 : vector<32x256xf32>
    %cst_25 = arith.constant 0.000000e+00 : f32
    %83 = vector.broadcast %cst_25 : f32 to vector<32x256xf32>
    %84 = arith.maximumf %82, %83 : vector<32x256xf32>
    %85 = vector.broadcast %80 : vector<32x1xf32> to vector<32x256xf32>
    %86 = arith.mulf %85, %84 : vector<32x256xf32>
    %87 = arith.addf %79, %86 : vector<32x256xf32>
    %88 = vector.extract_strided_slice %7 {offsets = [0, 3], sizes = [32, 1], strides = [1, 1]} : vector<32x21xf32> to vector<32x1xf32>
    %cst_26 = arith.constant -8.000000e-02 : f32
    %89 = vector.broadcast %cst_26 : f32 to vector<32x256xf32>
    %90 = arith.subf %73, %89 : vector<32x256xf32>
    %cst_27 = arith.constant 0.000000e+00 : f32
    %91 = vector.broadcast %cst_27 : f32 to vector<32x256xf32>
    %92 = arith.maximumf %90, %91 : vector<32x256xf32>
    %93 = vector.broadcast %88 : vector<32x1xf32> to vector<32x256xf32>
    %94 = arith.mulf %93, %92 : vector<32x256xf32>
    %95 = arith.addf %87, %94 : vector<32x256xf32>
    %96 = vector.extract_strided_slice %7 {offsets = [0, 4], sizes = [32, 1], strides = [1, 1]} : vector<32x21xf32> to vector<32x1xf32>
    %cst_28 = arith.constant -7.000000e-02 : f32
    %97 = vector.broadcast %cst_28 : f32 to vector<32x256xf32>
    %98 = arith.subf %73, %97 : vector<32x256xf32>
    %cst_29 = arith.constant 0.000000e+00 : f32
    %99 = vector.broadcast %cst_29 : f32 to vector<32x256xf32>
    %100 = arith.maximumf %98, %99 : vector<32x256xf32>
    %101 = vector.broadcast %96 : vector<32x1xf32> to vector<32x256xf32>
    %102 = arith.mulf %101, %100 : vector<32x256xf32>
    %103 = arith.addf %95, %102 : vector<32x256xf32>
    %104 = vector.extract_strided_slice %7 {offsets = [0, 5], sizes = [32, 1], strides = [1, 1]} : vector<32x21xf32> to vector<32x1xf32>
    %cst_30 = arith.constant -6.000000e-02 : f32
    %105 = vector.broadcast %cst_30 : f32 to vector<32x256xf32>
    %106 = arith.subf %73, %105 : vector<32x256xf32>
    %cst_31 = arith.constant 0.000000e+00 : f32
    %107 = vector.broadcast %cst_31 : f32 to vector<32x256xf32>
    %108 = arith.maximumf %106, %107 : vector<32x256xf32>
    %109 = vector.broadcast %104 : vector<32x1xf32> to vector<32x256xf32>
    %110 = arith.mulf %109, %108 : vector<32x256xf32>
    %111 = arith.addf %103, %110 : vector<32x256xf32>
    %112 = vector.extract_strided_slice %7 {offsets = [0, 6], sizes = [32, 1], strides = [1, 1]} : vector<32x21xf32> to vector<32x1xf32>
    %cst_32 = arith.constant -5.000000e-02 : f32
    %113 = vector.broadcast %cst_32 : f32 to vector<32x256xf32>
    %114 = arith.subf %73, %113 : vector<32x256xf32>
    %cst_33 = arith.constant 0.000000e+00 : f32
    %115 = vector.broadcast %cst_33 : f32 to vector<32x256xf32>
    %116 = arith.maximumf %114, %115 : vector<32x256xf32>
    %117 = vector.broadcast %112 : vector<32x1xf32> to vector<32x256xf32>
    %118 = arith.mulf %117, %116 : vector<32x256xf32>
    %119 = arith.addf %111, %118 : vector<32x256xf32>
    %120 = vector.extract_strided_slice %7 {offsets = [0, 7], sizes = [32, 1], strides = [1, 1]} : vector<32x21xf32> to vector<32x1xf32>
    %cst_34 = arith.constant -4.000000e-02 : f32
    %121 = vector.broadcast %cst_34 : f32 to vector<32x256xf32>
    %122 = arith.subf %73, %121 : vector<32x256xf32>
    %cst_35 = arith.constant 0.000000e+00 : f32
    %123 = vector.broadcast %cst_35 : f32 to vector<32x256xf32>
    %124 = arith.maximumf %122, %123 : vector<32x256xf32>
    %125 = vector.broadcast %120 : vector<32x1xf32> to vector<32x256xf32>
    %126 = arith.mulf %125, %124 : vector<32x256xf32>
    %127 = arith.addf %119, %126 : vector<32x256xf32>
    %128 = vector.extract_strided_slice %7 {offsets = [0, 8], sizes = [32, 1], strides = [1, 1]} : vector<32x21xf32> to vector<32x1xf32>
    %cst_36 = arith.constant -3.000000e-02 : f32
    %129 = vector.broadcast %cst_36 : f32 to vector<32x256xf32>
    %130 = arith.subf %73, %129 : vector<32x256xf32>
    %cst_37 = arith.constant 0.000000e+00 : f32
    %131 = vector.broadcast %cst_37 : f32 to vector<32x256xf32>
    %132 = arith.maximumf %130, %131 : vector<32x256xf32>
    %133 = vector.broadcast %128 : vector<32x1xf32> to vector<32x256xf32>
    %134 = arith.mulf %133, %132 : vector<32x256xf32>
    %135 = arith.addf %127, %134 : vector<32x256xf32>
    %136 = vector.extract_strided_slice %7 {offsets = [0, 9], sizes = [32, 1], strides = [1, 1]} : vector<32x21xf32> to vector<32x1xf32>
    %cst_38 = arith.constant -2.000000e-02 : f32
    %137 = vector.broadcast %cst_38 : f32 to vector<32x256xf32>
    %138 = arith.subf %73, %137 : vector<32x256xf32>
    %cst_39 = arith.constant 0.000000e+00 : f32
    %139 = vector.broadcast %cst_39 : f32 to vector<32x256xf32>
    %140 = arith.maximumf %138, %139 : vector<32x256xf32>
    %141 = vector.broadcast %136 : vector<32x1xf32> to vector<32x256xf32>
    %142 = arith.mulf %141, %140 : vector<32x256xf32>
    %143 = arith.addf %135, %142 : vector<32x256xf32>
    %144 = vector.extract_strided_slice %7 {offsets = [0, 10], sizes = [32, 1], strides = [1, 1]} : vector<32x21xf32> to vector<32x1xf32>
    %cst_40 = arith.constant -0.00999999977 : f32
    %145 = vector.broadcast %cst_40 : f32 to vector<32x256xf32>
    %146 = arith.subf %73, %145 : vector<32x256xf32>
    %cst_41 = arith.constant 0.000000e+00 : f32
    %147 = vector.broadcast %cst_41 : f32 to vector<32x256xf32>
    %148 = arith.maximumf %146, %147 : vector<32x256xf32>
    %149 = vector.broadcast %144 : vector<32x1xf32> to vector<32x256xf32>
    %150 = arith.mulf %149, %148 : vector<32x256xf32>
    %151 = arith.addf %143, %150 : vector<32x256xf32>
    %152 = vector.extract_strided_slice %7 {offsets = [0, 11], sizes = [32, 1], strides = [1, 1]} : vector<32x21xf32> to vector<32x1xf32>
    %cst_42 = arith.constant 0.000000e+00 : f32
    %153 = vector.broadcast %cst_42 : f32 to vector<32x256xf32>
    %154 = arith.subf %73, %153 : vector<32x256xf32>
    %cst_43 = arith.constant 0.000000e+00 : f32
    %155 = vector.broadcast %cst_43 : f32 to vector<32x256xf32>
    %156 = arith.maximumf %154, %155 : vector<32x256xf32>
    %157 = vector.broadcast %152 : vector<32x1xf32> to vector<32x256xf32>
    %158 = arith.mulf %157, %156 : vector<32x256xf32>
    %159 = arith.addf %151, %158 : vector<32x256xf32>
    %160 = vector.extract_strided_slice %7 {offsets = [0, 12], sizes = [32, 1], strides = [1, 1]} : vector<32x21xf32> to vector<32x1xf32>
    %cst_44 = arith.constant 0.00999999977 : f32
    %161 = vector.broadcast %cst_44 : f32 to vector<32x256xf32>
    %162 = arith.subf %73, %161 : vector<32x256xf32>
    %cst_45 = arith.constant 0.000000e+00 : f32
    %163 = vector.broadcast %cst_45 : f32 to vector<32x256xf32>
    %164 = arith.maximumf %162, %163 : vector<32x256xf32>
    %165 = vector.broadcast %160 : vector<32x1xf32> to vector<32x256xf32>
    %166 = arith.mulf %165, %164 : vector<32x256xf32>
    %167 = arith.addf %159, %166 : vector<32x256xf32>
    %168 = vector.extract_strided_slice %7 {offsets = [0, 13], sizes = [32, 1], strides = [1, 1]} : vector<32x21xf32> to vector<32x1xf32>
    %cst_46 = arith.constant 2.000000e-02 : f32
    %169 = vector.broadcast %cst_46 : f32 to vector<32x256xf32>
    %170 = arith.subf %73, %169 : vector<32x256xf32>
    %cst_47 = arith.constant 0.000000e+00 : f32
    %171 = vector.broadcast %cst_47 : f32 to vector<32x256xf32>
    %172 = arith.maximumf %170, %171 : vector<32x256xf32>
    %173 = vector.broadcast %168 : vector<32x1xf32> to vector<32x256xf32>
    %174 = arith.mulf %173, %172 : vector<32x256xf32>
    %175 = arith.addf %167, %174 : vector<32x256xf32>
    %176 = vector.extract_strided_slice %7 {offsets = [0, 14], sizes = [32, 1], strides = [1, 1]} : vector<32x21xf32> to vector<32x1xf32>
    %cst_48 = arith.constant 3.000000e-02 : f32
    %177 = vector.broadcast %cst_48 : f32 to vector<32x256xf32>
    %178 = arith.subf %73, %177 : vector<32x256xf32>
    %cst_49 = arith.constant 0.000000e+00 : f32
    %179 = vector.broadcast %cst_49 : f32 to vector<32x256xf32>
    %180 = arith.maximumf %178, %179 : vector<32x256xf32>
    %181 = vector.broadcast %176 : vector<32x1xf32> to vector<32x256xf32>
    %182 = arith.mulf %181, %180 : vector<32x256xf32>
    %183 = arith.addf %175, %182 : vector<32x256xf32>
    %184 = vector.extract_strided_slice %7 {offsets = [0, 15], sizes = [32, 1], strides = [1, 1]} : vector<32x21xf32> to vector<32x1xf32>
    %cst_50 = arith.constant 4.000000e-02 : f32
    %185 = vector.broadcast %cst_50 : f32 to vector<32x256xf32>
    %186 = arith.subf %73, %185 : vector<32x256xf32>
    %cst_51 = arith.constant 0.000000e+00 : f32
    %187 = vector.broadcast %cst_51 : f32 to vector<32x256xf32>
    %188 = arith.maximumf %186, %187 : vector<32x256xf32>
    %189 = vector.broadcast %184 : vector<32x1xf32> to vector<32x256xf32>
    %190 = arith.mulf %189, %188 : vector<32x256xf32>
    %191 = arith.addf %183, %190 : vector<32x256xf32>
    %192 = vector.extract_strided_slice %7 {offsets = [0, 16], sizes = [32, 1], strides = [1, 1]} : vector<32x21xf32> to vector<32x1xf32>
    %cst_52 = arith.constant 5.000000e-02 : f32
    %193 = vector.broadcast %cst_52 : f32 to vector<32x256xf32>
    %194 = arith.subf %73, %193 : vector<32x256xf32>
    %cst_53 = arith.constant 0.000000e+00 : f32
    %195 = vector.broadcast %cst_53 : f32 to vector<32x256xf32>
    %196 = arith.maximumf %194, %195 : vector<32x256xf32>
    %197 = vector.broadcast %192 : vector<32x1xf32> to vector<32x256xf32>
    %198 = arith.mulf %197, %196 : vector<32x256xf32>
    %199 = arith.addf %191, %198 : vector<32x256xf32>
    %200 = vector.extract_strided_slice %7 {offsets = [0, 17], sizes = [32, 1], strides = [1, 1]} : vector<32x21xf32> to vector<32x1xf32>
    %cst_54 = arith.constant 6.000000e-02 : f32
    %201 = vector.broadcast %cst_54 : f32 to vector<32x256xf32>
    %202 = arith.subf %73, %201 : vector<32x256xf32>
    %cst_55 = arith.constant 0.000000e+00 : f32
    %203 = vector.broadcast %cst_55 : f32 to vector<32x256xf32>
    %204 = arith.maximumf %202, %203 : vector<32x256xf32>
    %205 = vector.broadcast %200 : vector<32x1xf32> to vector<32x256xf32>
    %206 = arith.mulf %205, %204 : vector<32x256xf32>
    %207 = arith.addf %199, %206 : vector<32x256xf32>
    %208 = vector.extract_strided_slice %7 {offsets = [0, 18], sizes = [32, 1], strides = [1, 1]} : vector<32x21xf32> to vector<32x1xf32>
    %cst_56 = arith.constant 7.000000e-02 : f32
    %209 = vector.broadcast %cst_56 : f32 to vector<32x256xf32>
    %210 = arith.subf %73, %209 : vector<32x256xf32>
    %cst_57 = arith.constant 0.000000e+00 : f32
    %211 = vector.broadcast %cst_57 : f32 to vector<32x256xf32>
    %212 = arith.maximumf %210, %211 : vector<32x256xf32>
    %213 = vector.broadcast %208 : vector<32x1xf32> to vector<32x256xf32>
    %214 = arith.mulf %213, %212 : vector<32x256xf32>
    %215 = arith.addf %207, %214 : vector<32x256xf32>
    %216 = vector.extract_strided_slice %7 {offsets = [0, 19], sizes = [32, 1], strides = [1, 1]} : vector<32x21xf32> to vector<32x1xf32>
    %cst_58 = arith.constant 8.000000e-02 : f32
    %217 = vector.broadcast %cst_58 : f32 to vector<32x256xf32>
    %218 = arith.subf %73, %217 : vector<32x256xf32>
    %cst_59 = arith.constant 0.000000e+00 : f32
    %219 = vector.broadcast %cst_59 : f32 to vector<32x256xf32>
    %220 = arith.maximumf %218, %219 : vector<32x256xf32>
    %221 = vector.broadcast %216 : vector<32x1xf32> to vector<32x256xf32>
    %222 = arith.mulf %221, %220 : vector<32x256xf32>
    %223 = arith.addf %215, %222 : vector<32x256xf32>
    %224 = vector.extract_strided_slice %7 {offsets = [0, 20], sizes = [32, 1], strides = [1, 1]} : vector<32x21xf32> to vector<32x1xf32>
    %cst_60 = arith.constant 9.000000e-02 : f32
    %225 = vector.broadcast %cst_60 : f32 to vector<32x256xf32>
    %226 = arith.subf %73, %225 : vector<32x256xf32>
    %cst_61 = arith.constant 0.000000e+00 : f32
    %227 = vector.broadcast %cst_61 : f32 to vector<32x256xf32>
    %228 = arith.maximumf %226, %227 : vector<32x256xf32>
    %229 = vector.broadcast %224 : vector<32x1xf32> to vector<32x256xf32>
    %230 = arith.mulf %229, %228 : vector<32x256xf32>
    %231 = arith.addf %223, %230 : vector<32x256xf32>
    %cst_62 = arith.constant dense<0.000000e+00> : vector<72x256xf32>
    %232 = tpu.matmul %5, %231, %cst_62 {dimension_numbers = #tpu.dot_dimension_numbers<[1], [0], [0], [1], [0, 0, 1, 1], [], []>, precision = #tpu.contract_precision<fp32>} : vector<72x32xf32>, vector<32x256xf32>, vector<72x256xf32> -> vector<72x256xf32>
    %cst_63 = arith.constant 0.000000e+00 : f32
    %233 = vector.broadcast %cst_63 : f32 to vector<8x256xf32>
    %234 = vector.extract_strided_slice %232 {offsets = [0, 0], sizes = [8, 256], strides = [1, 1]} : vector<72x256xf32> to vector<8x256xf32>
    %c239_i32_64 = arith.constant 239 : i32
    %235 = tpu.dynamic_rotate %234 by %c239_i32_64 dim 1 : vector<8x256xf32>, i32 -> vector<8x256xf32>
    %236 = vector.extract_strided_slice %2 {offsets = [8, 0], sizes = [1, 256], strides = [1, 1]} : vector<16x256xf32> to vector<1x256xf32>
    %237 = vector.broadcast %236 : vector<1x256xf32> to vector<8x256xf32>
    %238 = arith.mulf %235, %237 : vector<8x256xf32>
    %239 = arith.addf %233, %238 : vector<8x256xf32>
    %240 = vector.extract_strided_slice %232 {offsets = [8, 0], sizes = [8, 256], strides = [1, 1]} : vector<72x256xf32> to vector<8x256xf32>
    %c240_i32_65 = arith.constant 240 : i32
    %241 = tpu.dynamic_rotate %240 by %c240_i32_65 dim 1 : vector<8x256xf32>, i32 -> vector<8x256xf32>
    %242 = vector.extract_strided_slice %2 {offsets = [7, 0], sizes = [1, 256], strides = [1, 1]} : vector<16x256xf32> to vector<1x256xf32>
    %243 = vector.broadcast %242 : vector<1x256xf32> to vector<8x256xf32>
    %244 = arith.mulf %241, %243 : vector<8x256xf32>
    %245 = arith.addf %239, %244 : vector<8x256xf32>
    %246 = vector.extract_strided_slice %232 {offsets = [16, 0], sizes = [8, 256], strides = [1, 1]} : vector<72x256xf32> to vector<8x256xf32>
    %c241_i32_66 = arith.constant 241 : i32
    %247 = tpu.dynamic_rotate %246 by %c241_i32_66 dim 1 : vector<8x256xf32>, i32 -> vector<8x256xf32>
    %248 = vector.extract_strided_slice %2 {offsets = [6, 0], sizes = [1, 256], strides = [1, 1]} : vector<16x256xf32> to vector<1x256xf32>
    %249 = vector.broadcast %248 : vector<1x256xf32> to vector<8x256xf32>
    %250 = arith.mulf %247, %249 : vector<8x256xf32>
    %251 = arith.addf %245, %250 : vector<8x256xf32>
    %252 = vector.extract_strided_slice %232 {offsets = [24, 0], sizes = [8, 256], strides = [1, 1]} : vector<72x256xf32> to vector<8x256xf32>
    %c255_i32_67 = arith.constant 255 : i32
    %253 = tpu.dynamic_rotate %252 by %c255_i32_67 dim 1 : vector<8x256xf32>, i32 -> vector<8x256xf32>
    %254 = vector.extract_strided_slice %2 {offsets = [5, 0], sizes = [1, 256], strides = [1, 1]} : vector<16x256xf32> to vector<1x256xf32>
    %255 = vector.broadcast %254 : vector<1x256xf32> to vector<8x256xf32>
    %256 = arith.mulf %253, %255 : vector<8x256xf32>
    %257 = arith.addf %251, %256 : vector<8x256xf32>
    %258 = vector.extract_strided_slice %232 {offsets = [32, 0], sizes = [8, 256], strides = [1, 1]} : vector<72x256xf32> to vector<8x256xf32>
    %259 = vector.extract_strided_slice %2 {offsets = [4, 0], sizes = [1, 256], strides = [1, 1]} : vector<16x256xf32> to vector<1x256xf32>
    %260 = vector.broadcast %259 : vector<1x256xf32> to vector<8x256xf32>
    %261 = arith.mulf %258, %260 : vector<8x256xf32>
    %262 = arith.addf %257, %261 : vector<8x256xf32>
    %263 = vector.extract_strided_slice %232 {offsets = [40, 0], sizes = [8, 256], strides = [1, 1]} : vector<72x256xf32> to vector<8x256xf32>
    %c1_i32_68 = arith.constant 1 : i32
    %264 = tpu.dynamic_rotate %263 by %c1_i32_68 dim 1 : vector<8x256xf32>, i32 -> vector<8x256xf32>
    %265 = vector.extract_strided_slice %2 {offsets = [3, 0], sizes = [1, 256], strides = [1, 1]} : vector<16x256xf32> to vector<1x256xf32>
    %266 = vector.broadcast %265 : vector<1x256xf32> to vector<8x256xf32>
    %267 = arith.mulf %264, %266 : vector<8x256xf32>
    %268 = arith.addf %262, %267 : vector<8x256xf32>
    %269 = vector.extract_strided_slice %232 {offsets = [48, 0], sizes = [8, 256], strides = [1, 1]} : vector<72x256xf32> to vector<8x256xf32>
    %c15_i32_69 = arith.constant 15 : i32
    %270 = tpu.dynamic_rotate %269 by %c15_i32_69 dim 1 : vector<8x256xf32>, i32 -> vector<8x256xf32>
    %271 = vector.extract_strided_slice %2 {offsets = [2, 0], sizes = [1, 256], strides = [1, 1]} : vector<16x256xf32> to vector<1x256xf32>
    %272 = vector.broadcast %271 : vector<1x256xf32> to vector<8x256xf32>
    %273 = arith.mulf %270, %272 : vector<8x256xf32>
    %274 = arith.addf %268, %273 : vector<8x256xf32>
    %275 = vector.extract_strided_slice %232 {offsets = [56, 0], sizes = [8, 256], strides = [1, 1]} : vector<72x256xf32> to vector<8x256xf32>
    %c16_i32_70 = arith.constant 16 : i32
    %276 = tpu.dynamic_rotate %275 by %c16_i32_70 dim 1 : vector<8x256xf32>, i32 -> vector<8x256xf32>
    %277 = vector.extract_strided_slice %2 {offsets = [1, 0], sizes = [1, 256], strides = [1, 1]} : vector<16x256xf32> to vector<1x256xf32>
    %278 = vector.broadcast %277 : vector<1x256xf32> to vector<8x256xf32>
    %279 = arith.mulf %276, %278 : vector<8x256xf32>
    %280 = arith.addf %274, %279 : vector<8x256xf32>
    %281 = vector.extract_strided_slice %232 {offsets = [64, 0], sizes = [8, 256], strides = [1, 1]} : vector<72x256xf32> to vector<8x256xf32>
    %c17_i32_71 = arith.constant 17 : i32
    %282 = tpu.dynamic_rotate %281 by %c17_i32_71 dim 1 : vector<8x256xf32>, i32 -> vector<8x256xf32>
    %283 = vector.extract_strided_slice %2 {offsets = [0, 0], sizes = [1, 256], strides = [1, 1]} : vector<16x256xf32> to vector<1x256xf32>
    %284 = vector.broadcast %283 : vector<1x256xf32> to vector<8x256xf32>
    %285 = arith.mulf %282, %284 : vector<8x256xf32>
    %286 = arith.addf %280, %285 : vector<8x256xf32>
    %cst_72 = arith.constant dense<0.000000e+00> : vector<16x256xf32>
    %287 = tpu.matmul %6, %286, %cst_72 {dimension_numbers = #tpu.dot_dimension_numbers<[1], [0], [0], [1], [0, 0, 1, 1], [], []>, precision = #tpu.contract_precision<fp32>} : vector<16x8xf32>, vector<8x256xf32>, vector<16x256xf32> -> vector<16x256xf32>
    %288 = vector.extract_strided_slice %287 {offsets = [0, 0], sizes = [1, 256], strides = [1, 1]} : vector<16x256xf32> to vector<1x256xf32>
    %c239_i32_73 = arith.constant 239 : i32
    %289 = tpu.dynamic_rotate %288 by %c239_i32_73 dim 1 : vector<1x256xf32>, i32 -> vector<1x256xf32>
    %290 = vector.extract_strided_slice %2 {offsets = [8, 0], sizes = [1, 256], strides = [1, 1]} : vector<16x256xf32> to vector<1x256xf32>
    %291 = arith.mulf %289, %290 : vector<1x256xf32>
    %292 = vector.extract_strided_slice %287 {offsets = [1, 0], sizes = [1, 256], strides = [1, 1]} : vector<16x256xf32> to vector<1x256xf32>
    %c240_i32_74 = arith.constant 240 : i32
    %293 = tpu.dynamic_rotate %292 by %c240_i32_74 dim 1 : vector<1x256xf32>, i32 -> vector<1x256xf32>
    %294 = vector.extract_strided_slice %2 {offsets = [7, 0], sizes = [1, 256], strides = [1, 1]} : vector<16x256xf32> to vector<1x256xf32>
    %295 = arith.mulf %293, %294 : vector<1x256xf32>
    %296 = vector.extract_strided_slice %287 {offsets = [2, 0], sizes = [1, 256], strides = [1, 1]} : vector<16x256xf32> to vector<1x256xf32>
    %c241_i32_75 = arith.constant 241 : i32
    %297 = tpu.dynamic_rotate %296 by %c241_i32_75 dim 1 : vector<1x256xf32>, i32 -> vector<1x256xf32>
    %298 = vector.extract_strided_slice %2 {offsets = [6, 0], sizes = [1, 256], strides = [1, 1]} : vector<16x256xf32> to vector<1x256xf32>
    %299 = arith.mulf %297, %298 : vector<1x256xf32>
    %300 = vector.extract_strided_slice %287 {offsets = [3, 0], sizes = [1, 256], strides = [1, 1]} : vector<16x256xf32> to vector<1x256xf32>
    %c255_i32_76 = arith.constant 255 : i32
    %301 = tpu.dynamic_rotate %300 by %c255_i32_76 dim 1 : vector<1x256xf32>, i32 -> vector<1x256xf32>
    %302 = vector.extract_strided_slice %2 {offsets = [5, 0], sizes = [1, 256], strides = [1, 1]} : vector<16x256xf32> to vector<1x256xf32>
    %303 = arith.mulf %301, %302 : vector<1x256xf32>
    %304 = vector.extract_strided_slice %287 {offsets = [4, 0], sizes = [1, 256], strides = [1, 1]} : vector<16x256xf32> to vector<1x256xf32>
    %305 = vector.extract_strided_slice %2 {offsets = [4, 0], sizes = [1, 256], strides = [1, 1]} : vector<16x256xf32> to vector<1x256xf32>
    %306 = arith.mulf %304, %305 : vector<1x256xf32>
    %307 = vector.extract_strided_slice %287 {offsets = [5, 0], sizes = [1, 256], strides = [1, 1]} : vector<16x256xf32> to vector<1x256xf32>
    %c1_i32_77 = arith.constant 1 : i32
    %308 = tpu.dynamic_rotate %307 by %c1_i32_77 dim 1 : vector<1x256xf32>, i32 -> vector<1x256xf32>
    %309 = vector.extract_strided_slice %2 {offsets = [3, 0], sizes = [1, 256], strides = [1, 1]} : vector<16x256xf32> to vector<1x256xf32>
    %310 = arith.mulf %308, %309 : vector<1x256xf32>
    %311 = vector.extract_strided_slice %287 {offsets = [6, 0], sizes = [1, 256], strides = [1, 1]} : vector<16x256xf32> to vector<1x256xf32>
    %c15_i32_78 = arith.constant 15 : i32
    %312 = tpu.dynamic_rotate %311 by %c15_i32_78 dim 1 : vector<1x256xf32>, i32 -> vector<1x256xf32>
    %313 = vector.extract_strided_slice %2 {offsets = [2, 0], sizes = [1, 256], strides = [1, 1]} : vector<16x256xf32> to vector<1x256xf32>
    %314 = arith.mulf %312, %313 : vector<1x256xf32>
    %315 = vector.extract_strided_slice %287 {offsets = [7, 0], sizes = [1, 256], strides = [1, 1]} : vector<16x256xf32> to vector<1x256xf32>
    %c16_i32_79 = arith.constant 16 : i32
    %316 = tpu.dynamic_rotate %315 by %c16_i32_79 dim 1 : vector<1x256xf32>, i32 -> vector<1x256xf32>
    %317 = vector.extract_strided_slice %2 {offsets = [1, 0], sizes = [1, 256], strides = [1, 1]} : vector<16x256xf32> to vector<1x256xf32>
    %318 = arith.mulf %316, %317 : vector<1x256xf32>
    %319 = vector.extract_strided_slice %287 {offsets = [8, 0], sizes = [1, 256], strides = [1, 1]} : vector<16x256xf32> to vector<1x256xf32>
    %c17_i32_80 = arith.constant 17 : i32
    %320 = tpu.dynamic_rotate %319 by %c17_i32_80 dim 1 : vector<1x256xf32>, i32 -> vector<1x256xf32>
    %321 = vector.extract_strided_slice %2 {offsets = [0, 0], sizes = [1, 256], strides = [1, 1]} : vector<16x256xf32> to vector<1x256xf32>
    %322 = arith.mulf %320, %321 : vector<1x256xf32>
    %323 = tpu.concatenate %291, %295, %299, %303, %306, %310, %314, %318, %322 in 0 : vector<1x256xf32>, vector<1x256xf32>, vector<1x256xf32>, vector<1x256xf32>, vector<1x256xf32>, vector<1x256xf32>, vector<1x256xf32>, vector<1x256xf32>, vector<1x256xf32> -> vector<9x256xf32>
    %cst_81 = arith.constant dense<0.000000e+00> : vector<256xf32>
    %324 = vector.multi_reduction <add>, %323, %cst_81 [0] : vector<9x256xf32> to vector<256xf32>
    %325 = vector.shape_cast %324 : vector<256xf32> to vector<1x256xf32>
    %c0_82 = arith.constant 0 : index
    %c0_83 = arith.constant 0 : index
    %c0_84 = arith.constant 0 : index
    %326 = vector.load %arg8[%c0_82, %c0_83, %c0_84] : memref<1x1x256xf32, #tpu.memory_space<vmem>>, vector<1x1x256xf32>
    %327 = vector.shape_cast %326 : vector<1x1x256xf32> to vector<1x256xf32>
    %328 = vector.shape_cast %325 : vector<1x256xf32> to vector<1x1x256xf32>
    tpu.vector_store %arg8[%c0_82, %c0_83, %c0_84], %328 {strides = array<i32>} : memref<1x1x256xf32, #tpu.memory_space<vmem>>, vector<1x1x256xf32>,
    return
  }
  func.func @transform_0(%arg0: i32) -> (i32, i32, i32) {
    %c0_i32 = arith.constant 0 : i32
    %c0_i32_0 = arith.constant 0 : i32
    %c0_i32_1 = arith.constant 0 : i32
    return %arg0, %c0_i32, %c0_i32_0 : i32, i32, i32
  }
  func.func @transform_1(%arg0: i32) -> (i32, i32) {
    %c0_i32 = arith.constant 0 : i32
    %c0_i32_0 = arith.constant 0 : i32
    %c0_i32_1 = arith.constant 0 : i32
    return %c0_i32, %c0_i32_0 : i32, i32
  }
  func.func @transform_2(%arg0: i32) -> (i32, i32) {
    %c0_i32 = arith.constant 0 : i32
    %c0_i32_0 = arith.constant 0 : i32
    %c0_i32_1 = arith.constant 0 : i32
    return %c0_i32, %c0_i32_0 : i32, i32
  }
  func.func @transform_3(%arg0: i32) -> (i32, i32) {
    %c0_i32 = arith.constant 0 : i32
    %c0_i32_0 = arith.constant 0 : i32
    %c0_i32_1 = arith.constant 0 : i32
    return %c0_i32, %c0_i32_0 : i32, i32
  }
  func.func @transform_4(%arg0: i32) -> (i32, i32) {
    %c0_i32 = arith.constant 0 : i32
    %c0_i32_0 = arith.constant 0 : i32
    %c0_i32_1 = arith.constant 0 : i32
    return %c0_i32, %c0_i32_0 : i32, i32
  }
  func.func @transform_5(%arg0: i32) -> (i32, i32) {
    %c0_i32 = arith.constant 0 : i32
    %c0_i32_0 = arith.constant 0 : i32
    %c0_i32_1 = arith.constant 0 : i32
    return %c0_i32, %c0_i32_0 : i32, i32
  }
  func.func @transform_6(%arg0: i32) -> (i32, i32) {
    %c0_i32 = arith.constant 0 : i32
    %c0_i32_0 = arith.constant 0 : i32
    %c0_i32_1 = arith.constant 0 : i32
    return %c0_i32, %c0_i32_0 : i32, i32
  }
  func.func @transform_7(%arg0: i32) -> (i32, i32, i32) {
    %c0_i32 = arith.constant 0 : i32
    %c0_i32_0 = arith.constant 0 : i32
    %c0_i32_1 = arith.constant 0 : i32
    return %arg0, %c0_i32, %c0_i32_0 : i32, i32, i32
  }
}

</mosaic_0001>

<bundles_post_ra>
// kernel: tpu_custom_call.1
= control target key start
LH: loop header
LB: loop body
LE: loop exit
PB: predicated region body
PF: predicated region fallthrough
CT: control target
= control target key end

     0   :  { %12 = vsyncpa [#allocation3], 0  ;;  %s7454_s0 = inlined_call_operand.vmem [shape: f32[2,1,256], index: 0, kind: input, shape index: {}]   ;;  %s7455_s1 = inlined_call_operand.vmem [shape: f32[16,256], index: 1, kind: input, shape index: {}]   ;;  %s7456_s2 = inlined_call_operand.vmem [shape: f32[8,16], index: 2, kind: input, shape index: {}]   ;;  %s7457_s3 = inlined_call_operand.vmem [shape: f32[32,72], index: 3, kind: input, shape index: {}]   ;;  %s7458_s4 = inlined_call_operand.vmem [shape: f32[72,32], index: 4, kind: input, shape index: {}]   ;;  %s7459_s5 = inlined_call_operand.vmem [shape: f32[16,8], index: 5, kind: input, shape index: {}]   ;;  %s7460_s6 = inlined_call_operand.vmem [shape: f32[32,21], index: 6, kind: input, shape index: {}]   ;;  %s7461_s7 = inlined_call_operand.hbm [shape: f32[2,1,256], index: 7, kind: output, shape index: {}]  }
   0x1   :  { %14 = vsyncpa [#allocation3 + $0x1], 0  ;;  %s5496_s24 = smov 0   ;;  %s5498_s25 = smov 0  }
   0x2   :  { %s5500_s26 = smov 0   ;;  %s5502_s27 = smov 0  }
   0x3 LB: > { %s5517_s28 = sadd.s32 4294967295, %s5422_s27   ;;  %s4742_s29 = sadd.s32 4294967294, %s5422_s27   ;;  %s5422_s27 = sphi %s5502_s27, %s7724_s27   ;;  %s5418_s26 = sphi %s5500_s26, %s7723_s26   ;;  %s5414_s25 = sphi %s5498_s25, %s7722_s25   ;;  %s5410_s24 = sphi %s5496_s24, %s7721_s24  }
   0x4   : > { %s5521_s30 = sadd.s32 1, %s5422_s27   ;;  %s179_s8 = sadd.s32 1, %s5418_s26 }
   0x5   : > { %s176_s9 = ssub.s32 %s5422_s27, %s5521_s30  ;;  %p189_p0 = scmp.ne.s32.totalorder %s5418_s26, %s5414_s25 }
   0x6   : > { %p177_p1 = scmp.eq.s32.totalorder %s176_s9, 0  ;;  %p190_p2 = scmp.eq.s32.totalorder %s5517_s28, 1 }
   0x7   : > { %p195_p3 = scmp.ne.s32.totalorder %s5414_s25, %s5410_s24  ;;  %p196_p4 = scmp.eq.s32.totalorder %s4742_s29, 1 }
   0x8   : > { %s5532_s10 = scalar_select %p177_p1, %s5418_s26, %s179_s8  }
   0x9   : > { %p5534_p5 = por %p190_p2, %p189_p0  ;;  %p5538_p6 = por %p196_p4, %p195_p3 }
   0xa   : > { %p4745_p7 = scmp.ge.s32.totalorder %s5422_s27, 1  ;;  %p239_p8 = scmp.lt.s32.totalorder %s5422_s27, 3 }
   0xc   : > { %p240_p9 = pnand %p4745_p7, %p239_p8 }
   0xe   : > { %243 = sbr.rel (%p240_p9) target bundleno = 2021 (0x7e5), region = 48 }
  0x15   : > { %p270_p10 = scmp.lt.s32.totalorder %s5517_s28, 1  ;;  %v7462_v0 = vlaneseq  ;;  %s5424_s18 = smov 15   ;;  %v7481_v7 = vmov 0.0   ;;  %v5433_v8 = vmov 1966171168   ;;  %v5585_v13 = vld [vmem:[%s7455_s1] sm:$0xff] }
  0x16   : > { %s5425_s19 = smov 16   ;;  %s5426_s20 = smov 17   ;;  %569 = vmatprep.mubr.f32.mxu0 %v7481_v7  ;;  %1225 = vmatprep.mubr.f32.mxu1 %v7481_v7  ;;  %v364_v9 = vunpack.c.l.s4 %v5433_v8  ;;  %7555 = vst [vmem:[#allocation5_spill] sm:$0xff] %v5585_v13  ;;  %v5590_v14 = vld [vmem:[%s7455_s1 + $0x8] sm:$0xff]  ;;  %v7466_v21 = vrot.slane %v5585_v13, 2  ;;  %v7464_v25 = vrot.slane %v5585_v13, 1 }
  0x17   : > { %s271_s13 = scalar_select %p270_p10, %s5517_s28, 1  ;;  %v5547_v1 = vshrl.u32 %v7462_v0, 7  ;;  %7556 = vst [vmem:[#allocation6_spill] sm:$0xff] %v5590_v14  ;;  %v362_v15 = vcombine.high %v5585_v13, %v5590_v14  ;;  %v5598_v17 = vand.u32 127, %v7462_v0  ;;  %v7465_v22 = vrot.slane %v5590_v14, 2  ;;  %v279_v38 = vld [vmem:[%s7456_s2] sm:$0xff] }
  0x18   : > { %s5427_s21 = smov 1   ;;  %s5428_s22 = smov 127   ;;  %v365_v10 = vunpack.c.0.s8 %v364_v9  ;;  %v7463_v26 = vrot.slane %v5590_v14, 1  ;;  %vm474_vm4 = vcmask 1040384   ;;  %v7468_v30 = vrot.slane %v5585_v13, 3 }
  0x19   : > { %s4747_s14 = sshll.u32 %s271_s13, 1  ;;  %v5550_v2 = vsub.s32 0, %v5547_v1  ;;  %v5556_v3 = vsub.s32 1, %v5547_v1  ;;  %s5429_s23 = smov 113   ;;  %7558 = vst [vmem:[#allocation8_spill] sm:$0xff] %v5598_v17  ;;  %vm325_vm0 = vcmp.lt.s32.totalorder %v5598_v17, 16 }
  0x1a   : > { %s273_s17 = scalar_lea.vmem %s7454_s0, %s4747_s14  ;;  %s5430_s29 = smov 112   ;;  %v5595_v16 = vsub.s32 %v365_v10, %v5547_v1  ;;  %vm340_vm1 = vcmp.lt.s32.totalorder %v5598_v17, 15  ;;  %vm316_vm2 = vcmp.lt.s32.totalorder %v5598_v17, 17  ;;  %vm353_vm3 = vcmp.lt.s32.totalorder %v5598_v17, 1 }
  0x1b   : > { %v5558_v4 = vld [vmem:[%s273_s17] sm:$0x3]  ;;  %s5432_s8 = smov 111   ;;  %v7467_v31 = vrot.slane %v5590_v14, 3  ;;  %vm497_vm5 = vcmask 130048   ;;  %vm477_vm6 = vcmask 1041408  }
  0x1c   : > { %v303_v5 = vrot.slane %v5558_v4, %v5550_v2  ;;  %v307_v6 = vrot.slane %v5558_v4, %v5556_v3  ;;  %7557 = vst [vmem:[#allocation7_spill] sm:$0xff] %v5595_v16  ;;  %v369_v20 = vrot.slane %v362_v15, %v5595_v16  ;;  %vm480_vm7 = vcmask 1042432   ;;  %s267_s9 = sand.u32 1, %s5414_s25   ;;  %s4897_s14 = sshll.u32 %s5517_s28, 5 }
  0x1d   : > { %vm383_vm8 = vcmp.lt.s32.totalorder %v5598_v17, 127  ;;  %v7470_v44 = vrot.slane %v5585_v13, 5  ;;  %v7469_v47 = vrot.slane %v5590_v14, 5  ;;  %v499_v48 = vsel %vm497_vm5, %v279_v38, 0  ;;  %s4746_s13 = sshll.u32 %s267_s9, 1  ;;  %s4669_s28 = scalar_lea.sflag [#allocation3], %s267_s9 }
  0x1e   : > { %336 = vrot.lane.b32.xlu1 %v303_v5, %s5424_s18  ;;  %321 = vrot.lane.b32.xlu0 %v303_v5, %s5425_s19  ;;  %v376_v29 = vrot.slane %v369_v20, %v5595_v16  ;;  %vm483_vm9 = vcmask 1043456   ;;  %vm486_vm10 = vcmask 1044480   ;;  %vm396_vm11 = vcmp.lt.s32.totalorder %v5598_v17, 113  ;;  %s269_s15 = scalar_lea.vmem [#allocation2], %s4746_s13 }
  0x1f   : > { %v7472_v60 = vrot.slane %v5585_v13, 6  ;;  %v7471_v61 = vrot.slane %v5590_v14, 6  ;;  %vm409_vm12 = vcmp.lt.s32.totalorder %v5598_v17, 112  ;;  %vm422_vm13 = vcmp.lt.s32.totalorder %v5598_v17, 111  ;;  %s4683_s16 = sshll.u32 %s269_s15, 4  ;;  %s7414_s16 = int_to_ptr.vmem [resolvable:$true] %s4683_s16 }
  0x20   : > { %v378_v43 = vmul.f32 %v376_v29, %v5558_v4  ;;  %v5661_v4 = vand.u32 4294901760, %v499_v48  ;;  %vm489_vm14 = vcmask 1045504   ;;  %vm492_vm15 = vcmask 1046528  }
  0x21   : > { %vm1130_vm5 = vcmask 588800   ;;  %v7591_v17 = vmov 10  }
  0x22   : > { %338 = vrot.lane.b32.xlu1 %v307_v6, %s5424_s18  ;;  %323 = vrot.lane.b32.xlu0 %v307_v6, %s5425_s19  ;;  %v449_v59 = vrot.slane %v378_v43, %v5550_v2 }
  0x26   : > { %312 = vrot.lane.b32.xlu1 %v307_v6, %s5426_s20  ;;  %310 = vrot.lane.b32.xlu0 %v303_v5, %s5426_s20 }
  0x2a   : > { %351 = vrot.lane.b32.xlu1 %v307_v6, %s5427_s21  ;;  %349 = vrot.lane.b32.xlu0 %v303_v5, %s5427_s21 }
  0x2e   : > { %381 = vrot.lane.b32.xlu1 %v307_v6, %s5428_s22  ;;  %379 = vrot.lane.b32.xlu0 %v303_v5, %s5428_s22 }
  0x32   : > { %394 = vrot.lane.b32.xlu1 %v307_v6, %s5429_s23  ;;  %392 = vrot.lane.b32.xlu0 %v303_v5, %s5429_s23 }
  0x36   : > { %407 = vrot.lane.b32.xlu1 %v307_v6, %s5430_s29  ;;  %405 = vrot.lane.b32.xlu0 %v303_v5, %s5430_s29 }
  0x3a   : > { %420 = vrot.lane.b32.xlu1 %v307_v6, %s5432_s8  ;;  %418 = vrot.lane.b32.xlu0 %v303_v5, %s5432_s8 }
  0x90   : > { %v337_v11 = vpop.permute.xlu1 %336  ;;  %v322_v12 = vpop.permute.xlu0 %321 }
  0x94   : > { %v339_v18 = vpop.permute.xlu1 %338  ;;  %v324_v19 = vpop.permute.xlu0 %323 }
  0x95   : > { %v326_v27 = vsel %vm325_vm0, %v322_v12, %v324_v19  ;;  %v327_v28 = vsel %vm325_vm0, %v324_v19, %v322_v12  ;;  %v341_v32 = vsel %vm340_vm1, %v337_v11, %v339_v18  ;;  %v342_v33 = vsel %vm340_vm1, %v339_v18, %v337_v11 }
  0x96   : > { %v334_v39 = vmul.f32 %v7464_v25, %v327_v28  ;;  %v335_v40 = vmul.f32 %v7463_v26, %v326_v27  ;;  %v347_v49 = vmul.f32 %v7466_v21, %v342_v33  ;;  %v348_v50 = vmul.f32 %v7465_v22, %v341_v32 }
  0x97   : > { %v7473_v27 = vrot.slane %v5590_v14, 7  ;;  %v453_v32 = vrot.slane %v378_v43, %v5556_v3  ;;  %v5681_v33 = vsub.f32 %v499_v48, %v5661_v4  ;;  %v1106_v22 = vsub.s32 7, %v5547_v1 }
  0x98   : > { %v313_v23 = vpop.permute.xlu1 %312  ;;  %v311_v24 = vpop.permute.xlu0 %310  ;;  %v429_v55 = vrot.slane %v334_v39, 7  ;;  %v430_v56 = vrot.slane %v335_v40, 7  ;;  %v435_v12 = vrot.slane %v347_v49, 6  ;;  %v436_v15 = vrot.slane %v348_v50, 6  ;;  %v5699_v50 = vld [vmem:[%s7455_s1 + $0x10] sm:$0xff] }
  0x99   : > { %v317_v34 = vsel %vm316_vm2, %v311_v24, %v313_v23  ;;  %v318_v35 = vsel %vm316_vm2, %v313_v23, %v311_v24  ;;  %v7474_v24 = vrot.slane %v5585_v13, 7 }
  0x9a   : > { %v319_v45 = vmul.f32 %v318_v35, %v5585_v13  ;;  %v320_v46 = vmul.f32 %v317_v34, %v5590_v14 }
  0x9c   : > { %v352_v36 = vpop.permute.xlu1 %351  ;;  %v350_v37 = vpop.permute.xlu0 %349  ;;  %v475_v62 = vsel %vm474_vm4, %v319_v45, %v429_v55  ;;  %v476_v63 = vsel %vm474_vm4, %v320_v46, %v430_v56 }
  0x9d   : > { %v354_v41 = vsel %vm353_vm3, %v350_v37, %v352_v36  ;;  %v355_v42 = vsel %vm353_vm3, %v352_v36, %v350_v37  ;;  %v478_v28 = vsel %vm477_vm6, %v475_v62, %v435_v12  ;;  %v479_v29 = vsel %vm477_vm6, %v476_v63, %v436_v15 }
  0x9e   : > { %v360_v51 = vmul.f32 %v7468_v30, %v355_v42  ;;  %v361_v52 = vmul.f32 %v7467_v31, %v354_v41 }
  0xa0   : > { %v382_v53 = vpop.permute.xlu1 %381  ;;  %v380_v54 = vpop.permute.xlu0 %379  ;;  %v441_v5 = vrot.slane %v360_v51, 5  ;;  %v442_v6 = vrot.slane %v361_v52, 5  ;;  %v5704_v51 = vld [vmem:[%s7455_s1 + $0x18] sm:$0xff]  ;;  %v572_v52 = vand.u32 4294901760, %v5681_v33 }
  0xa1   : > { %v384_v57 = vsel %vm383_vm8, %v380_v54, %v382_v53  ;;  %v385_v58 = vsel %vm383_vm8, %v382_v53, %v380_v54 }
  0xa2   : > { %v390_v8 = vmul.f32 %v7470_v44, %v384_v57  ;;  %v391_v9 = vmul.f32 %v7469_v47, %v385_v58  ;;  %v481_v34 = vsel %vm480_vm7, %v478_v28, %v441_v5  ;;  %v482_v35 = vsel %vm480_vm7, %v479_v29, %v442_v6 }
  0xa3   : > { %v484_v48 = vsel %vm483_vm9, %v481_v34, %v449_v59  ;;  %v485_v49 = vsel %vm483_vm9, %v482_v35, %v453_v32  ;;  %v7475_v44 = vmov 14  }
  0xa4   : > { %v395_v10 = vpop.permute.xlu1 %394  ;;  %v393_v11 = vpop.permute.xlu0 %392  ;;  %v458_v36 = vrot.slane %v390_v8, 3  ;;  %v459_v37 = vrot.slane %v391_v9, 3 }
  0xa5   : > { %v397_v18 = vsel %vm396_vm11, %v393_v11, %v395_v10  ;;  %v398_v19 = vsel %vm396_vm11, %v395_v10, %v393_v11 }
  0xa6   : > { %v403_v20 = vmul.f32 %v7472_v60, %v397_v18  ;;  %v404_v23 = vmul.f32 %v7471_v61, %v398_v19  ;;  %v487_v53 = vsel %vm486_vm10, %v484_v48, %v458_v36  ;;  %v488_v54 = vsel %vm486_vm10, %v485_v49, %v459_v37 }
  0xa7   : > { %v573_v19 = vsub.f32 %v5681_v33, %v572_v52 }
  0xa8   : > { %v408_v38 = vpop.permute.xlu1 %407  ;;  %v406_v39 = vpop.permute.xlu0 %405  ;;  %v464_v40 = vrot.slane %v403_v20, 2  ;;  %v465_v41 = vrot.slane %v404_v23, 2 }
  0xa9   : > { %v410_v42 = vsel %vm409_vm12, %v406_v39, %v408_v38  ;;  %v411_v45 = vsel %vm409_vm12, %v408_v38, %v406_v39  ;;  %v574_v39 = vand.u32 4294901760, %v573_v19  ;;  %v7487_v19 = vmov 8  }
  0xaa   : > { %v416_v43 = vmul.f32 %v7474_v24, %v410_v42  ;;  %v417_v46 = vmul.f32 %v7473_v27, %v411_v45  ;;  %v491_v63 = vsel %vm489_vm14, %v488_v54, %v465_v41  ;;  %v490_v5 = vsel %vm489_vm14, %v487_v53, %v464_v40 }
  0xac   : > { %v470_v55 = vrot.slane %v416_v43, 1  ;;  %v471_v56 = vrot.slane %v417_v46, 1  ;;  %v421_v57 = vpop.permute.xlu1 %420  ;;  %v419_v58 = vpop.permute.xlu0 %418 }
  0xad   : > { %v423_v59 = vsel %vm422_vm13, %v419_v58, %v421_v57  ;;  %v424_v62 = vsel %vm422_vm13, %v421_v57, %v419_v58 }
  0xae   : > { %v425_v6 = vmul.f32 %v423_v59, %v5699_v50  ;;  %v426_v8 = vmul.f32 %v424_v62, %v5704_v51  ;;  %v494_v9 = vsel %vm492_vm15, %v491_v63, %v471_v56  ;;  %v493_v10 = vsel %vm492_vm15, %v490_v5, %v470_v55 }
  0xaf   : > { %v501_v11 = vand.u32 4294901760, %v494_v9  ;;  %v503_v12 = vand.u32 4294901760, %v493_v10  ;;  %v5435_v63 = vmov 0  }
  0xb0   : > { %v495_v15 = vsel %vm474_vm4, %v425_v6, 0.0  ;;  %v496_v18 = vsel %vm474_vm4, %v426_v8, 0.0  ;;  %5298 = vset.pattern.permute.xlu0 %v5435_v63  ;;  %v5778_v6 = vld [vmem:[%s7460_s6] sm:$0xff]  ;;  %v5785_v8 = vld [vmem:[%s7460_s6 + $0x10] sm:$0xff] }
  0xb1   : > { %v505_v20 = vand.u32 4294901760, %v496_v18  ;;  %v582_v23 = vsub.f32 %v494_v9, %v501_v11  ;;  %v507_v28 = vand.u32 4294901760, %v495_v15  ;;  %v588_v29 = vsub.f32 %v493_v10, %v503_v12 }
  0xb2   : > { %v5436_v9 = vmov 2   ;;  %v5437_v10 = vmov 3  }
  0xb3   : > { %v4898_v32 = vpack.c.bf16 %v505_v20, %v501_v11  ;;  %v594_v34 = vsub.f32 %v496_v18, %v505_v20  ;;  %v4900_v35 = vpack.c.bf16 %v507_v28, %v503_v12  ;;  %v600_v36 = vsub.f32 %v495_v15, %v507_v28  ;;  %v5794_v11 = vld [vmem:[%s7460_s6 + $0x18] sm:$0xff] }
  0xb4   : > { %v583_v37 = vand.u32 4294901760, %v582_v23  ;;  %v589_v38 = vand.u32 4294901760, %v588_v29  ;;  %v5438_v12 = vmov 4   ;;  %v5439_v15 = vmov 5  }
  0xb5   : > { %4899 = vmatprep.subr.bf16.mxu0 %v4898_v32  ;;  %v595_v40 = vand.u32 4294901760, %v594_v34  ;;  %v601_v41 = vand.u32 4294901760, %v600_v36  ;;  %v4906_v57 = vpack.c.bf16 %v594_v34, %v582_v23  ;;  %v4908_v58 = vpack.c.bf16 %v600_v36, %v588_v29 }
  0xb6   : > { %4901 = vmatpush1.bf16.msra.mxu0 %v4900_v35  ;;  %v584_v42 = vsub.f32 %v582_v23, %v583_v37  ;;  %v590_v45 = vsub.f32 %v588_v29, %v589_v38  ;;  %v7489_v18 = vmov 7   ;;  %v7483_v20 = vmov 10  }
  0xb7   : > { %v596_v43 = vsub.f32 %v594_v34, %v595_v40  ;;  %v602_v46 = vsub.f32 %v600_v36, %v601_v41  ;;  %v4914_v59 = vpack.c.bf16 %v595_v40, %v583_v37  ;;  %v4916_v62 = vpack.c.bf16 %v601_v41, %v589_v38  ;;  %v280_v37 = vld [vmem:[%s7457_s3] sm:$0xff]  ;;  %v281_v38 = vld [vmem:[%s7457_s3 + $0x8] sm:$0xff] }
  0xb8   : > { %v585_v48 = vand.u32 4294901760, %v584_v42  ;;  %v591_v53 = vand.u32 4294901760, %v590_v45  ;;  %v5443_v23 = vmov 6   ;;  %v7479_v28 = vmov 11  }
  0xb9   : > { %575 = vmatmul.mubr.f32.vlgmr.msra.gmra.mrb[0].mxu0 %v574_v39  ;;  %v597_v49 = vand.u32 4294901760, %v596_v43  ;;  %v603_v54 = vand.u32 4294901760, %v602_v46  ;;  %v1058_v29 = vsub.s32 4, %v5547_v1  ;;  %v7477_v34 = vmov 13  }
  0xba   : > { %665 = vmatprep.mubr.f32.mxu0 %v7481_v7  ;;  %v1032_v39 = vsub.s32 2, %v5547_v1  ;;  %v1048_v41 = vsub.s32 3, %v5547_v1  ;;  %v5853_v45 = vrot.slane %v5590_v14, %v5550_v2 }
  0xbb   : > { %v4902_v55 = vpack.c.bf16 %v597_v49, %v585_v48  ;;  %v4904_v56 = vpack.c.bf16 %v603_v54, %v591_v53  ;;  %v5837_v36 = vrot.slane %v5585_v13, %v1058_v29  ;;  %v1132_v48 = vsel %vm1130_vm5, %v280_v37, 0 }
  0xbc   : > { %7561 = vst [vmem:[#allocation11_spill] sm:$0xff] %v5853_v45  ;;  %v1135_v49 = vsel %vm1130_vm5, %v281_v38, 0  ;;  %v5863_v53 = vrot.slane %v5585_v13, %v5550_v2 }
  0xbd   : > { %4903 = vmatprep.subr.bf16.mxu0 %v4902_v55  ;;  %7560 = vst [vmem:[#allocation10_spill] sm:$0xff] %v5837_v36  ;;  %v5869_v55 = vrot.slane %v5585_v13, %v5556_v3 }
  0xbe   : > { %4905 = vmatpush1.bf16.msra.mxu0 %v4904_v56  ;;  %7562 = vst [vmem:[#allocation12_spill] sm:$0xff] %v5863_v53  ;;  %v1074_v56 = vsub.s32 5, %v5547_v1 }
  0xbf   : > { %4907 = vmatprep.subr.bf16.mxu0 %v4906_v57  ;;  %7563 = vst [vmem:[#allocation13_spill] sm:$0xff] %v5869_v55  ;;  %v282_v57 = vld [vmem:[%s7457_s3 + $0x10] sm:$0xff] }
  0xc0   : > { %v1138_v37 = vsel %vm1130_vm5, %v282_v57, 0  ;;  %v1090_v57 = vsub.s32 6, %v5547_v1 }
  0xc1   : > { %667 = vmatmul.mubr.f32.vlgmr.msra.gmra.mrb[0].mxu0 %v5661_v4  ;;  %v5935_v26 = vand.u32 4294901760, %v1138_v37 }
  0xc2   : > { %4909 = vmatpush1.bf16.msra.mxu0 %v4908_v58  ;;  %745 = vmatprep.mubr.f32.mxu0 %v7481_v7  ;;  %v5955_v47 = vrot.slane %v5585_v13, %v1090_v57  ;;  %v5958_v1 = vrot.slane %v5590_v14, %v1090_v57 }
  0xc3   : > { %4911 = vmatprep.subr.bf16.mxu0 %v4898_v32 }
  0xc4   : > { %7571 = vst [vmem:[#allocation21_spill] sm:$0xff] %v5955_v47  ;;  %7572 = vst [vmem:[#allocation22_spill] sm:$0xff] %v5958_v1 }
  0xc9   : > { %748 = vmatmul.mubr.f32.vlgmr.msra.gmra.mrb[0].mxu0 %v5681_v33  ;;  %v5434_v33 = vmov 1  }
  0xca   : > { %4913 = vmatpush1.bf16.msra.mxu0 %v4900_v35  ;;  %822 = vmatprep.mubr.f32.mxu0 %v7481_v7 }
  0xcb   : > { %4915 = vmatprep.subr.bf16.mxu0 %v4914_v59  ;;  %5296 = vset.pattern.permute.xlu1 %v5434_v33  ;;  %v5879_v59 = vrot.slane %v5590_v14, %v5556_v3 }
  0xcd   : > { %7564 = vst [vmem:[#allocation14_spill] sm:$0xff] %v5879_v59 }
  0xd1   : > { %826 = vmatmul.mubr.f32.vlgmr.msra.gmra.mrb[0].mxu0 %v572_v52 }
  0xd2   : > { %4917 = vmatpush1.bf16.msra.mxu0 %v4916_v62  ;;  %908 = vmatprep.mubr.f32.mxu0 %v7481_v7  ;;  %v5882_v62 = vrot.slane %v5585_v13, %v1032_v39 }
  0xd3   : > { %4919 = vmatprep.subr.bf16.mxu0 %v4898_v32  ;;  %v5827_v32 = vrot.slane %v5590_v14, %v1058_v29 }
  0xd4   : > { %7565 = vst [vmem:[#allocation15_spill] sm:$0xff] %v5882_v62 }
  0xd5   : > { %7559 = vst [vmem:[#allocation9_spill] sm:$0xff] %v5827_v32 }
  0xd9   : > { %910 = vmatmul.mubr.f32.vlgmr.msra.gmra.mrb[0].mxu0 %v5661_v4 }
  0xda   : > { %4921 = vmatpush1.bf16.msra.mxu0 %v4900_v35  ;;  %984 = vmatprep.mubr.f32.mxu0 %v7481_v7 }
  0xe1   : > { %986 = vmatmul.mubr.f32.vlgmr.msra.gmra.mrb[0].mxu0 %v5661_v4  ;;  %v5771_v4 = vld [vmem:[%s7460_s6 + $0x8] sm:$0xff] }
  0xe2   : > { %3223 = vmatprep.mubr.f32.mxu0 %v7481_v7 }
 0x1b4   : > { %v5732_v5 = vpop.f32.mrb[0].mxu0 }
 0x1b5   : > { %992 = vrot.lane.b32.xlu0 %v5732_v5, %s5426_s20  ;;  %v5736_v52 = vpop.f32.mrb[1].mxu0  ;;  %v5857_v46 = vmul.f32 %v5837_v36, %v5732_v5 }
 0x1b6   : > { %994 = vrot.lane.b32.xlu1 %v5736_v52, %s5426_s20  ;;  %v5833_v35 = vmul.f32 %v5827_v32, %v5736_v52 }
 0x1b7   : > { %v7486_v29 = vand.u32 4294901760, %v5857_v46 }
 0x1b8   : > { %v7488_v42 = vand.u32 4294901760, %v5833_v35 }
 0x1b9   : > { %1008 = vrot.lane.b32.xlu0 %v5732_v5, %s5425_s19 }
 0x1ba   : > { %1010 = vrot.lane.b32.xlu1 %v5736_v52, %s5425_s19 }
 0x1bd   : > { %1024 = vrot.lane.b32.xlu0 %v5732_v5, %s5424_s18 }
 0x1be   : > { %1026 = vrot.lane.b32.xlu1 %v5736_v52, %s5424_s18 }
 0x1c1   : > { %1040 = vrot.lane.b32.xlu0 %v5732_v5, %s5427_s21 }
 0x1c2   : > { %1042 = vrot.lane.b32.xlu1 %v5736_v52, %s5427_s21 }
 0x1c5   : > { %1066 = vrot.lane.b32.xlu0 %v5732_v5, %s5428_s22 }
 0x1c6   : > { %1068 = vrot.lane.b32.xlu1 %v5736_v52, %s5428_s22 }
 0x1c9   : > { %1082 = vrot.lane.b32.xlu0 %v5732_v5, %s5429_s23 }
 0x1ca   : > { %1084 = vrot.lane.b32.xlu1 %v5736_v52, %s5429_s23 }
 0x1cd   : > { %1098 = vrot.lane.b32.xlu0 %v5732_v5, %s5430_s29 }
 0x1ce   : > { %1100 = vrot.lane.b32.xlu1 %v5736_v52, %s5430_s29 }
 0x1d1   : > { %1114 = vrot.lane.b32.xlu0 %v5732_v5, %s5432_s8  ;;  %v5888_v5 = vrot.slane %v5585_v13, %v1048_v41 }
 0x1d2   : > { %1116 = vrot.lane.b32.xlu1 %v5736_v52, %s5432_s8  ;;  %v5893_v52 = vsub.f32 %v5833_v35, %v7488_v42 }
 0x1d3   : > { %7567 = vst [vmem:[#allocation17_spill] sm:$0xff] %v5888_v5 }
 0x1d5   : > { %1996 = vperm.xlu0 %5298, %v5771_v4  }
 0x1d6   : > { %1970 = vperm.xlu1 %5296, %v5771_v4  }
 0x1d9   : > { %5299 = vset.pattern.permute.xlu0 %v5434_v33 }
 0x1da   : > { %5297 = vset.pattern.permute.xlu1 %v5435_v63  ;;  %1965 = vperm.xlu0 %5299, %v5778_v6  }
 0x1db   : > { %1992 = vperm.xlu1 %5297, %v5778_v6  }
 0x1de   : > { %1975 = vperm.xlu0 %5299, %v5785_v8  }
 0x1df   : > { %5300 = vset.pattern.permute.xlu1 %v5436_v9 }
 0x1e0   : > { %2032 = vperm.xlu1 %5300, %v5778_v6  }
 0x1e2   : > { %5303 = vset.pattern.permute.xlu0 %v5437_v10 }
 0x1e3   : > { %2084 = vperm.xlu0 %5303, %v5771_v4  }
 0x1e4   : > { %2036 = vperm.xlu1 %5300, %v5771_v4  }
 0x1e7   : > { %5305 = vset.pattern.permute.xlu0 %v5436_v9 }
 0x1e8   : > { %5301 = vset.pattern.permute.xlu1 %v5434_v33  ;;  %2040 = vperm.xlu0 %5305, %v5785_v8   ;;  %v5885_v33 = vrot.slane %v5590_v14, %v1032_v39 }
 0x1e9   : > { %1980 = vperm.xlu1 %5301, %v5794_v11  }
 0x1ea   : > { %7566 = vst [vmem:[#allocation16_spill] sm:$0xff] %v5885_v33 }
 0x1ec   : > { %5308 = vset.pattern.permute.xlu0 %v5438_v12 }
 0x1ed   : > { %5302 = vset.pattern.permute.xlu1 %v5437_v10  ;;  %2132 = vperm.xlu0 %5308, %v5771_v4  }
 0x1ee   : > { %2080 = vperm.xlu1 %5302, %v5778_v6  }
 0x1f1   : > { %2140 = vperm.xlu0 %5308, %v5794_v11  }
 0x1f2   : > { %5304 = vset.pattern.permute.xlu1 %v5435_v63 }
 0x1f3   : > { %2000 = vperm.xlu1 %5304, %v5785_v8  }
 0x1f5   : > { %5312 = vset.pattern.permute.xlu0 %v5439_v15 }
 0x1f6   : > { %2176 = vperm.xlu0 %5312, %v5778_v6  }
 0x1f7   : > { %2004 = vperm.xlu1 %5304, %v5794_v11  }
 0x1fa   : > { %2184 = vperm.xlu0 %5312, %v5785_v8  }
 0x1fb   : > { %5306 = vset.pattern.permute.xlu1 %v5436_v9  ;;  %v5895_v9 = vand.u32 4294901760, %v1132_v48 }
 0x1fc   : > { %2044 = vperm.xlu1 %5306, %v5794_v11  }
 0x1fd   : > { %v5929_v0 = vsub.f32 %v1132_v48, %v5895_v9 }
 0x1fe   : > { %5316 = vset.pattern.permute.xlu0 %v7489_v18 }
 0x1ff   : > { %2276 = vperm.xlu0 %5316, %v5771_v4   ;;  %v7490_v27 = vand.u32 4294901760, %v5929_v0 }
 0x200   : > { %5307 = vset.pattern.permute.xlu1 %v5438_v12 }
 0x201   : > { %2128 = vperm.xlu1 %5307, %v5778_v6  }
 0x203   : > { %2284 = vperm.xlu0 %5316, %v5794_v11  }
 0x205   : > { %5309 = vset.pattern.permute.xlu1 %v5437_v10  ;;  %v5897_v10 = vand.u32 4294901760, %v1135_v49 }
 0x206   : > { %2088 = vperm.xlu1 %5309, %v5785_v8  }
 0x207   : > { %5320 = vset.pattern.permute.xlu0 %v7487_v19 }
 0x208   : > { %2320 = vperm.xlu0 %5320, %v5778_v6  }
 0x20a   : > { %2092 = vperm.xlu1 %5309, %v5794_v11  }
 0x20c   : > { %2328 = vperm.xlu0 %5320, %v5785_v8  }
 0x20e   : > { %5310 = vset.pattern.permute.xlu1 %v5439_v15 }
 0x20f   : > { %2180 = vperm.xlu1 %5310, %v5771_v4  }
 0x210   : > { %5324 = vset.pattern.permute.xlu0 %v7483_v20 }
 0x211   : > { %2420 = vperm.xlu0 %5324, %v5771_v4  }
 0x213   : > { %5311 = vset.pattern.permute.xlu1 %v5438_v12 }
 0x214   : > { %2136 = vperm.xlu1 %5311, %v5785_v8  }
 0x215   : > { %2428 = vperm.xlu0 %5324, %v5794_v11  }
 0x218   : > { %5313 = vset.pattern.permute.xlu1 %v5443_v23 }
 0x219   : > { %2224 = vperm.xlu1 %5313, %v5778_v6   ;;  %5328 = vset.pattern.permute.xlu0 %v7479_v28 }
 0x21a   : > { %2456 = vperm.xlu0 %5328, %v5778_v6  }
 0x21d   : > { %2228 = vperm.xlu1 %5313, %v5771_v4  }
 0x21e   : > { %2464 = vperm.xlu0 %5328, %v5785_v8  }
 0x221   : > { %5314 = vset.pattern.permute.xlu1 %v5439_v15  ;;  %v5903_v15 = vrot.slane %v5590_v14, %v1048_v41 }
 0x222   : > { %2188 = vperm.xlu1 %5314, %v5794_v11   ;;  %5332 = vset.pattern.permute.xlu0 %v7477_v34  ;;  %v5975_v34 = vrot.slane %v5585_v13, %v1106_v22 }
 0x223   : > { %2556 = vperm.xlu0 %5332, %v5771_v4   ;;  %7568 = vst [vmem:[#allocation18_spill] sm:$0xff] %v5903_v15 }
 0x224   : > { %7573 = vst [vmem:[#allocation23_spill] sm:$0xff] %v5975_v34 }
 0x226   : > { %5315 = vset.pattern.permute.xlu1 %v7489_v18  ;;  %v6001_v18 = vrot.slane %v5699_v50, %v5550_v2 }
 0x227   : > { %v993_v40 = vpop.permute.xlu0 %992  ;;  %2272 = vperm.xlu1 %5315, %v5778_v6   ;;  %2564 = vperm.xlu0 %5332, %v5794_v11  }
 0x228   : > { %v995_v43 = vpop.permute.xlu1 %994  ;;  %7575 = vst [vmem:[#allocation25_spill] sm:$0xff] %v6001_v18 }
 0x229   : > { %v996_v54 = vsel %vm316_vm2, %v993_v40, %v995_v43  ;;  %v997_v58 = vsel %vm316_vm2, %v995_v43, %v993_v40  ;;  %v5916_v40 = vrot.slane %v5585_v13, %v1074_v56 }
 0x22a   : > { %v5900_v3 = vmul.f32 %v5853_v45, %v996_v54  ;;  %v5909_v38 = vmul.f32 %v5863_v53, %v997_v58  ;;  %v5925_v54 = vrot.slane %v5590_v14, %v1074_v56 }
 0x22b   : > { %v1009_v63 = vpop.permute.xlu0 %1008  ;;  %5317 = vset.pattern.permute.xlu1 %v5443_v23  ;;  %7569 = vst [vmem:[#allocation19_spill] sm:$0xff] %v5916_v40  ;;  %5336 = vset.pattern.permute.xlu0 %v7475_v44 }
 0x22c   : > { %v1011_v12 = vpop.permute.xlu1 %1010  ;;  %2232 = vperm.xlu1 %5317, %v5785_v8   ;;  %7570 = vst [vmem:[#allocation20_spill] sm:$0xff] %v5925_v54  ;;  %v1145_v21 = vand.u32 4294901760, %v5909_v38  ;;  %2600 = vperm.xlu0 %5336, %v5778_v6  }
 0x22d   : > { %v1012_v39 = vsel %vm325_vm0, %v1009_v63, %v1011_v12  ;;  %v1013_v23 = vsel %vm325_vm0, %v1011_v12, %v1009_v63  ;;  %v7485_v63 = vand.u32 4294901760, %v5893_v52  ;;  %v5933_v12 = vsub.f32 %v1135_v49, %v5897_v10 }
 0x22e   : > { %v5919_v41 = vmul.f32 %v5869_v55, %v1013_v23  ;;  %v5922_v43 = vmul.f32 %v5879_v59, %v1012_v39  ;;  %v1143_v39 = vand.u32 4294901760, %v5900_v3  ;;  %v5948_v49 = vsub.f32 %v5857_v46, %v7486_v29 }
 0x22f   : > { %v1025_v58 = vpop.permute.xlu0 %1024  ;;  %v7493_v24 = vand.u32 4294901760, %v5933_v12  ;;  %v5980_v28 = vsub.f32 %v5893_v52, %v7485_v63  ;;  %v6035_v53 = vsub.f32 %v5909_v38, %v1145_v21 }
 0x230   : > { %v1027_v23 = vpop.permute.xlu1 %1026  ;;  %v1147_v25 = vand.u32 4294901760, %v5922_v43  ;;  %v1149_v56 = vand.u32 4294901760, %v5919_v41  ;;  %2236 = vperm.xlu1 %5317, %v5794_v11   ;;  %2608 = vperm.xlu0 %5336, %v5785_v8  }
 0x231   : > { %v1028_v48 = vsel %vm340_vm1, %v1025_v58, %v1027_v23  ;;  %v1029_v31 = vsel %vm340_vm1, %v1027_v23, %v1025_v58  ;;  %v5966_v58 = vsub.f32 %v1138_v37, %v5935_v26  ;;  %v283_v23 = vld [vmem:[%s7457_s3 + $0x18] sm:$0xff] }
 0x232   : > { %v5952_v30 = vpack.c.bf16 %v1147_v25, %v1143_v39  ;;  %v5961_v60 = vpack.c.bf16 %v1149_v56, %v1145_v21  ;;  %v1039_v57 = vmul.f32 %v5885_v33, %v1028_v48  ;;  %v5984_v37 = vmul.f32 %v5882_v62, %v1029_v31 }
 0x233   : > { %v1041_v61 = vpop.permute.xlu0 %1040  ;;  %v1141_v31 = vsel %vm1130_vm5, %v283_v23, 0  ;;  %v6032_v45 = vsub.f32 %v5922_v43, %v1147_v25  ;;  %v6051_v21 = vrot.slane %v5704_v51, %v5550_v2  ;;  %v7578_v43 = vand.u32 4294901760, %v5833_v35 }
 0x234   : > { %4923 = vmatprep.subr.bf16.mxu1 %v5952_v30  ;;  %v1043_v44 = vpop.permute.xlu1 %1042  ;;  %5318 = vset.pattern.permute.xlu1 %v7487_v19  ;;  %v5996_v19 = vrot.slane %v5590_v14, %v1106_v22  ;;  %v6016_v22 = vsub.f32 %v5900_v3, %v1143_v39  ;;  %v1151_v50 = vand.u32 4294901760, %v1039_v57  ;;  %v6023_v14 = vand.u32 4294901760, %v1141_v31 }
 0x235   : > { %v1044_v7 = vsel %vm353_vm3, %v1041_v61, %v1043_v44  ;;  %v1045_v48 = vsel %vm353_vm3, %v1043_v44, %v1041_v61  ;;  %4925 = vmatpush1.bf16.msra.mxu1 %v5961_v60  ;;  %2324 = vperm.xlu1 %5318, %v5771_v4   ;;  %v6006_v44 = vsub.f32 %v5929_v0, %v7490_v27  ;;  %v7504_v2 = vmov 9  }
 0x236   : > { %v1054_v63 = vmul.f32 %v5888_v5, %v1045_v48  ;;  %v1055_v29 = vmul.f32 %v5903_v15, %v1044_v7  ;;  %7574 = vst [vmem:[#allocation24_spill] sm:$0xff] %v5996_v19  ;;  %v6011_v61 = vsub.f32 %v5933_v12, %v7493_v24  ;;  %v1153_v24 = vand.u32 4294901760, %v5984_v37  ;;  %7577 = vst [vmem:[#allocation26_spill] sm:$0xff] %v6051_v21 }
 0x237   : > { %v1067_v42 = vpop.permute.xlu0 %1066  ;;  %v7576_v7 = vmov 7   ;;  %v6067_v62 = vsub.f32 %v1141_v31, %v6023_v14  ;;  %v6070_v51 = vsub.f32 %v1039_v57, %v1151_v50  ;;  %vm2919_vm5 = vcmask 261120  }
 0x238   : > { %v1069_v23 = vpop.permute.xlu1 %1068  ;;  %v1155_v48 = vand.u32 4294901760, %v1055_v29  ;;  %v1157_v20 = vand.u32 4294901760, %v1054_v63  ;;  %v6095_v35 = vsub.f32 %v5984_v37, %v1153_v24 }
 0x239   : > { %v1070_v27 = vsel %vm383_vm8, %v1067_v42, %v1069_v23  ;;  %v1071_v16 = vsel %vm383_vm8, %v1069_v23, %v1067_v42  ;;  %5319 = vset.pattern.permute.xlu1 %v7576_v7  ;;  %v6038_v42 = vsub.f32 %v5919_v41, %v1149_v56 }
 0x23a   : > { %v1080_v13 = vmul.f32 %v5916_v40, %v1070_v27  ;;  %v1081_v3 = vmul.f32 %v5925_v54, %v1071_v16  ;;  %v6028_v39 = vpack.c.bf16 %v1155_v48, %v1151_v50  ;;  %2280 = vperm.xlu1 %5319, %v5785_v8   ;;  %v6040_v59 = vpack.c.bf16 %v1157_v20, %v1153_v24 }
 0x23b   : > { %v1083_v23 = vpop.permute.xlu0 %1082  ;;  %v6043_v27 = vsub.f32 %v1055_v29, %v1155_v48  ;;  %v7579_v48 = vand.u32 4294901760, %v5966_v58  ;;  %v6087_v38 = vsub.f32 %v1054_v63, %v1157_v20  ;;  %v7582_v63 = vand.u32 4294901760, %v6032_v45 }
 0x23c   : > { %4927 = vmatprep.subr.bf16.mxu1 %v6028_v39  ;;  %v1085_v16 = vpop.permute.xlu1 %1084  ;;  %v1163_v7 = vand.u32 4294901760, %v1081_v3  ;;  %v1165_v55 = vand.u32 4294901760, %v1080_v13 }
 0x23d   : > { %v1087_v25 = vsel %vm396_vm11, %v1085_v16, %v1083_v23  ;;  %4929 = vmatpush1.bf16.msra.mxu1 %v6040_v59  ;;  %v1086_v29 = vsel %vm396_vm11, %v1083_v23, %v1085_v16  ;;  %v6064_v33 = vsub.f32 %v5966_v58, %v7579_v48  ;;  %v7580_v23 = vand.u32 4294901760, %v5857_v46 }
 0x23e   : > { %v6059_v56 = vpack.c.bf16 %v1163_v7, %v7578_v43  ;;  %5321 = vset.pattern.permute.xlu1 %v7504_v2  ;;  %v1097_v48 = vmul.f32 %v5958_v1, %v1087_v25  ;;  %v7581_v2 = vand.u32 4294901760, %v6016_v22  ;;  %v6099_v46 = vsub.f32 %v1081_v3, %v1163_v7 }
 0x23f   : > { %v1099_v41 = vpop.permute.xlu0 %1098  ;;  %v6074_v16 = vpack.c.bf16 %v1165_v55, %v7580_v23  ;;  %2368 = vperm.xlu1 %5321, %v5778_v6   ;;  %v1096_v23 = vmul.f32 %v5955_v47, %v1086_v29  ;;  %v6101_v29 = vsub.f32 %v1080_v13, %v1165_v55  ;;  %v1285_v15 = vsub.f32 %v6032_v45, %v7582_v63 }
 0x240   : > { %v1101_v31 = vpop.permute.xlu1 %1100  ;;  %4931 = vmatprep.subr.bf16.mxu1 %v6059_v56  ;;  %v1273_v57 = vsub.f32 %v6016_v22, %v7581_v2  ;;  %v7584_v13 = vand.u32 4294901760, %v6043_v27  ;;  %v7585_v1 = vand.u32 4294901760, %v6035_v53 }
 0x241   : > { %v1102_v43 = vsel %vm409_vm12, %v1099_v41, %v1101_v31  ;;  %v1103_v25 = vsel %vm409_vm12, %v1101_v31, %v1099_v41  ;;  %4933 = vmatpush1.bf16.msra.mxu1 %v6074_v16  ;;  %v7583_v41 = vand.u32 4294901760, %v6038_v42  ;;  %v1169_v5 = vand.u32 4294901760, %v1096_v23 }
 0x242   : > { %v1112_v2 = vmul.f32 %v5975_v34, %v1102_v43  ;;  %v1113_v50 = vmul.f32 %v5996_v19, %v1103_v25  ;;  %v1167_v43 = vand.u32 4294901760, %v1097_v48  ;;  %v1309_v55 = vsub.f32 %v6043_v27, %v7584_v13 }
 0x243   : > { %v1115_v20 = vpop.permute.xlu0 %1114  ;;  %v1291_v31 = vsub.f32 %v6038_v42, %v7583_v41  ;;  %2372 = vperm.xlu1 %5321, %v5771_v4   ;;  %v1279_v47 = vsub.f32 %v6035_v53, %v7585_v1 }
 0x244   : > { %v1117_v37 = vpop.permute.xlu1 %1116  ;;  %v1171_v25 = vand.u32 4294901760, %v1113_v50  ;;  %v1173_v3 = vand.u32 4294901760, %v1112_v2 }
 0x245   : > { %v1118_v7 = vsel %vm422_vm13, %v1115_v20, %v1117_v37  ;;  %v1119_v63 = vsel %vm422_vm13, %v1117_v37, %v1115_v20  ;;  %v7586_v37 = vmov 8   ;;  %v1292_v20 = vand.u32 4294901760, %v1291_v31 }
 0x246   : > { %v1129_v24 = vmul.f32 %v6051_v21, %v1119_v63  ;;  %v6120_v32 = vpack.c.bf16 %v1171_v25, %v1167_v43  ;;  %v6122_v36 = vsub.f32 %v1113_v50, %v1171_v25  ;;  %v1128_v40 = vmul.f32 %v6001_v18, %v1118_v7 }
 0x247   : > { %v6126_v13 = vpack.c.bf16 %v1173_v3, %v1169_v5  ;;  %5322 = vset.pattern.permute.xlu1 %v7586_v37  ;;  %v6136_v50 = vsub.f32 %v1097_v48, %v1167_v43  ;;  %v1286_v25 = vand.u32 4294901760, %v1285_v15  ;;  %v7587_v63 = vand.u32 4294901760, %v6070_v51 }
 0x248   : > { %v6133_v41 = vand.u32 4294901760, %v1129_v24  ;;  %4935 = vmatprep.subr.bf16.mxu1 %v6120_v32  ;;  %2332 = vperm.xlu1 %5322, %v5794_v11   ;;  %v6143_v1 = vsub.f32 %v1112_v2, %v1173_v3  ;;  %v7588_v37 = vand.u32 4294901760, %v6087_v38  ;;  %v1274_v15 = vand.u32 4294901760, %v1273_v57 }
 0x249   : > { %v1297_v7 = vsub.f32 %v6070_v51, %v7587_v63  ;;  %4937 = vmatpush1.bf16.msra.mxu1 %v6126_v13  ;;  %v1310_v48 = vand.u32 4294901760, %v1309_v55  ;;  %v7589_v43 = vand.u32 4294901760, %v6099_v46  ;;  %v6154_v19 = vand.u32 4294901760, %v1128_v40 }
 0x24a   : > { %v1315_v54 = vsub.f32 %v6087_v38, %v7588_v37  ;;  %1176 = vmatprep.subr.mxu1 %v6133_v41  ;;  %v6156_v2 = vsub.f32 %v1096_v23, %v1169_v5  ;;  %v1280_v31 = vand.u32 4294901760, %v1279_v47  ;;  %v7590_v3 = vand.u32 4294901760, %v6095_v35 }
 0x24b   : > { %v1333_v63 = vsub.f32 %v6099_v46, %v7589_v43  ;;  %v4938_v21 = vpack.c.bf16 %v1286_v25, %v1274_v15  ;;  %v1298_v34 = vand.u32 4294901760, %v1297_v7  ;;  %v7519_v57 = vand.u32 4294901760, %v6136_v50 }
 0x24c   : > { %v1303_v37 = vsub.f32 %v6095_v35, %v7590_v3  ;;  %5323 = vset.pattern.permute.xlu1 %v7591_v17  ;;  %v4940_v43 = vpack.c.bf16 %v1292_v20, %v1280_v31  ;;  %v1316_v18 = vand.u32 4294901760, %v1315_v54  ;;  %v7592_v5 = vand.u32 4294901760, %v6101_v29 }
 0x24d   : > { %1178 = vmatpush1.msra.mxu1 %v6154_v19  ;;  %2416 = vperm.xlu1 %5323, %v5778_v6   ;;  %v6171_v25 = vsub.f32 %v1129_v24, %v6133_v41  ;;  %v7593_v7 = vand.u32 4294901760, %v6006_v44  ;;  %v4942_v15 = vpack.c.bf16 %v1310_v48, %v1298_v34  ;;  %v1334_v3 = vand.u32 4294901760, %v1333_v63 }
 0x24e   : > { %v1339_v47 = vsub.f32 %v6101_v29, %v7592_v5  ;;  %4939 = vmatprep.subr.bf16.mxu1 %v4938_v21  ;;  %v7594_v20 = vand.u32 4294901760, %v6122_v36  ;;  %v1304_v31 = vand.u32 4294901760, %v1303_v37  ;;  %v7595_v5 = vmov 0.0  }
 0x24f   : > { %1231 = vmatmul.mubr.f32.vlgmr.msra.gmra.mrb[0].mxu1 %v7593_v7  ;;  %v7596_v55 = vand.u32 4294901760, %v5948_v49  ;;  %v1350_v24 = vand.u32 4294901760, %v6156_v2  ;;  %v1322_v44 = vand.u32 4294901760, %v5980_v28  ;;  %v1345_v34 = vsub.f32 %v6136_v50, %v7519_v57 }
 0x250   : > { %v1357_v54 = vsub.f32 %v6122_v36, %v7594_v20  ;;  %4941 = vmatpush1.bf16.msra.mxu1 %v4940_v43  ;;  %1236 = vmatprep.mubr.f32.mxu1 %v7595_v5  ;;  %v1252_v21 = vand.u32 4294901760, %v6064_v33  ;;  %v7520_v48 = vmov 16   ;;  %v6190_v63 = vsub.f32 %v1128_v40, %v6154_v19 }
 0x251   : > { %v1327_v23 = vsub.f32 %v5948_v49, %v7596_v55  ;;  %4943 = vmatprep.subr.bf16.mxu1 %v4942_v15  ;;  %5340 = vset.pattern.permute.xlu0 %v7520_v48  ;;  %v4944_v37 = vpack.c.bf16 %v1316_v18, %v1304_v31  ;;  %v1340_v43 = vand.u32 4294901760, %v1339_v47  ;;  %v7597_v55 = vand.u32 4294901760, %v6143_v1 }
 0x252   : > { %v7598_v15 = vmov 9   ;;  %v4946_v28 = vpack.c.bf16 %v1334_v3, %v1322_v44  ;;  %v7599_v20 = vand.u32 4294901760, %v6011_v61  ;;  %v1358_v57 = vand.u32 4294901760, %v1357_v54  ;;  %2700 = vperm.xlu0 %5340, %v5771_v4  }
 0x253   : > { %v1363_v7 = vsub.f32 %v6143_v1, %v7597_v55  ;;  %5325 = vset.pattern.permute.xlu1 %v7598_v15  ;;  %v1368_v33 = vand.u32 4294901760, %v6171_v25  ;;  %v7600_v48 = vand.u32 4294901760, %v6067_v62  ;;  %v1328_v18 = vand.u32 4294901760, %v1327_v23 }
 0x254   : > { %1242 = vmatmul.mubr.f32.gmra.mrb[2].mxu1 %v7599_v20  ;;  %2376 = vperm.xlu1 %5325, %v5785_v8   ;;  %v1351_v47 = vsub.f32 %v6156_v2, %v1350_v24  ;;  %v1346_v61 = vand.u32 4294901760, %v1345_v34  ;;  %v1374_v31 = vand.u32 4294901760, %v6190_v63  ;;  %v4954_v15 = vpack.c.bf16 %v6032_v45, %v6016_v22 }
 0x255   : > { %v1262_v40 = vsub.f32 %v6067_v62, %v7600_v48  ;;  %4945 = vmatpush1.bf16.msra.mxu1 %v4944_v37  ;;  %1247 = vmatprep.mubr.f32.mxu1 %v7595_v5  ;;  %v4948_v3 = vpack.c.bf16 %v1340_v43, %v1328_v18  ;;  %v1364_v54 = vand.u32 4294901760, %v1363_v7  ;;  %v1369_v23 = vsub.f32 %v6171_v25, %v1368_v33 }
 0x256   : > { %4947 = vmatprep.subr.bf16.mxu1 %v4946_v28  ;;  %v4950_v44 = vpack.c.bf16 %v1358_v57, %v1346_v61  ;;  %v1352_v37 = vand.u32 4294901760, %v1351_v47  ;;  %2708 = vperm.xlu0 %5340, %v5794_v11   ;;  %v1375_v57 = vsub.f32 %v6190_v63, %v1374_v31  ;;  %v7601_v43 = vmov 11  }
 0x257   : > { %v1263_v48 = vand.u32 4294901760, %v1262_v40  ;;  %v5449_v7 = vmov 17   ;;  %v4956_v28 = vpack.c.bf16 %v6038_v42, %v6035_v53  ;;  %v4958_v20 = vpack.c.bf16 %v6043_v27, %v6070_v51 }
 0x258   : > { %1253 = vmatmul.mubr.f32.gmra.mrb[4].mxu1 %v1252_v21  ;;  %2380 = vperm.xlu1 %5325, %v5794_v11   ;;  %v4952_v34 = vpack.c.bf16 %v1364_v54, %v1352_v37  ;;  %v1370_v21 = vand.u32 4294901760, %v1369_v23  ;;  %v1376_v55 = vand.u32 4294901760, %v1375_v57  ;;  %v4960_v40 = vpack.c.bf16 %v6087_v38, %v6095_v35 }
 0x259   : > { %4949 = vmatpush1.bf16.msra.mxu1 %v4948_v3  ;;  %1258 = vmatprep.mubr.f32.mxu1 %v7595_v5  ;;  %v4962_v18 = vpack.c.bf16 %v6099_v46, %v5893_v52  ;;  %v4964_v47 = vpack.c.bf16 %v6101_v29, %v5948_v49  ;;  %v5451_v61 = vmov 20   ;;  %v4966_v3 = vpack.c.bf16 %v6122_v36, %v6136_v50 }
 0x25a   : > { %4951 = vmatprep.subr.bf16.mxu1 %v4950_v44  ;;  %5344 = vset.pattern.permute.xlu0 %v5449_v7  ;;  %v4968_v54 = vpack.c.bf16 %v6143_v1, %v6156_v2  ;;  %v5452_v44 = vmov 19   ;;  %v7602_v23 = vmov 13   ;;  %v7603_v37 = vand.u32 4294901760, %v6016_v22 }
 0x25b   : > { %2744 = vperm.xlu0 %5344, %v5778_v6   ;;  %v7609_v22 = vand.u32 4294901760, %v6043_v27  ;;  %v7615_v27 = vand.u32 4294901760, %v5933_v12 }
 0x25c   : > { %1264 = vmatmul.mubr.f32.gmra.mrb[6].mxu1 %v1263_v48  ;;  %5326 = vset.pattern.permute.xlu1 %v7601_v43  ;;  %v6278_v48 = vpop.permute.xlu1 %1970 }
 0x25d   : > { %4953 = vmatpush1.bf16.msra.mxu1 %v4952_v34  ;;  %1424 = vmatprep.mubr.f32.mxu1 %v7595_v5  ;;  %v7604_v34 = vand.u32 4294901760, %v6032_v45  ;;  %v7610_v45 = vmov 14  }
 0x25e   : > { %1371 = vmatprep.subr.mxu1 %v1370_v21  ;;  %2460 = vperm.xlu1 %5326, %v5771_v4  }
 0x25f   : > { %2752 = vperm.xlu0 %5344, %v5785_v8   ;;  %v4986_v57 = vpack.c.bf16 %v7604_v34, %v7603_v37 }
 0x260   : > { %v6289_v21 = vpop.permute.xlu1 %1992 }
 0x261   : > { %1377 = vmatpush1.msra.mxu1 %v1376_v55  ;;  %v7606_v55 = vand.u32 4294901760, %v6038_v42  ;;  %v7612_v42 = vand.u32 4294901760, %v6087_v38  ;;  %v7617_v38 = vand.u32 4294901760, %v6101_v29  ;;  %v7621_v29 = vand.u32 4294901760, %v6143_v1 }
 0x262   : > { %4955 = vmatprep.subr.bf16.mxu1 %v4954_v15  ;;  %1426 = vmatmul.mubr.f32.vlgmr.msra.gmra.mrb[0].mxu1 %v5895_v9 }
 0x263   : > { %4957 = vmatpush1.bf16.msra.mxu1 %v4956_v28  ;;  %1431 = vmatprep.mubr.f32.mxu1 %v7595_v5  ;;  %v7607_v28 = vand.u32 4294901760, %v5929_v0 }
 0x264   : > { %4959 = vmatprep.subr.bf16.mxu1 %v4958_v20  ;;  %5327 = vset.pattern.permute.xlu1 %v7591_v17  ;;  %v5450_v17 = vmov 12   ;;  %v7608_v20 = vand.u32 4294901760, %v6070_v51  ;;  %v7614_v51 = vand.u32 4294901760, %v6099_v46  ;;  %v7619_v46 = vand.u32 4294901760, %v6122_v36 }
 0x265   : > { %2424 = vperm.xlu1 %5327, %v5785_v8   ;;  %5349 = vset.pattern.permute.xlu0 %v5451_v61  ;;  %v5453_v36 = vmov 15  }
 0x266   : > { %1433 = vmatmul.mubr.f32.gmra.mrb[2].mxu1 %v5897_v10  ;;  %2888 = vperm.xlu0 %5349, %v5778_v6  }
 0x267   : > { %4961 = vmatpush1.bf16.msra.mxu1 %v4960_v40  ;;  %1438 = vmatprep.mubr.f32.mxu1 %v7595_v5  ;;  %v4990_v40 = vpack.c.bf16 %v7609_v22, %v7608_v20 }
 0x268   : > { %4963 = vmatprep.subr.bf16.mxu1 %v4962_v18 }
 0x269   : > { %5329 = vset.pattern.permute.xlu1 %v5450_v17 }
 0x26a   : > { %1440 = vmatmul.mubr.f32.gmra.mrb[4].mxu1 %v5935_v26  ;;  %2504 = vperm.xlu1 %5329, %v5778_v6  }
 0x26b   : > { %4965 = vmatpush1.bf16.msra.mxu1 %v4964_v47  ;;  %1445 = vmatprep.mubr.f32.mxu1 %v7595_v5 }
 0x26c   : > { %4967 = vmatprep.subr.bf16.mxu1 %v4966_v3  ;;  %5350 = vset.pattern.permute.xlu0 %v5452_v44 }
 0x26d   : > { %2844 = vperm.xlu0 %5350, %v5771_v4  }
 0x26e   : > { %1447 = vmatmul.mubr.f32.gmra.mrb[6].mxu1 %v6023_v14  ;;  %2508 = vperm.xlu1 %5329, %v5771_v4  }
 0x26f   : > { %4969 = vmatpush1.bf16.msra.mxu1 %v4968_v54  ;;  %1553 = vmatprep.mubr.f32.mxu1 %v7595_v5 }
 0x270   : > { %1503 = vmatprep.subr.mxu1 %v6171_v25 }
 0x271   : > { %2852 = vperm.xlu0 %5350, %v5794_v11  }
 0x272   : > { %5330 = vset.pattern.permute.xlu1 %v7601_v43  ;;  %v7605_v43 = vand.u32 4294901760, %v6035_v53  ;;  %v7611_v53 = vand.u32 4294901760, %v6095_v35  ;;  %v7616_v35 = vand.u32 4294901760, %v5948_v49 }
 0x273   : > { %1506 = vmatpush1.msra.mxu1 %v6190_v63  ;;  %2468 = vperm.xlu1 %5330, %v5794_v11   ;;  %v6437_v63 = vpop.permute.xlu0 %1996 }
 0x274   : > { %4971 = vmatprep.subr.bf16.mxu1 %v5952_v30  ;;  %1556 = vmatmul.mubr.f32.vlgmr.msra.gmra.mrb[0].mxu1 %v5929_v0  ;;  %v4988_v15 = vpack.c.bf16 %v7606_v55, %v7605_v43  ;;  %v4992_v18 = vpack.c.bf16 %v7612_v42, %v7611_v53  ;;  %v7613_v0 = vand.u32 4294901760, %v5893_v52  ;;  %v4996_v3 = vpack.c.bf16 %v7617_v38, %v7616_v35 }
 0x275   : > { %4973 = vmatpush1.bf16.msra.mxu1 %v5961_v60  ;;  %1561 = vmatprep.mubr.f32.mxu1 %v7595_v5  ;;  %v7618_v52 = vand.u32 4294901760, %v6136_v50  ;;  %v7622_v50 = vand.u32 4294901760, %v6067_v62 }
 0x276   : > { %4975 = vmatprep.subr.bf16.mxu1 %v6028_v39  ;;  %5354 = vset.pattern.permute.xlu0 %v5451_v61  ;;  %v4994_v47 = vpack.c.bf16 %v7614_v51, %v7613_v0 }
 0x277   : > { %5331 = vset.pattern.permute.xlu1 %v7602_v23  ;;  %v4998_v54 = vpack.c.bf16 %v7619_v46, %v7618_v52 }
 0x278   : > { %1564 = vmatmul.mubr.f32.gmra.mrb[2].mxu1 %v5933_v12  ;;  %2552 = vperm.xlu1 %5331, %v5778_v6   ;;  %v7620_v12 = vand.u32 4294901760, %v5966_v58 }
 0x279   : > { %4977 = vmatpush1.bf16.msra.mxu1 %v6040_v59  ;;  %1569 = vmatprep.mubr.f32.mxu1 %v7595_v5 }
 0x27a   : > { %4979 = vmatprep.subr.bf16.mxu1 %v6059_v56 }
 0x27c   : > { %1572 = vmatmul.mubr.f32.gmra.mrb[4].mxu1 %v5966_v58  ;;  %5333 = vset.pattern.permute.xlu1 %v5450_v17  ;;  %v6315_v17 = vpop.permute.xlu1 %2032 }
 0x27d   : > { %4981 = vmatpush1.bf16.msra.mxu1 %v6074_v16  ;;  %1577 = vmatprep.mubr.f32.mxu1 %v7595_v5 }
 0x27e   : > { %4983 = vmatprep.subr.bf16.mxu1 %v6120_v32  ;;  %2512 = vperm.xlu1 %5333, %v5785_v8  }
 0x280   : > { %1580 = vmatmul.mubr.f32.gmra.mrb[6].mxu1 %v6067_v62  ;;  %v6331_v49 = vpop.permute.xlu1 %2036 }
 0x281   : > { %4985 = vmatpush1.bf16.msra.mxu1 %v6126_v13  ;;  %1668 = vmatprep.mubr.f32.mxu1 %v7595_v5 }
 0x282   : > { %1619 = vmatprep.subr.mxu1 %v6133_v41  ;;  %2516 = vperm.xlu1 %5333, %v5794_v11  }
 0x284   : > { %v6343_v58 = vpop.permute.xlu1 %1980 }
 0x285   : > { %1621 = vmatpush1.msra.mxu1 %v6154_v19  ;;  %7623 = vst [vmem:[#allocation27_spill] sm:$0xff] %v6343_v58 }
 0x286   : > { %4987 = vmatprep.subr.bf16.mxu1 %v4986_v57  ;;  %1672 = vmatmul.mubr.f32.vlgmr.msra.gmra.mrb[0].mxu1 %v7607_v28 }
 0x287   : > { %4989 = vmatpush1.bf16.msra.mxu1 %v4988_v15  ;;  %1677 = vmatprep.mubr.f32.mxu1 %v7595_v5 }
 0x288   : > { %4991 = vmatprep.subr.bf16.mxu1 %v4990_v40  ;;  %5334 = vset.pattern.permute.xlu1 %v7610_v45  ;;  %v6353_v62 = vpop.permute.xlu1 %2080 }
 0x289   : > { %2604 = vperm.xlu1 %5334, %v5771_v4  }
 0x28a   : > { %1681 = vmatmul.mubr.f32.gmra.mrb[2].mxu1 %v7615_v27 }
 0x28b   : > { %4993 = vmatpush1.bf16.msra.mxu1 %v4992_v18  ;;  %1686 = vmatprep.mubr.f32.mxu1 %v7595_v5 }
 0x28c   : > { %4995 = vmatprep.subr.bf16.mxu1 %v4994_v47 }
 0x28d   : > { %5335 = vset.pattern.permute.xlu1 %v7602_v23  ;;  %v5000_v23 = vpack.c.bf16 %v7621_v29, %v1350_v24 }
 0x28e   : > { %1690 = vmatmul.mubr.f32.gmra.mrb[4].mxu1 %v7620_v12  ;;  %2560 = vperm.xlu1 %5335, %v5785_v8  }
 0x28f   : > { %4997 = vmatpush1.bf16.msra.mxu1 %v4996_v3  ;;  %1695 = vmatprep.mubr.f32.mxu1 %v7595_v5 }
 0x290   : > { %4999 = vmatprep.subr.bf16.mxu1 %v4998_v54 }
 0x292   : > { %1699 = vmatmul.mubr.f32.gmra.mrb[6].mxu1 %v7622_v50  ;;  %5337 = vset.pattern.permute.xlu1 %v5453_v36 }
 0x293   : > { %5001 = vmatpush1.bf16.msra.mxu1 %v5000_v23  ;;  %1823 = vmatprep.mubr.f32.mxu1 %v7595_v5 }
 0x294   : > { %1772 = vmatprep.subr.mxu1 %v1368_v33  ;;  %2648 = vperm.xlu1 %5337, %v5778_v6  }
 0x297   : > { %1776 = vmatpush1.msra.mxu1 %v1374_v31  ;;  %v1966_v31 = vpop.permute.xlu0 %1965 }
 0x298   : > { %5003 = vmatprep.subr.bf16.mxu1 %v5952_v30  ;;  %1825 = vmatmul.mubr.f32.vlgmr.msra.gmra.mrb[0].mxu1 %v5895_v9  ;;  %v6362_v30 = vpop.permute.xlu1 %2000 }
 0x299   : > { %5005 = vmatpush1.bf16.msra.mxu1 %v5961_v60  ;;  %1830 = vmatprep.mubr.f32.mxu1 %v7595_v5  ;;  %v7624_v60 = vmov 16  }
 0x29a   : > { %5007 = vmatprep.subr.bf16.mxu1 %v6028_v39  ;;  %2652 = vperm.xlu1 %5337, %v5771_v4  }
 0x29c   : > { %1832 = vmatmul.mubr.f32.gmra.mrb[2].mxu1 %v5897_v10 }
 0x29d   : > { %5009 = vmatpush1.bf16.msra.mxu1 %v6040_v59  ;;  %1837 = vmatprep.mubr.f32.mxu1 %v7595_v5  ;;  %v6373_v59 = vpop.permute.xlu1 %2004 }
 0x29e   : > { %5011 = vmatprep.subr.bf16.mxu1 %v6059_v56  ;;  %5338 = vset.pattern.permute.xlu1 %v7610_v45  ;;  %7625 = vst [vmem:[#allocation28_spill] sm:$0xff] %v6373_v59 }
 0x29f   : > { %2612 = vperm.xlu1 %5338, %v5794_v11  }
 0x2a0   : > { %1839 = vmatmul.mubr.f32.gmra.mrb[4].mxu1 %v5935_v26 }
 0x2a1   : > { %5013 = vmatpush1.bf16.msra.mxu1 %v6074_v16  ;;  %1844 = vmatprep.mubr.f32.mxu1 %v7595_v5 }
 0x2a2   : > { %5015 = vmatprep.subr.bf16.mxu1 %v6120_v32  ;;  %v6378_v32 = vpop.permute.xlu1 %2044 }
 0x2a3   : > { %5339 = vset.pattern.permute.xlu1 %v7624_v60  ;;  %7626 = vst [vmem:[#allocation29_spill] sm:$0xff] %v6378_v32 }
 0x2a4   : > { %1846 = vmatmul.mubr.f32.gmra.mrb[6].mxu1 %v6023_v14  ;;  %2696 = vperm.xlu1 %5339, %v5778_v6  }
 0x2a5   : > { %5017 = vmatpush1.bf16.msra.mxu1 %v6126_v13  ;;  %1934 = vmatprep.mubr.f32.mxu1 %v7595_v5 }
 0x2a6   : > { %1885 = vmatprep.subr.mxu1 %v6133_v41  ;;  %v6384_v39 = vpop.permute.xlu1 %2128 }
 0x2a8   : > { %5341 = vset.pattern.permute.xlu1 %v5453_v36 }
 0x2a9   : > { %1887 = vmatpush1.msra.mxu1 %v6154_v19  ;;  %2656 = vperm.xlu1 %5341, %v5785_v8  }
 0x2aa   : > { %1936 = vmatmul.mubr.f32.vlgmr.msra.gmra.mrb[0].mxu1 %v5895_v9  ;;  %v6391_v19 = vpop.permute.xlu1 %2088  ;;  %v5454_v9 = vmov 18  }
 0x2ab   : > { %1941 = vmatprep.mubr.f32.mxu1 %v7595_v5 }
 0x2ad   : > { %2660 = vperm.xlu1 %5341, %v5794_v11  }
 0x2ae   : > { %1943 = vmatmul.mubr.f32.gmra.mrb[2].mxu1 %v5897_v10  ;;  %v6396_v10 = vpop.permute.xlu1 %2092 }
 0x2af   : > { %1948 = vmatprep.mubr.f32.mxu1 %v7595_v5  ;;  %7627 = vst [vmem:[#allocation30_spill] sm:$0xff] %v6396_v10 }
 0x2b1   : > { %5342 = vset.pattern.permute.xlu1 %v5449_v7 }
 0x2b2   : > { %1950 = vmatmul.mubr.f32.gmra.mrb[4].mxu1 %v5935_v26  ;;  %2748 = vperm.xlu1 %5342, %v5771_v4   ;;  %v6400_v26 = vpop.permute.xlu1 %2180 }
 0x2b3   : > { %1955 = vmatprep.mubr.f32.mxu1 %v7595_v5 }
 0x2b6   : > { %1957 = vmatmul.mubr.f32.gmra.mrb[6].mxu1 %v6023_v14  ;;  %5343 = vset.pattern.permute.xlu1 %v7624_v60  ;;  %v6404_v14 = vpop.permute.xlu1 %2136 }
 0x2b7   : > { %2704 = vperm.xlu1 %5343, %v5785_v8   ;;  %3019 = vmatprep.mubr.f32.mxu1 %v7595_v5  ;;  %7628 = vst [vmem:[#allocation31_spill] sm:$0xff] %v6404_v14 }
 0x2ba   : > { %v6408_v56 = vpop.permute.xlu1 %2224 }
 0x2bb   : > { %5345 = vset.pattern.permute.xlu1 %v5454_v9 }
 0x2bc   : > { %2792 = vperm.xlu1 %5345, %v5778_v6  }
 0x2be   : > { %v6412_v16 = vpop.permute.xlu1 %2228 }
 0x2c0   : > { %2796 = vperm.xlu1 %5345, %v5771_v4  }
 0x2c2   : > { %v6416_v41 = vpop.permute.xlu1 %2188 }
 0x2c3   : > { %7629 = vst [vmem:[#allocation32_spill] sm:$0xff] %v6416_v41 }
 0x2c4   : > { %5346 = vset.pattern.permute.xlu1 %v5449_v7  ;;  %v6443_v7 = vpop.permute.xlu0 %1975 }
 0x2c5   : > { %2756 = vperm.xlu1 %5346, %v5794_v11  }
 0x2c9   : > { %5347 = vset.pattern.permute.xlu1 %v5452_v44 }
 0x2ca   : > { %2840 = vperm.xlu1 %5347, %v5778_v6   ;;  %v6420_v6 = vpop.permute.xlu1 %2272 }
 0x2ce   : > { %5348 = vset.pattern.permute.xlu1 %v5454_v9  ;;  %v6424_v13 = vpop.permute.xlu1 %2232 }
 0x2cf   : > { %2800 = vperm.xlu1 %5348, %v5785_v8   ;;  %7630 = vst [vmem:[#allocation33_spill] sm:$0xff] %v6424_v13 }
 0x2d2   : > { %v6427_v1 = vpop.permute.xlu1 %2236 }
 0x2d3   : > { %2804 = vperm.xlu1 %5348, %v5794_v11   ;;  %7631 = vst [vmem:[#allocation34_spill] sm:$0xff] %v6427_v1 }
 0x2d6   : > { %v6429_v2 = vpop.permute.xlu1 %2324 }
 0x2d7   : > { %5351 = vset.pattern.permute.xlu1 %v5451_v61 }
 0x2d8   : > { %2892 = vperm.xlu1 %5351, %v5771_v4  }
 0x2da   : > { %v6431_v4 = vpop.permute.xlu1 %2280 }
 0x2db   : > { %7632 = vst [vmem:[#allocation35_spill] sm:$0xff] %v6431_v4 }
 0x2dc   : > { %5352 = vset.pattern.permute.xlu1 %v5452_v44 }
 0x2dd   : > { %2848 = vperm.xlu1 %5352, %v5785_v8  }
 0x2de   : > { %v6433_v25 = vpop.permute.xlu1 %2368 }
 0x2e1   : > { %5353 = vset.pattern.permute.xlu1 %v5451_v61  ;;  %v6447_v61 = vpop.permute.xlu0 %2084 }
 0x2e2   : > { %2896 = vperm.xlu1 %5353, %v5785_v8   ;;  %v6435_v24 = vpop.permute.xlu1 %2372 }
 0x2e5   : > { %v6451_v37 = vpop.permute.xlu0 %2040 }
 0x2e6   : > { %2900 = vperm.xlu1 %5353, %v5794_v11   ;;  %v6439_v33 = vpop.permute.xlu1 %2332 }
 0x2e7   : > { %7633 = vst [vmem:[#allocation36_spill] sm:$0xff] %v6439_v33 }
 0x2e9   : > { %v6455_v57 = vpop.permute.xlu0 %2132 }
 0x2ea   : > { %v6441_v8 = vpop.permute.xlu1 %2416 }
 0x2ed   : > { %v6459_v55 = vpop.permute.xlu0 %2140 }
 0x2ee   : > { %v6445_v11 = vpop.permute.xlu1 %2376  ;;  %7637 = vst [vmem:[#allocation40_spill] sm:$0xff] %v6459_v55 }
 0x2ef   : > { %7634 = vst [vmem:[#allocation37_spill] sm:$0xff] %v6445_v11 }
 0x2f1   : > { %v6463_v28 = vpop.permute.xlu0 %2176 }
 0x2f2   : > { %v6449_v44 = vpop.permute.xlu1 %2380 }
 0x2f3   : > { %7635 = vst [vmem:[#allocation38_spill] sm:$0xff] %v6449_v44 }
 0x2f5   : > { %v6467_v22 = vpop.permute.xlu0 %2184 }
 0x2f6   : > { %v6453_v34 = vpop.permute.xlu1 %2460  ;;  %7638 = vst [vmem:[#allocation41_spill] sm:$0xff] %v6467_v22 }
 0x2f9   : > { %v6471_v45 = vpop.permute.xlu0 %2276 }
 0x2fa   : > { %v6457_v43 = vpop.permute.xlu1 %2424 }
 0x2fb   : > { %7636 = vst [vmem:[#allocation39_spill] sm:$0xff] %v6457_v43 }
 0x2fd   : > { %v6475_v42 = vpop.permute.xlu0 %2284 }
 0x2fe   : > { %v6461_v15 = vpop.permute.xlu1 %2504  ;;  %7640 = vst [vmem:[#allocation43_spill] sm:$0xff] %v6475_v42 }
 0x301   : > { %v6479_v0 = vpop.permute.xlu0 %2320 }
 0x302   : > { %v6465_v20 = vpop.permute.xlu1 %2508 }
 0x305   : > { %v6483_v47 = vpop.permute.xlu0 %2328 }
 0x306   : > { %v6469_v40 = vpop.permute.xlu1 %2468  ;;  %7643 = vst [vmem:[#allocation46_spill] sm:$0xff] %v6483_v47 }
 0x307   : > { %7639 = vst [vmem:[#allocation42_spill] sm:$0xff] %v6469_v40 }
 0x309   : > { %v6487_v35 = vpop.permute.xlu0 %2420 }
 0x30a   : > { %v6473_v53 = vpop.permute.xlu1 %2552 }
 0x30d   : > { %v6491_v3 = vpop.permute.xlu0 %2428 }
 0x30e   : > { %v6477_v18 = vpop.permute.xlu1 %2512  ;;  %7645 = vst [vmem:[#allocation48_spill] sm:$0xff] %v6491_v3 }
 0x30f   : > { %7641 = vst [vmem:[#allocation44_spill] sm:$0xff] %v6477_v18 }
 0x311   : > { %v6495_v46 = vpop.permute.xlu0 %2456 }
 0x312   : > { %v6481_v51 = vpop.permute.xlu1 %2516 }
 0x313   : > { %7642 = vst [vmem:[#allocation45_spill] sm:$0xff] %v6481_v51 }
 0x315   : > { %v6499_v12 = vpop.permute.xlu0 %2464 }
 0x316   : > { %v6485_v27 = vpop.permute.xlu1 %2604  ;;  %7646 = vst [vmem:[#allocation49_spill] sm:$0xff] %v6499_v12 }
 0x319   : > { %v6503_v23 = vpop.permute.xlu0 %2556 }
 0x31a   : > { %v6489_v38 = vpop.permute.xlu1 %2560 }
 0x31b   : > { %7644 = vst [vmem:[#allocation47_spill] sm:$0xff] %v6489_v38 }
 0x31d   : > { %v6507_v36 = vpop.permute.xlu0 %2564 }
 0x31e   : > { %v6493_v52 = vpop.permute.xlu1 %2648  ;;  %7648 = vst [vmem:[#allocation51_spill] sm:$0xff] %v6507_v36 }
 0x321   : > { %v6511_v9 = vpop.permute.xlu0 %2600 }
 0x322   : > { %v6497_v54 = vpop.permute.xlu1 %2652 }
 0x325   : > { %v6529_v59 = vpop.permute.xlu0 %2608 }
 0x326   : > { %v6501_v29 = vpop.permute.xlu1 %2612  ;;  %7651 = vst [vmem:[#allocation54_spill] sm:$0xff] %v6529_v59 }
 0x327   : > { %7647 = vst [vmem:[#allocation50_spill] sm:$0xff] %v6501_v29 }
 0x32a   : > { %v6505_v50 = vpop.permute.xlu1 %2696 }
 0x32e   : > { %v6509_v60 = vpop.permute.xlu1 %2656 }
 0x32f   : > { %7649 = vst [vmem:[#allocation52_spill] sm:$0xff] %v6509_v60 }
 0x332   : > { %v6513_v5 = vpop.permute.xlu1 %2660 }
 0x333   : > { %7650 = vst [vmem:[#allocation53_spill] sm:$0xff] %v6513_v5 }
 0x336   : > { %v6534_v18 = vpop.permute.xlu1 %2748 }
 0x37d   : > { %v6515_v51 = vpop.f32.mrb[0].mxu1 }
 0x37e   : > { %v6517_v40 = vpop.f32.mrb[1].mxu1  ;;  %v1983_v3 = vmul.f32 %v1966_v31, %v6515_v51  ;;  %v4748_v29 = vadd.f32 0.09, %v6515_v51  ;;  %v4756_v44 = vadd.f32 0.08, %v6515_v51 }
 0x37f   : > { %v1984_v36 = vmul.f32 %v1966_v31, %v6517_v40  ;;  %v4749_v42 = vadd.f32 0.09, %v6517_v40  ;;  %v4757_v1 = vadd.f32 0.08, %v6517_v40  ;;  %v4764_v5 = vadd.f32 0.07, %v6515_v51 }
 0x380   : > { %v2007_v41 = vadd.f32 %v6289_v21, %v1983_v3  ;;  %v2023_v55 = vmax.f32 %v4748_v29, 0.0  ;;  %v2071_v10 = vmax.f32 %v4756_v44, 0.0  ;;  %v4765_v32 = vadd.f32 0.07, %v6517_v40 }
 0x381   : > { %v2008_v58 = vadd.f32 %v6289_v21, %v1984_v36  ;;  %v2024_v60 = vmax.f32 %v4749_v42, 0.0  ;;  %v2072_v33 = vmax.f32 %v4757_v1, 0.0  ;;  %v2119_v38 = vmax.f32 %v4764_v5, 0.0  ;;  %v6532_v31 = vpop.f32.mrb[2].mxu1 }
 0x382   : > { %v2047_v12 = vmul.f32 %v6315_v17, %v2023_v55  ;;  %v2095_v43 = vmul.f32 %v6353_v62, %v2071_v10  ;;  %v2120_v3 = vmax.f32 %v4765_v32, 0.0  ;;  %v4772_v44 = vadd.f32 0.06, %v6515_v51  ;;  %v6539_v29 = vpop.f32.mrb[3].mxu1 }
 0x383   : > { %v2048_v59 = vmul.f32 %v6315_v17, %v2024_v60  ;;  %v2096_v21 = vmul.f32 %v6353_v62, %v2072_v33  ;;  %v2143_v1 = vmul.f32 %v6384_v39, %v2119_v38  ;;  %v4773_v5 = vadd.f32 0.06, %v6517_v40 }
 0x384   : > { %v2055_v42 = vadd.f32 %v2047_v12, %v2007_v41  ;;  %v2144_v36 = vmul.f32 %v6384_v39, %v2120_v3  ;;  %v2167_v11 = vmax.f32 %v4772_v44, 0.0  ;;  %v4780_v55 = vadd.f32 0.05, %v6515_v51  ;;  %v6555_v39 = vpop.permute.xlu0 %2700  ;;  %v6558_v3 = vpop.permute.xlu1 %2704 }
 0x385   : > { %v2056_v10 = vadd.f32 %v2048_v59, %v2008_v58  ;;  %v2168_v32 = vmax.f32 %v4773_v5, 0.0  ;;  %v4781_v47 = vadd.f32 0.05, %v6517_v40  ;;  %v4788_v4 = vadd.f32 0.04, %v6515_v51  ;;  %v6549_v13 = vpop.f32.mrb[4].mxu1 }
 0x386   : > { %v2103_v17 = vadd.f32 %v2095_v43, %v2055_v42  ;;  %v2191_v62 = vmul.f32 %v6463_v28, %v2167_v11  ;;  %v2215_v33 = vmax.f32 %v4780_v55, 0.0  ;;  %v4789_v38 = vadd.f32 0.04, %v6517_v40  ;;  %v6553_v41 = vpop.f32.mrb[5].mxu1 }
 0x387   : > { %v2104_v12 = vadd.f32 %v2096_v21, %v2056_v10  ;;  %v2192_v58 = vmul.f32 %v6463_v28, %v2168_v32  ;;  %v2216_v59 = vmax.f32 %v4781_v47, 0.0  ;;  %v2263_v60 = vmax.f32 %v4788_v4, 0.0 }
 0x388   : > { %v2151_v44 = vadd.f32 %v2143_v1, %v2103_v17  ;;  %v2239_v5 = vmul.f32 %v6408_v56, %v2215_v33  ;;  %v2264_v43 = vmax.f32 %v4789_v38, 0.0  ;;  %v4796_v11 = vadd.f32 0.03, %v6515_v51 }
 0x389   : > { %v2152_v42 = vadd.f32 %v2144_v36, %v2104_v12  ;;  %v2240_v55 = vmul.f32 %v6408_v56, %v2216_v59  ;;  %v2287_v22 = vmul.f32 %v6420_v6, %v2263_v60  ;;  %v4797_v14 = vadd.f32 0.03, %v6517_v40  ;;  %v6565_v21 = vpop.f32.mrb[6].mxu1 }
 0x38a   : > { %v2199_v28 = vadd.f32 %v2191_v62, %v2151_v44  ;;  %v2288_v4 = vmul.f32 %v6420_v6, %v2264_v43  ;;  %v2311_v47 = vmax.f32 %v4796_v11, 0.0  ;;  %v4804_v1 = vadd.f32 0.02, %v6515_v51  ;;  %v6569_v10 = vpop.f32.mrb[7].mxu1  ;;  %v6575_v62 = vpop.permute.xlu0 %2708 }
 0x38b   : > { %7652 = vst [vmem:[#allocation55_spill] sm:$0xff] %v6569_v10  ;;  %v2200_v32 = vadd.f32 %v2192_v58, %v2152_v42  ;;  %v2312_v17 = vmax.f32 %v4797_v14, 0.0  ;;  %v4805_v36 = vadd.f32 0.02, %v6517_v40  ;;  %v4812_v56 = vadd.f32 0.01, %v6515_v51  ;;  %v6578_v11 = vpop.permute.xlu1 %2792 }
 0x38c   : > { %v2247_v33 = vadd.f32 %v2239_v5, %v2199_v28  ;;  %v2335_v38 = vmul.f32 %v6479_v0, %v2311_v47  ;;  %v2359_v12 = vmax.f32 %v4804_v1, 0.0  ;;  %v4813_v59 = vadd.f32 0.01, %v6517_v40  ;;  %7653 = vst [vmem:[#allocation56_spill] sm:$0xff] %v6575_v62 }
 0x38d   : > { %v2248_v6 = vadd.f32 %v2240_v55, %v2200_v32  ;;  %v2336_v60 = vmul.f32 %v6479_v0, %v2312_v17  ;;  %v2360_v44 = vmax.f32 %v4805_v36, 0.0  ;;  %v2407_v43 = vmax.f32 %v4812_v56, 0.0 }
 0x38e   : > { %v2295_v14 = vadd.f32 %v2287_v22, %v2247_v33  ;;  %v2383_v58 = vmul.f32 %v6433_v25, %v2359_v12  ;;  %v2408_v42 = vmax.f32 %v4813_v59, 0.0  ;;  %v2448_v5 = vmax.f32 %v6517_v40, 0.0 }
 0x38f   : > { %v2296_v28 = vadd.f32 %v2288_v4, %v2248_v6  ;;  %v2384_v47 = vmul.f32 %v6433_v25, %v2360_v44  ;;  %v2431_v1 = vmul.f32 %v6441_v8, %v2407_v43  ;;  %v7654_v62 = vmax.f32 %v6515_v51, 0.0  ;;  %v6595_v43 = vpop.permute.xlu1 %2796 }
 0x390   : > { %v2343_v0 = vadd.f32 %v2335_v38, %v2295_v14  ;;  %v2432_v32 = vmul.f32 %v6441_v8, %v2408_v42  ;;  %v2472_v17 = vmul.f32 %v6495_v46, %v2448_v5  ;;  %v4820_v22 = vadd.f32 -0.01, %v6515_v51  ;;  %v2745_v38 = vpop.permute.xlu0 %2744 }
 0x391   : > { %v2471_v55 = vmul.f32 %v6495_v46, %v7654_v62  ;;  %v2344_v36 = vadd.f32 %v2336_v60, %v2296_v28  ;;  %v4821_v56 = vadd.f32 -0.01, %v6517_v40  ;;  %v4828_v4 = vadd.f32 -0.02, %v6515_v51 }
 0x392   : > { %v4829_v25 = vadd.f32 -0.02, %v6517_v40  ;;  %v2391_v33 = vadd.f32 %v2383_v58, %v2343_v0  ;;  %v2495_v12 = vmax.f32 %v4820_v22, 0.0  ;;  %v4836_v59 = vadd.f32 -0.03, %v6515_v51 }
 0x393   : > { %v4837_v62 = vadd.f32 -0.03, %v6517_v40  ;;  %v2392_v6 = vadd.f32 %v2384_v47, %v2344_v36  ;;  %v2496_v8 = vmax.f32 %v4821_v56, 0.0  ;;  %v2543_v44 = vmax.f32 %v4828_v4, 0.0 }
 0x394   : > { %v2544_v46 = vmax.f32 %v4829_v25, 0.0  ;;  %v2439_v60 = vadd.f32 %v2431_v1, %v2391_v33  ;;  %v2519_v14 = vmul.f32 %v6461_v15, %v2495_v12  ;;  %v2591_v42 = vmax.f32 %v4836_v59, 0.0 }
 0x395   : > { %v2592_v5 = vmax.f32 %v4837_v62, 0.0  ;;  %v2440_v28 = vadd.f32 %v2432_v32, %v2392_v6  ;;  %v2520_v58 = vmul.f32 %v6461_v15, %v2496_v8  ;;  %v2567_v0 = vmul.f32 %v6473_v53, %v2543_v44  ;;  %v6611_v8 = vpop.permute.xlu1 %2756 }
 0x396   : > { %v2568_v22 = vmul.f32 %v6473_v53, %v2544_v46  ;;  %v2479_v10 = vadd.f32 %v2471_v55, %v2439_v60  ;;  %v2615_v47 = vmul.f32 %v6511_v9, %v2591_v42  ;;  %v4844_v56 = vadd.f32 -0.04, %v6515_v51  ;;  %v6609_v55 = vpop.permute.xlu0 %2752 }
 0x397   : > { %v2616_v36 = vmul.f32 %v6511_v9, %v2592_v5  ;;  %v2480_v4 = vadd.f32 %v2472_v17, %v2440_v28  ;;  %v4845_v1 = vadd.f32 -0.04, %v6517_v40  ;;  %v4852_v25 = vadd.f32 -0.05, %v6515_v51 }
 0x398   : > { %v4853_v32 = vadd.f32 -0.05, %v6517_v40  ;;  %v2527_v33 = vadd.f32 %v2519_v14, %v2479_v10  ;;  %v2639_v15 = vmax.f32 %v4844_v56, 0.0  ;;  %v4860_v12 = vadd.f32 -0.06, %v6515_v51 }
 0x399   : > { %v4861_v53 = vadd.f32 -0.06, %v6517_v40  ;;  %v2528_v59 = vadd.f32 %v2520_v58, %v2480_v4  ;;  %v2640_v62 = vmax.f32 %v4845_v1, 0.0  ;;  %v2687_v9 = vmax.f32 %v4852_v25, 0.0 }
 0x39a   : > { %v2688_v6 = vmax.f32 %v4853_v32, 0.0  ;;  %v2575_v17 = vadd.f32 %v2567_v0, %v2527_v33  ;;  %v2663_v44 = vmul.f32 %v6493_v52, %v2639_v15  ;;  %v2735_v46 = vmax.f32 %v4860_v12, 0.0  ;;  %v2889_v12 = vpop.permute.xlu0 %2888 }
 0x39b   : > { %v2736_v60 = vmax.f32 %v4861_v53, 0.0  ;;  %v2576_v42 = vadd.f32 %v2568_v22, %v2528_v59  ;;  %v2664_v10 = vmul.f32 %v6493_v52, %v2640_v62  ;;  %v2711_v14 = vmul.f32 %v6505_v50, %v2687_v9  ;;  %v2841_v59 = vpop.permute.xlu1 %2840 }
 0x39c   : > { %v2712_v5 = vmul.f32 %v6505_v50, %v2688_v6  ;;  %v2623_v28 = vadd.f32 %v2615_v47, %v2575_v17  ;;  %v2759_v56 = vmul.f32 %v2745_v38, %v2735_v46  ;;  %v4868_v4 = vadd.f32 -0.07, %v6515_v51 }
 0x39d   : > { %v2760_v58 = vmul.f32 %v2745_v38, %v2736_v60  ;;  %v2624_v1 = vadd.f32 %v2616_v36, %v2576_v42  ;;  %v4869_v25 = vadd.f32 -0.07, %v6517_v40  ;;  %v4876_v0 = vadd.f32 -0.08, %v6515_v51 }
 0x39e   : > { %v4877_v32 = vadd.f32 -0.08, %v6517_v40  ;;  %v2671_v33 = vadd.f32 %v2663_v44, %v2623_v28  ;;  %v2783_v22 = vmax.f32 %v4868_v4, 0.0  ;;  %v4884_v52 = vadd.f32 -0.09, %v6515_v51 }
 0x39f   : > { %v4885_v15 = vadd.f32 -0.09, %v6517_v40  ;;  %v2672_v50 = vadd.f32 %v2664_v10, %v2624_v1  ;;  %v2784_v47 = vmax.f32 %v4869_v25, 0.0  ;;  %v2831_v53 = vmax.f32 %v4876_v0, 0.0 }
 0x3a0   : > { %v2832_v38 = vmax.f32 %v4877_v32, 0.0  ;;  %v2719_v62 = vadd.f32 %v2711_v14, %v2671_v33  ;;  %v2807_v36 = vmul.f32 %v6578_v11, %v2783_v22  ;;  %v2879_v9 = vmax.f32 %v4884_v52, 0.0 }
 0x3a1   : > { %v2880_v6 = vmax.f32 %v4885_v15, 0.0  ;;  %v2720_v17 = vadd.f32 %v2712_v5, %v2672_v50  ;;  %v2808_v46 = vmul.f32 %v6578_v11, %v2784_v47  ;;  %v2855_v44 = vmul.f32 %v2841_v59, %v2831_v53 }
 0x3a2   : > { %v2856_v60 = vmul.f32 %v2841_v59, %v2832_v38  ;;  %v2767_v42 = vadd.f32 %v2759_v56, %v2719_v62  ;;  %v2903_v51 = vmul.f32 %v2889_v12, %v2879_v9  ;;  %v1985_v40 = vmul.f32 %v6278_v48, %v6532_v31 }
 0x3a3   : > { %v2904_v28 = vmul.f32 %v2889_v12, %v2880_v6  ;;  %v2768_v10 = vadd.f32 %v2760_v58, %v2720_v17  ;;  %v1986_v4 = vmul.f32 %v6278_v48, %v6539_v29  ;;  %v4750_v14 = vadd.f32 0.09, %v6532_v31 }
 0x3a4   : > { %v4751_v1 = vadd.f32 0.09, %v6539_v29  ;;  %v2815_v25 = vadd.f32 %v2807_v36, %v2767_v42  ;;  %v2009_v5 = vadd.f32 %v6437_v63, %v1985_v40  ;;  %v4758_v11 = vadd.f32 0.08, %v6532_v31 }
 0x3a5   : > { %v4759_v56 = vadd.f32 0.08, %v6539_v29  ;;  %v2816_v0 = vadd.f32 %v2808_v46, %v2768_v10  ;;  %v2010_v32 = vadd.f32 %v6437_v63, %v1986_v4  ;;  %v2025_v33 = vmax.f32 %v4750_v14, 0.0 }
 0x3a6   : > { %v2026_v22 = vmax.f32 %v4751_v1, 0.0  ;;  %v2863_v58 = vadd.f32 %v2855_v44, %v2815_v25  ;;  %v2073_v52 = vmax.f32 %v4758_v11, 0.0  ;;  %v4766_v48 = vadd.f32 0.07, %v6532_v31 }
 0x3a7   : > { %v2074_v15 = vmax.f32 %v4759_v56, 0.0  ;;  %v2864_v12 = vadd.f32 %v2856_v60, %v2816_v0  ;;  %v2049_v50 = vmul.f32 %v6331_v49, %v2025_v33  ;;  %v4767_v53 = vadd.f32 0.07, %v6539_v29 }
 0x3a8   : > { %v2050_v47 = vmul.f32 %v6331_v49, %v2026_v22  ;;  %v6639_v38 = vadd.f32 %v2903_v51, %v2863_v58  ;;  %v2097_v59 = vmul.f32 %v6447_v61, %v2073_v52  ;;  %v2121_v62 = vmax.f32 %v4766_v48, 0.0 }
 0x3a9   : > { %v2098_v63 = vmul.f32 %v6447_v61, %v2074_v15  ;;  %v6643_v36 = vadd.f32 %v2904_v28, %v2864_v12  ;;  %v2057_v9 = vadd.f32 %v2049_v50, %v2009_v5  ;;  %v2122_v17 = vmax.f32 %v4767_v53, 0.0 }
 0x3aa   : > { %v2058_v6 = vadd.f32 %v2050_v47, %v2010_v32  ;;  %v2949_v46 = vand.u32 4294901760, %v6639_v38  ;;  %v4774_v44 = vadd.f32 0.06, %v6532_v31  ;;  %v4775_v49 = vadd.f32 0.06, %v6539_v29 }
 0x3ab   : > { %v2105_v60 = vadd.f32 %v2097_v59, %v2057_v9  ;;  %v2145_v51 = vmul.f32 %v6455_v57, %v2121_v62  ;;  %v2146_v40 = vmul.f32 %v6455_v57, %v2122_v17  ;;  %v4782_v28 = vadd.f32 0.05, %v6532_v31 }
 0x3ac   : > { %v2106_v42 = vadd.f32 %v2098_v63, %v2058_v6  ;;  %v2169_v10 = vmax.f32 %v4774_v44, 0.0  ;;  %v2170_v61 = vmax.f32 %v4775_v49, 0.0  ;;  %v2947_v4 = vand.u32 4294901760, %v6643_v36 }
 0x3ad   : > { %v2153_v14 = vadd.f32 %v2145_v51, %v2105_v60  ;;  %v4783_v25 = vadd.f32 0.05, %v6539_v29  ;;  %v6656_v5 = vsub.f32 %v6639_v38, %v2949_v46  ;;  %v2217_v57 = vmax.f32 %v4782_v28, 0.0 }
 0x3ae   : > { %v2154_v1 = vadd.f32 %v2146_v40, %v2106_v42  ;;  %v2193_v11 = vmul.f32 %v6400_v26, %v2169_v10  ;;  %v2194_v56 = vmul.f32 %v6400_v26, %v2170_v61  ;;  %v4790_v32 = vadd.f32 0.04, %v6532_v31 }
 0x3af   : > { %v2218_v0 = vmax.f32 %v4783_v25, 0.0  ;;  %v4791_v33 = vadd.f32 0.04, %v6539_v29  ;;  %v2449_v22 = vmax.f32 %v6532_v31, 0.0  ;;  %v2241_v15 = vmul.f32 %v6412_v16, %v2217_v57 }
 0x3b0   : > { %v2201_v58 = vadd.f32 %v2193_v11, %v2153_v14  ;;  %v2202_v52 = vadd.f32 %v2194_v56, %v2154_v1  ;;  %v4798_v48 = vadd.f32 0.03, %v6532_v31  ;;  %v2265_v50 = vmax.f32 %v4790_v32, 0.0 }
 0x3b1   : > { %v2242_v12 = vmul.f32 %v6412_v16, %v2218_v0  ;;  %v2266_v47 = vmax.f32 %v4791_v33, 0.0  ;;  %v4799_v26 = vadd.f32 0.03, %v6539_v29  ;;  %v4806_v63 = vadd.f32 0.02, %v6532_v31 }
 0x3b2   : > { %v2249_v53 = vadd.f32 %v2241_v15, %v2201_v58  ;;  %v2313_v59 = vmax.f32 %v4798_v48, 0.0  ;;  %v4807_v62 = vadd.f32 0.02, %v6539_v29  ;;  %v2289_v6 = vmul.f32 %v6471_v45, %v2265_v50 }
 0x3b3   : > { %v2250_v9 = vadd.f32 %v2242_v12, %v2202_v52  ;;  %v2290_v17 = vmul.f32 %v6471_v45, %v2266_v47  ;;  %v2314_v44 = vmax.f32 %v4799_v26, 0.0  ;;  %v2361_v60 = vmax.f32 %v4806_v63, 0.0 }
 0x3b4   : > { %v2337_v49 = vmul.f32 %v6429_v2, %v2313_v59  ;;  %v2362_v16 = vmax.f32 %v4807_v62, 0.0  ;;  %v4814_v42 = vadd.f32 0.01, %v6532_v31  ;;  %v2297_v51 = vadd.f32 %v2289_v6, %v2249_v53 }
 0x3b5   : > { %v2298_v40 = vadd.f32 %v2290_v17, %v2250_v9  ;;  %v2338_v10 = vmul.f32 %v6429_v2, %v2314_v44  ;;  %v4815_v61 = vadd.f32 0.01, %v6539_v29  ;;  %v2385_v28 = vmul.f32 %v6435_v24, %v2361_v60 }
 0x3b6   : > { %v2386_v14 = vmul.f32 %v6435_v24, %v2362_v16  ;;  %v2409_v1 = vmax.f32 %v4814_v42, 0.0  ;;  %v2450_v45 = vmax.f32 %v6539_v29, 0.0  ;;  %v2345_v25 = vadd.f32 %v2337_v49, %v2297_v51  ;;  %v6695_v51 = vpop.permute.xlu1 %2800 }
 0x3b7   : > { %v2346_v11 = vadd.f32 %v2338_v10, %v2298_v40  ;;  %v2410_v56 = vmax.f32 %v4815_v61, 0.0  ;;  %v2473_v57 = vmul.f32 %v6453_v34, %v2449_v22  ;;  %v4822_v2 = vadd.f32 -0.01, %v6532_v31 }
 0x3b8   : > { %v2433_v0 = vmul.f32 %v6487_v35, %v2409_v1  ;;  %v2474_v32 = vmul.f32 %v6453_v34, %v2450_v45  ;;  %v4823_v33 = vadd.f32 -0.01, %v6539_v29  ;;  %v2393_v58 = vadd.f32 %v2385_v28, %v2345_v25 }
 0x3b9   : > { %v2394_v52 = vadd.f32 %v2386_v14, %v2346_v11  ;;  %v2434_v24 = vmul.f32 %v6487_v35, %v2410_v56  ;;  %v4830_v15 = vadd.f32 -0.02, %v6532_v31  ;;  %v2497_v48 = vmax.f32 %v4822_v2, 0.0 }
 0x3ba   : > { %v2498_v12 = vmax.f32 %v4823_v33, 0.0  ;;  %v4831_v50 = vadd.f32 -0.02, %v6539_v29  ;;  %v4838_v22 = vadd.f32 -0.03, %v6532_v31  ;;  %v2441_v47 = vadd.f32 %v2433_v0, %v2393_v58 }
 0x3bb   : > { %v2442_v26 = vadd.f32 %v2434_v24, %v2394_v52  ;;  %v2545_v53 = vmax.f32 %v4830_v15, 0.0  ;;  %v4839_v34 = vadd.f32 -0.03, %v6539_v29  ;;  %v2521_v59 = vmul.f32 %v6465_v20, %v2497_v48 }
 0x3bc   : > { %v2522_v63 = vmul.f32 %v6465_v20, %v2498_v12  ;;  %v2546_v62 = vmax.f32 %v4831_v50, 0.0  ;;  %v2593_v9 = vmax.f32 %v4838_v22, 0.0  ;;  %v2481_v35 = vadd.f32 %v2473_v57, %v2441_v47  ;;  %v6709_v50 = vpop.permute.xlu1 %2804 }
 0x3bd   : > { %v2482_v6 = vadd.f32 %v2474_v32, %v2442_v26  ;;  %v2569_v17 = vmul.f32 %v6503_v23, %v2545_v53  ;;  %v2594_v44 = vmax.f32 %v4839_v34, 0.0  ;;  %v4846_v16 = vadd.f32 -0.04, %v6532_v31 }
 0x3be   : > { %v2570_v49 = vmul.f32 %v6503_v23, %v2546_v62  ;;  %v2617_v60 = vmul.f32 %v6485_v27, %v2593_v9  ;;  %v4847_v42 = vadd.f32 -0.04, %v6539_v29  ;;  %v2529_v40 = vadd.f32 %v2521_v59, %v2481_v35 }
 0x3bf   : > { %v2530_v10 = vadd.f32 %v2522_v63, %v2482_v6  ;;  %v2618_v20 = vmul.f32 %v6485_v27, %v2594_v44  ;;  %v4854_v61 = vadd.f32 -0.05, %v6532_v31  ;;  %v2641_v28 = vmax.f32 %v4846_v16, 0.0  ;;  %v2845_v63 = vpop.permute.xlu0 %2844 }
 0x3c0   : > { %v2642_v14 = vmax.f32 %v4847_v42, 0.0  ;;  %v4855_v1 = vadd.f32 -0.05, %v6539_v29  ;;  %v4862_v23 = vadd.f32 -0.06, %v6532_v31  ;;  %v2577_v45 = vadd.f32 %v2569_v17, %v2529_v40 }
 0x3c1   : > { %v2578_v25 = vadd.f32 %v2570_v49, %v2530_v10  ;;  %v2689_v11 = vmax.f32 %v4854_v61, 0.0  ;;  %v4863_v56 = vadd.f32 -0.06, %v6539_v29  ;;  %v2665_v57 = vmul.f32 %v6497_v54, %v2641_v28  ;;  %v2893_v61 = vpop.permute.xlu1 %2892 }
 0x3c2   : > { %v2666_v0 = vmul.f32 %v6497_v54, %v2642_v14  ;;  %v2690_v32 = vmax.f32 %v4855_v1, 0.0  ;;  %v2737_v2 = vmax.f32 %v4862_v23, 0.0  ;;  %v2625_v27 = vadd.f32 %v2617_v60, %v2577_v45 }
 0x3c3   : > { %v2626_v33 = vadd.f32 %v2618_v20, %v2578_v25  ;;  %v2713_v58 = vmul.f32 %v6555_v39, %v2689_v11  ;;  %v2738_v52 = vmax.f32 %v4863_v56, 0.0  ;;  %v4870_v48 = vadd.f32 -0.07, %v6532_v31 }
 0x3c4   : > { %v2714_v24 = vmul.f32 %v6555_v39, %v2690_v32  ;;  %v2761_v15 = vmul.f32 %v6534_v18, %v2737_v2  ;;  %v4871_v12 = vadd.f32 -0.07, %v6539_v29  ;;  %v2673_v22 = vadd.f32 %v2665_v57, %v2625_v27 }
 0x3c5   : > { %v2674_v47 = vadd.f32 %v2666_v0, %v2626_v33  ;;  %v2762_v54 = vmul.f32 %v6534_v18, %v2738_v52  ;;  %v4878_v26 = vadd.f32 -0.08, %v6532_v31  ;;  %v2785_v53 = vmax.f32 %v4870_v48, 0.0 }
 0x3c6   : > { %v2786_v34 = vmax.f32 %v4871_v12, 0.0  ;;  %v4879_v59 = vadd.f32 -0.08, %v6539_v29  ;;  %v4886_v39 = vadd.f32 -0.09, %v6532_v31  ;;  %v2721_v62 = vadd.f32 %v2713_v58, %v2673_v22 }
 0x3c7   : > { %v2722_v9 = vadd.f32 %v2714_v24, %v2674_v47  ;;  %v2833_v35 = vmax.f32 %v4878_v26, 0.0  ;;  %v4887_v6 = vadd.f32 -0.09, %v6539_v29  ;;  %v6719_v17 = vsub.f32 %v6643_v36, %v2947_v4 }
 0x3c8   : > { %v2834_v18 = vmax.f32 %v4879_v59, 0.0  ;;  %v2881_v44 = vmax.f32 %v4886_v39, 0.0  ;;  %v2769_v49 = vadd.f32 %v2761_v15, %v2721_v62  ;;  %v2809_v16 = vmul.f32 %v6595_v43, %v2785_v53 }
 0x3c9   : > { %v2770_v60 = vadd.f32 %v2762_v54, %v2722_v9  ;;  %v2882_v42 = vmax.f32 %v4887_v6, 0.0  ;;  %v3127_v31 = vand.u32 4294901760, %v6656_v5  ;;  %v2810_v40 = vmul.f32 %v6595_v43, %v2786_v34 }
 0x3ca   : > { %v2857_v10 = vmul.f32 %v2845_v63, %v2833_v35  ;;  %v2858_v20 = vmul.f32 %v2845_v63, %v2834_v18  ;;  %v2817_v29 = vadd.f32 %v2809_v16, %v2769_v49  ;;  %v1987_v28 = vmul.f32 %v6443_v7, %v6549_v13  ;;  %v7656_v16 = vld [vmem:[#allocation41_spill] sm:$0xff] }
 0x3cb   : > { %v1988_v14 = vmul.f32 %v6443_v7, %v6553_v41  ;;  %v4752_v1 = vadd.f32 0.09, %v6549_v13  ;;  %v2818_v23 = vadd.f32 %v2810_v40, %v2770_v60  ;;  %v2905_v45 = vmul.f32 %v2893_v61, %v2881_v44 }
 0x3cc   : > { %v4753_v25 = vadd.f32 0.09, %v6553_v41  ;;  %v4760_v11 = vadd.f32 0.08, %v6549_v13  ;;  %v2865_v56 = vadd.f32 %v2857_v10, %v2817_v29  ;;  %v6731_v43 = vmul.f32 %v2893_v61, %v2882_v42 }
 0x3cd   : > { %v2027_v57 = vmax.f32 %v4752_v1, 0.0  ;;  %v4761_v0 = vadd.f32 0.08, %v6553_v41  ;;  %v4768_v27 = vadd.f32 0.07, %v6549_v13  ;;  %v2011_v33 = vadd.f32 %v6362_v30, %v1987_v28 }
 0x3ce   : > { %v2028_v32 = vmax.f32 %v4753_v25, 0.0  ;;  %v2075_v2 = vmax.f32 %v4760_v11, 0.0  ;;  %v4769_v7 = vadd.f32 0.07, %v6553_v41  ;;  %v2012_v58 = vadd.f32 %v6362_v30, %v1988_v14  ;;  %v7655_v30 = vld [vmem:[#allocation31_spill] sm:$0xff]  ;;  %v7657_v14 = vld [vmem:[#allocation33_spill] sm:$0xff] }
 0x3cf   : > { %v2051_v52 = vmul.f32 %v6451_v37, %v2027_v57  ;;  %v2076_v24 = vmax.f32 %v4761_v0, 0.0  ;;  %v6739_v15 = vadd.f32 %v2858_v20, %v2818_v23  ;;  %v2123_v12 = vmax.f32 %v4768_v27, 0.0 }
 0x3d0   : > { %v2052_v48 = vmul.f32 %v6451_v37, %v2028_v32  ;;  %v2124_v22 = vmax.f32 %v4769_v7, 0.0  ;;  %v6742_v47 = vadd.f32 %v2905_v45, %v2865_v56  ;;  %v2099_v26 = vmul.f32 %v6391_v19, %v2075_v2  ;;  %v7658_v56 = vld [vmem:[#allocation35_spill] sm:$0xff] }
 0x3d1   : > { %v2059_v54 = vadd.f32 %v2051_v52, %v2011_v33  ;;  %v4776_v53 = vadd.f32 0.06, %v6549_v13  ;;  %v2100_v59 = vmul.f32 %v6391_v19, %v2076_v24  ;;  %v2147_v39 = vmul.f32 %v7655_v30, %v2123_v12  ;;  %v7659_v12 = vld [vmem:[#allocation46_spill] sm:$0xff] }
 0x3d2   : > { %v2060_v34 = vadd.f32 %v2052_v48, %v2012_v58  ;;  %v4777_v63 = vadd.f32 0.06, %v6553_v41  ;;  %v2148_v9 = vmul.f32 %v7655_v30, %v2124_v22  ;;  %v4784_v35 = vadd.f32 0.05, %v6549_v13 }
 0x3d3   : > { %v2107_v62 = vadd.f32 %v2099_v26, %v2059_v54  ;;  %v2171_v37 = vmax.f32 %v4776_v53, 0.0  ;;  %v4785_v44 = vadd.f32 0.05, %v6553_v41  ;;  %v4792_v49 = vadd.f32 0.04, %v6549_v13 }
 0x3d4   : > { %v2108_v6 = vadd.f32 %v2100_v59, %v2060_v34  ;;  %v2172_v18 = vmax.f32 %v4777_v63, 0.0  ;;  %v2219_v19 = vmax.f32 %v4784_v35, 0.0  ;;  %v4793_v40 = vadd.f32 0.04, %v6553_v41  ;;  %v7660_v63 = vld [vmem:[#allocation37_spill] sm:$0xff] }
 0x3d5   : > { %v2155_v60 = vadd.f32 %v2147_v39, %v2107_v62  ;;  %v2195_v42 = vmul.f32 %v7656_v16, %v2171_v37  ;;  %v2220_v61 = vmax.f32 %v4785_v44, 0.0  ;;  %v2267_v29 = vmax.f32 %v4792_v49, 0.0 }
 0x3d6   : > { %v2156_v10 = vadd.f32 %v2148_v9, %v2108_v6  ;;  %v2196_v20 = vmul.f32 %v7656_v16, %v2172_v18  ;;  %v2243_v1 = vmul.f32 %v7657_v14, %v2219_v19  ;;  %v2268_v23 = vmax.f32 %v4793_v40, 0.0  ;;  %v7661_v18 = vld [vmem:[#allocation39_spill] sm:$0xff] }
 0x3d7   : > { %v2203_v28 = vadd.f32 %v2195_v42, %v2155_v60  ;;  %v4800_v45 = vadd.f32 0.03, %v6549_v13  ;;  %v2244_v11 = vmul.f32 %v7657_v14, %v2220_v61  ;;  %v2291_v57 = vmul.f32 %v7658_v56, %v2267_v29  ;;  %v7662_v42 = vld [vmem:[#allocation49_spill] sm:$0xff] }
 0x3d8   : > { %v2204_v25 = vadd.f32 %v2196_v20, %v2156_v10  ;;  %v4801_v0 = vadd.f32 0.03, %v6553_v41  ;;  %v2292_v2 = vmul.f32 %v7658_v56, %v2268_v23  ;;  %v4808_v7 = vadd.f32 0.02, %v6549_v13 }
 0x3d9   : > { %v2251_v32 = vadd.f32 %v2243_v1, %v2203_v28  ;;  %v2315_v27 = vmax.f32 %v4800_v45, 0.0  ;;  %v4809_v52 = vadd.f32 0.02, %v6553_v41  ;;  %v4816_v24 = vadd.f32 0.01, %v6549_v13 }
 0x3da   : > { %v2252_v33 = vadd.f32 %v2244_v11, %v2204_v25  ;;  %v2316_v58 = vmax.f32 %v4801_v0, 0.0  ;;  %v2363_v54 = vmax.f32 %v4808_v7, 0.0  ;;  %v4817_v26 = vadd.f32 0.01, %v6553_v41  ;;  %v7663_v0 = vld [vmem:[#allocation44_spill] sm:$0xff] }
 0x3db   : > { %v2299_v48 = vadd.f32 %v2291_v57, %v2251_v32  ;;  %v2339_v22 = vmul.f32 %v7659_v12, %v2315_v27  ;;  %v2364_v59 = vmax.f32 %v4809_v52, 0.0  ;;  %v2411_v30 = vmax.f32 %v4816_v24, 0.0 }
 0x3dc   : > { %v2300_v53 = vadd.f32 %v2292_v2, %v2252_v33  ;;  %v2340_v34 = vmul.f32 %v7659_v12, %v2316_v58  ;;  %v2387_v62 = vmul.f32 %v7660_v63, %v2363_v54  ;;  %v2412_v9 = vmax.f32 %v4817_v26, 0.0  ;;  %v7664_v58 = vld [vmem:[#allocation47_spill] sm:$0xff] }
 0x3dd   : > { %v2347_v39 = vadd.f32 %v2339_v22, %v2299_v48  ;;  %v2451_v37 = vmax.f32 %v6549_v13, 0.0  ;;  %v2388_v6 = vmul.f32 %v7660_v63, %v2364_v59  ;;  %v2435_v44 = vmul.f32 %v7661_v18, %v2411_v30  ;;  %v7665_v22 = vld [vmem:[#allocation54_spill] sm:$0xff] }
 0x3de   : > { %v2348_v35 = vadd.f32 %v2340_v34, %v2300_v53  ;;  %v2452_v49 = vmax.f32 %v6553_v41, 0.0  ;;  %v2436_v16 = vmul.f32 %v7661_v18, %v2412_v9  ;;  %v4824_v40 = vadd.f32 -0.01, %v6549_v13 }
 0x3df   : > { %v2395_v60 = vadd.f32 %v2387_v62, %v2347_v39  ;;  %v2475_v19 = vmul.f32 %v7662_v42, %v2451_v37  ;;  %v4825_v61 = vadd.f32 -0.01, %v6553_v41  ;;  %v4832_v29 = vadd.f32 -0.02, %v6549_v13 }
 0x3e0   : > { %v2396_v10 = vadd.f32 %v2388_v6, %v2348_v35  ;;  %v2476_v20 = vmul.f32 %v7662_v42, %v2452_v49  ;;  %v2499_v14 = vmax.f32 %v4824_v40, 0.0  ;;  %v4833_v1 = vadd.f32 -0.02, %v6553_v41 }
 0x3e1   : > { %v2443_v28 = vadd.f32 %v2435_v44, %v2395_v60  ;;  %v4840_v23 = vadd.f32 -0.03, %v6549_v13  ;;  %v2500_v25 = vmax.f32 %v4825_v61, 0.0  ;;  %v2547_v11 = vmax.f32 %v4832_v29, 0.0  ;;  %v2849_v44 = vpop.permute.xlu1 %2848  ;;  %v7666_v60 = vld [vmem:[#allocation52_spill] sm:$0xff] }
 0x3e2   : > { %v2444_v45 = vadd.f32 %v2436_v16, %v2396_v10  ;;  %v4841_v56 = vadd.f32 -0.03, %v6553_v41  ;;  %v2523_v32 = vmul.f32 %v7663_v0, %v2499_v14  ;;  %v2548_v2 = vmax.f32 %v4833_v1, 0.0 }
 0x3e3   : > { %v2483_v57 = vadd.f32 %v2475_v19, %v2443_v28  ;;  %v2595_v27 = vmax.f32 %v4840_v23, 0.0  ;;  %v2524_v33 = vmul.f32 %v7663_v0, %v2500_v25  ;;  %v2571_v52 = vmul.f32 %v7664_v58, %v2547_v11 }
 0x3e4   : > { %v2484_v7 = vadd.f32 %v2476_v20, %v2444_v45  ;;  %v2596_v24 = vmax.f32 %v4841_v56, 0.0  ;;  %v2572_v12 = vmul.f32 %v7664_v58, %v2548_v2  ;;  %v4848_v26 = vadd.f32 -0.04, %v6549_v13 }
 0x3e5   : > { %v2531_v48 = vadd.f32 %v2523_v32, %v2483_v57  ;;  %v2619_v54 = vmul.f32 %v7665_v22, %v2595_v27  ;;  %v4849_v59 = vadd.f32 -0.04, %v6553_v41  ;;  %v4856_v30 = vadd.f32 -0.05, %v6549_v13 }
 0x3e6   : > { %v2532_v53 = vadd.f32 %v2524_v33, %v2484_v7  ;;  %v2620_v34 = vmul.f32 %v7665_v22, %v2596_v24  ;;  %v2643_v63 = vmax.f32 %v4848_v26, 0.0  ;;  %v4857_v62 = vadd.f32 -0.05, %v6553_v41  ;;  %v2897_v33 = vpop.permute.xlu1 %2896 }
 0x3e7   : > { %v2579_v39 = vadd.f32 %v2571_v52, %v2531_v48  ;;  %v4864_v9 = vadd.f32 -0.06, %v6549_v13  ;;  %v2644_v35 = vmax.f32 %v4849_v59, 0.0  ;;  %v2691_v6 = vmax.f32 %v4856_v30, 0.0 }
 0x3e8   : > { %v2580_v37 = vadd.f32 %v2572_v12, %v2532_v53  ;;  %v4865_v18 = vadd.f32 -0.06, %v6553_v41  ;;  %v2667_v16 = vmul.f32 %v7666_v60, %v2643_v63  ;;  %v2692_v42 = vmax.f32 %v4857_v62, 0.0 }
 0x3e9   : > { %v2627_v49 = vadd.f32 %v2619_v54, %v2579_v39  ;;  %v2739_v19 = vmax.f32 %v4864_v9, 0.0  ;;  %v2668_v10 = vmul.f32 %v7666_v60, %v2644_v35  ;;  %v2715_v20 = vmul.f32 %v6558_v3, %v2691_v6  ;;  %v7668_v9 = vld [vmem:[#allocation55_spill] sm:$0xff] }
 0x3ea   : > { %v2628_v40 = vadd.f32 %v2620_v34, %v2580_v37  ;;  %v2740_v61 = vmax.f32 %v4865_v18, 0.0  ;;  %v2716_v28 = vmul.f32 %v6558_v3, %v2692_v42  ;;  %v4872_v1 = vadd.f32 -0.07, %v6549_v13  ;;  %v7667_v34 = vld [vmem:[#allocation27_spill] sm:$0xff]  ;;  %v7669_v18 = vld [vmem:[#allocation28_spill] sm:$0xff] }
 0x3eb   : > { %v2675_v29 = vadd.f32 %v2667_v16, %v2627_v49  ;;  %v2763_v14 = vmul.f32 %v6609_v55, %v2739_v19  ;;  %v4873_v25 = vadd.f32 -0.07, %v6553_v41  ;;  %v4880_v11 = vadd.f32 -0.08, %v6549_v13 }
 0x3ec   : > { %v2676_v23 = vadd.f32 %v2668_v10, %v2628_v40  ;;  %v2764_v45 = vmul.f32 %v6609_v55, %v2740_v61  ;;  %v2787_v57 = vmax.f32 %v4872_v1, 0.0  ;;  %v4881_v0 = vadd.f32 -0.08, %v6553_v41 }
 0x3ed   : > { %v2723_v56 = vadd.f32 %v2715_v20, %v2675_v29  ;;  %v4888_v32 = vadd.f32 -0.09, %v6549_v13  ;;  %v2788_v27 = vmax.f32 %v4873_v25, 0.0  ;;  %v2835_v3 = vmax.f32 %v4880_v11, 0.0  ;;  %v7670_v20 = vld [vmem:[#allocation29_spill] sm:$0xff] }
 0x3ee   : > { %v2724_v2 = vadd.f32 %v2716_v28, %v2676_v23  ;;  %v4889_v7 = vadd.f32 -0.09, %v6553_v41  ;;  %v2811_v52 = vmul.f32 %v6695_v51, %v2787_v57  ;;  %v2836_v55 = vmax.f32 %v4881_v0, 0.0 }
 0x3ef   : > { %v2771_v58 = vadd.f32 %v2763_v14, %v2723_v56  ;;  %v2883_v24 = vmax.f32 %v4888_v32, 0.0  ;;  %v2953_v48 = vand.u32 4294901760, %v6742_v47  ;;  %v2812_v22 = vmul.f32 %v6695_v51, %v2788_v27  ;;  %v7671_v56 = vld [vmem:[#allocation30_spill] sm:$0xff] }
 0x3f0   : > { %v2772_v12 = vadd.f32 %v2764_v45, %v2724_v2  ;;  %v2884_v54 = vmax.f32 %v4889_v7, 0.0  ;;  %v2859_v53 = vmul.f32 %v2849_v44, %v2835_v3  ;;  %v2860_v13 = vmul.f32 %v2849_v44, %v2836_v55  ;;  %v7672_v7 = vld [vmem:[#allocation40_spill] sm:$0xff] }
 0x3f1   : > { %v2819_v26 = vadd.f32 %v2811_v52, %v2771_v58  ;;  %v1989_v59 = vmul.f32 %v7667_v34, %v6565_v21  ;;  %v2907_v41 = vmul.f32 %v2897_v33, %v2883_v24  ;;  %v4754_v63 = vadd.f32 0.09, %v6565_v21 }
 0x3f2   : > { %v2820_v30 = vadd.f32 %v2812_v22, %v2772_v12  ;;  %v2908_v39 = vmul.f32 %v2897_v33, %v2884_v54  ;;  %v1990_v37 = vmul.f32 %v7667_v34, %v7668_v9  ;;  %v4755_v35 = vadd.f32 0.09, %v7668_v9  ;;  %v7673_v34 = vld [vmem:[#allocation32_spill] sm:$0xff] }
 0x3f3   : > { %v2867_v62 = vadd.f32 %v2859_v53, %v2819_v26  ;;  %v4762_v51 = vadd.f32 0.08, %v6565_v21  ;;  %v2013_v49 = vadd.f32 %v7669_v18, %v1989_v59  ;;  %v2029_v44 = vmax.f32 %v4754_v63, 0.0 }
 0x3f4   : > { %v2868_v6 = vadd.f32 %v2860_v13, %v2820_v30  ;;  %v4763_v60 = vadd.f32 0.08, %v7668_v9  ;;  %v2030_v42 = vmax.f32 %v4755_v35, 0.0  ;;  %v4770_v40 = vadd.f32 0.07, %v6565_v21 }
 0x3f5   : > { %v6818_v16 = vadd.f32 %v2907_v41, %v2867_v62  ;;  %v2077_v19 = vmax.f32 %v4762_v51, 0.0  ;;  %v2053_v61 = vmul.f32 %v7670_v20, %v2029_v44  ;;  %v4771_v28 = vadd.f32 0.07, %v7668_v9  ;;  %v7674_v51 = vld [vmem:[#allocation34_spill] sm:$0xff] }
 0x3f6   : > { %v6821_v10 = vadd.f32 %v2908_v39, %v2868_v6  ;;  %v2078_v29 = vmax.f32 %v4763_v60, 0.0  ;;  %v6827_v14 = vadd.f32 %v6731_v43, %v6739_v15  ;;  %v2014_v1 = vadd.f32 %v7669_v18, %v1990_v37 }
 0x3f7   : > { %v2054_v23 = vmul.f32 %v7670_v20, %v2030_v42  ;;  %v2125_v45 = vmax.f32 %v4770_v40, 0.0  ;;  %v6834_v25 = vsub.f32 %v6742_v47, %v2953_v48  ;;  %v2061_v11 = vadd.f32 %v2053_v61, %v2013_v49  ;;  %v7675_v42 = vld [vmem:[#allocation43_spill] sm:$0xff] }
 0x3f8   : > { %v2101_v57 = vmul.f32 %v7671_v56, %v2077_v19  ;;  %v2126_v0 = vmax.f32 %v4771_v28, 0.0  ;;  %v2957_v32 = vand.u32 4294901760, %v6818_v16  ;;  %v2102_v43 = vmul.f32 %v7671_v56, %v2078_v29 }
 0x3f9   : > { %v2062_v2 = vadd.f32 %v2054_v23, %v2014_v1  ;;  %v4778_v15 = vadd.f32 0.06, %v6565_v21  ;;  %v2955_v27 = vand.u32 4294901760, %v6821_v10  ;;  %v2149_v33 = vmul.f32 %v7672_v7, %v2125_v45  ;;  %v7676_v23 = vld [vmem:[#allocation36_spill] sm:$0xff] }
 0x3fa   : > { %v2109_v3 = vadd.f32 %v2101_v57, %v2061_v11  ;;  %v4779_v58 = vadd.f32 0.06, %v7668_v9  ;;  %v2150_v55 = vmul.f32 %v7672_v7, %v2126_v0  ;;  %v4786_v12 = vadd.f32 0.05, %v6565_v21 }
 0x3fb   : > { %v2110_v52 = vadd.f32 %v2102_v43, %v2062_v2  ;;  %v2173_v24 = vmax.f32 %v4778_v15, 0.0  ;;  %v4787_v26 = vadd.f32 0.05, %v7668_v9  ;;  %v4794_v53 = vadd.f32 0.04, %v6565_v21 }
 0x3fc   : > { %v2157_v22 = vadd.f32 %v2149_v33, %v2109_v3  ;;  %v2174_v54 = vmax.f32 %v4779_v58, 0.0  ;;  %v2221_v30 = vmax.f32 %v4786_v12, 0.0  ;;  %v4795_v41 = vadd.f32 0.04, %v7668_v9 }
 0x3fd   : > { %v2158_v13 = vadd.f32 %v2150_v55, %v2110_v52  ;;  %v2197_v59 = vmul.f32 %v7673_v34, %v2173_v24  ;;  %v2222_v63 = vmax.f32 %v4787_v26, 0.0  ;;  %v2269_v62 = vmax.f32 %v4794_v53, 0.0  ;;  %v7677_v52 = vld [vmem:[#allocation38_spill] sm:$0xff]  ;;  %v7678_v26 = vld [vmem:[#allocation48_spill] sm:$0xff] }
 0x3fe   : > { %v2198_v39 = vmul.f32 %v7673_v34, %v2174_v54  ;;  %v4802_v37 = vadd.f32 0.03, %v6565_v21  ;;  %v2245_v6 = vmul.f32 %v7674_v51, %v2221_v30  ;;  %v2270_v18 = vmax.f32 %v4795_v41, 0.0 }
 0x3ff   : > { %v2205_v35 = vadd.f32 %v2197_v59, %v2157_v22  ;;  %v4803_v49 = vadd.f32 0.03, %v7668_v9  ;;  %v2246_v60 = vmul.f32 %v7674_v51, %v2222_v63  ;;  %v2293_v19 = vmul.f32 %v7675_v42, %v2269_v62 }
 0x400   : > { %v2206_v44 = vadd.f32 %v2198_v39, %v2158_v13  ;;  %v2317_v40 = vmax.f32 %v4802_v37, 0.0  ;;  %v2294_v61 = vmul.f32 %v7675_v42, %v2270_v18  ;;  %v4810_v28 = vadd.f32 0.02, %v6565_v21  ;;  %v7679_v13 = vld [vmem:[#allocation42_spill] sm:$0xff] }
 0x401   : > { %v2253_v20 = vadd.f32 %v2245_v6, %v2205_v35  ;;  %v2318_v29 = vmax.f32 %v4803_v49, 0.0  ;;  %v4811_v11 = vadd.f32 0.02, %v7668_v9  ;;  %v4818_v56 = vadd.f32 0.01, %v6565_v21 }
 0x402   : > { %v2254_v1 = vadd.f32 %v2246_v60, %v2206_v44  ;;  %v2341_v45 = vmul.f32 %v7676_v23, %v2317_v40  ;;  %v2365_v2 = vmax.f32 %v4810_v28, 0.0  ;;  %v4819_v43 = vadd.f32 0.01, %v7668_v9 }
 0x403   : > { %v2301_v57 = vadd.f32 %v2293_v19, %v2253_v20  ;;  %v2342_v0 = vmul.f32 %v7676_v23, %v2318_v29  ;;  %v2366_v3 = vmax.f32 %v4811_v11, 0.0  ;;  %v2413_v7 = vmax.f32 %v4818_v56, 0.0  ;;  %v7680_v20 = vld [vmem:[#allocation45_spill] sm:$0xff] }
 0x404   : > { %v2302_v15 = vadd.f32 %v2294_v61, %v2254_v1  ;;  %v2453_v33 = vmax.f32 %v6565_v21, 0.0  ;;  %v2389_v55 = vmul.f32 %v7677_v52, %v2365_v2  ;;  %v2414_v24 = vmax.f32 %v4819_v43, 0.0 }
 0x405   : > { %v2349_v58 = vadd.f32 %v2341_v45, %v2301_v57  ;;  %v2454_v12 = vmax.f32 %v7668_v9, 0.0  ;;  %v2390_v54 = vmul.f32 %v7677_v52, %v2366_v3  ;;  %v2437_v53 = vmul.f32 %v7678_v26, %v2413_v7  ;;  %v7681_v45 = vld [vmem:[#allocation51_spill] sm:$0xff] }
 0x406   : > { %v2350_v22 = vadd.f32 %v2342_v0, %v2302_v15  ;;  %v2477_v34 = vmul.f32 %v7679_v13, %v2453_v33  ;;  %v2438_v30 = vmul.f32 %v7678_v26, %v2414_v24  ;;  %v4826_v39 = vadd.f32 -0.01, %v6565_v21  ;;  %v7682_v0 = vld [vmem:[#allocation50_spill] sm:$0xff] }
 0x407   : > { %v2397_v59 = vadd.f32 %v2389_v55, %v2349_v58  ;;  %v2478_v41 = vmul.f32 %v7679_v13, %v2454_v12  ;;  %v4827_v62 = vadd.f32 -0.01, %v7668_v9  ;;  %v4834_v37 = vadd.f32 -0.02, %v6565_v21 }
 0x408   : > { %v2398_v63 = vadd.f32 %v2390_v54, %v2350_v22  ;;  %v4835_v35 = vadd.f32 -0.02, %v7668_v9  ;;  %v2501_v6 = vmax.f32 %v4826_v39, 0.0  ;;  %v4842_v18 = vadd.f32 -0.03, %v6565_v21 }
 0x409   : > { %v2445_v51 = vadd.f32 %v2437_v53, %v2397_v59  ;;  %v4843_v49 = vadd.f32 -0.03, %v7668_v9  ;;  %v2502_v60 = vmax.f32 %v4827_v62, 0.0  ;;  %v2549_v42 = vmax.f32 %v4834_v37, 0.0  ;;  %v7684_v62 = vld [vmem:[#allocation56_spill] sm:$0xff] }
 0x40a   : > { %v2446_v44 = vadd.f32 %v2438_v30, %v2398_v63  ;;  %v2550_v19 = vmax.f32 %v4835_v35, 0.0  ;;  %v2525_v61 = vmul.f32 %v7680_v20, %v2501_v6  ;;  %v2597_v29 = vmax.f32 %v4842_v18, 0.0 }
 0x40b   : > { %v2485_v40 = vadd.f32 %v2477_v34, %v2445_v51  ;;  %v2598_v28 = vmax.f32 %v4843_v49, 0.0  ;;  %v2526_v23 = vmul.f32 %v7680_v20, %v2502_v60  ;;  %v2573_v11 = vmul.f32 %v7681_v45, %v2549_v42  ;;  %v7683_v34 = vld [vmem:[#allocation53_spill] sm:$0xff] }
 0x40c   : > { %v2486_v1 = vadd.f32 %v2478_v41, %v2446_v44  ;;  %v2574_v56 = vmul.f32 %v7681_v45, %v2550_v19  ;;  %v2621_v2 = vmul.f32 %v7682_v0, %v2597_v29  ;;  %v4850_v15 = vadd.f32 -0.04, %v6565_v21 }
 0x40d   : > { %v2533_v57 = vadd.f32 %v2525_v61, %v2485_v40  ;;  %v2622_v43 = vmul.f32 %v7682_v0, %v2598_v28  ;;  %v4851_v7 = vadd.f32 -0.04, %v7668_v9  ;;  %v4858_v33 = vadd.f32 -0.05, %v6565_v21  ;;  %v2853_v40 = vpop.permute.xlu0 %2852 }
 0x40e   : > { %v2534_v3 = vadd.f32 %v2526_v23, %v2486_v1  ;;  %v4859_v58 = vadd.f32 -0.05, %v7668_v9  ;;  %v2645_v55 = vmax.f32 %v4850_v15, 0.0  ;;  %v4866_v24 = vadd.f32 -0.06, %v6565_v21 }
 0x40f   : > { %v2581_v52 = vadd.f32 %v2573_v11, %v2533_v57  ;;  %v4867_v12 = vadd.f32 -0.06, %v7668_v9  ;;  %v2646_v54 = vmax.f32 %v4851_v7, 0.0  ;;  %v2693_v26 = vmax.f32 %v4858_v33, 0.0  ;;  %v2901_v11 = vpop.permute.xlu1 %2900 }
 0x410   : > { %v2582_v22 = vadd.f32 %v2574_v56, %v2534_v3  ;;  %v2694_v53 = vmax.f32 %v4859_v58, 0.0  ;;  %v2669_v59 = vmul.f32 %v7683_v34, %v2645_v55  ;;  %v2741_v30 = vmax.f32 %v4866_v24, 0.0 }
 0x411   : > { %v2629_v13 = vadd.f32 %v2621_v2, %v2581_v52  ;;  %v2742_v41 = vmax.f32 %v4867_v12, 0.0  ;;  %v2670_v63 = vmul.f32 %v7683_v34, %v2646_v54  ;;  %v2717_v37 = vmul.f32 %v7684_v62, %v2693_v26 }
 0x412   : > { %v2630_v39 = vadd.f32 %v2622_v43, %v2582_v22  ;;  %v2718_v35 = vmul.f32 %v7684_v62, %v2694_v53  ;;  %v2765_v6 = vmul.f32 %v6611_v8, %v2741_v30  ;;  %v4874_v49 = vadd.f32 -0.07, %v6565_v21 }
 0x413   : > { %v2677_v51 = vadd.f32 %v2669_v59, %v2629_v13  ;;  %v2766_v18 = vmul.f32 %v6611_v8, %v2742_v41  ;;  %v4875_v60 = vadd.f32 -0.07, %v7668_v9  ;;  %v4882_v42 = vadd.f32 -0.08, %v6565_v21 }
 0x414   : > { %v2678_v44 = vadd.f32 %v2670_v63, %v2630_v39  ;;  %v4883_v19 = vadd.f32 -0.08, %v7668_v9  ;;  %v2789_v61 = vmax.f32 %v4874_v49, 0.0  ;;  %v4890_v29 = vadd.f32 -0.09, %v6565_v21 }
 0x415   : > { %v2725_v20 = vadd.f32 %v2717_v37, %v2677_v51  ;;  %v4891_v28 = vadd.f32 -0.09, %v7668_v9  ;;  %v2790_v23 = vmax.f32 %v4875_v60, 0.0  ;;  %v2837_v45 = vmax.f32 %v4882_v42, 0.0 }
 0x416   : > { %v2726_v1 = vadd.f32 %v2718_v35, %v2678_v44  ;;  %v2838_v8 = vmax.f32 %v4883_v19, 0.0  ;;  %v6903_v56 = vsub.f32 %v6818_v16, %v2957_v32  ;;  %v2813_v0 = vmul.f32 %v6709_v50, %v2789_v61 }
 0x417   : > { %v2773_v57 = vadd.f32 %v2765_v6, %v2725_v20  ;;  %v2885_v2 = vmax.f32 %v4890_v29, 0.0  ;;  %v2814_v15 = vmul.f32 %v6709_v50, %v2790_v23  ;;  %v2861_v21 = vmul.f32 %v2853_v40, %v2837_v45 }
 0x418   : > { %v2774_v43 = vadd.f32 %v2766_v18, %v2726_v1  ;;  %v2886_v3 = vmax.f32 %v4891_v28, 0.0  ;;  %v2862_v7 = vmul.f32 %v2853_v40, %v2838_v8  ;;  %v2951_v58 = vand.u32 4294901760, %v6827_v14 }
 0x419   : > { %v2821_v9 = vadd.f32 %v2813_v0, %v2773_v57  ;;  %v2909_v33 = vmul.f32 %v2901_v11, %v2885_v2  ;;  %v6912_v55 = vpack.c.bf16 %v2953_v48, %v2949_v46  ;;  %v3121_v24 = vand.u32 4294901760, %v6719_v17 }
 0x41a   : > { %v2822_v52 = vadd.f32 %v2814_v15, %v2774_v43  ;;  %v3128_v50 = vsub.f32 %v6656_v5, %v3127_v31  ;;  %v6920_v22 = vpack.c.bf16 %v2951_v58, %v2947_v4  ;;  %v3132_v54 = vsub.f32 %v6827_v14, %v2951_v58  ;;  %v288_v58 = vld [vmem:[%s7458_s4 + $0x20] sm:$0xff] }
 0x41b   : > { %v2869_v12 = vadd.f32 %v2861_v21, %v2821_v9  ;;  %v3139_v26 = vand.u32 4294901760, %v6834_v25  ;;  %v6927_v38 = vsub.f32 %v6821_v10, %v2955_v27  ;;  %v2910_v47 = vmul.f32 %v2901_v11, %v2886_v3  ;;  %v285_v11 = vld [vmem:[%s7458_s4 + $0x8] sm:$0xff]  ;;  %v286_v21 = vld [vmem:[%s7458_s4 + $0x10] sm:$0xff]  ;;  %v287_v9 = vld [vmem:[%s7458_s4 + $0x18] sm:$0xff] }
 0x41c   : > { %v2870_v46 = vadd.f32 %v2862_v7, %v2822_v52  ;;  %v3122_v48 = vsub.f32 %v6719_v17, %v3121_v24  ;;  %5019 = vmatprep.subr.bf16.mxu1 %v6920_v22  ;;  %v3133_v13 = vand.u32 4294901760, %v3132_v54  ;;  %v3151_v4 = vand.u32 4294901760, %v6903_v56 }
 0x41d   : > { %v2917_v53 = vadd.f32 %v2909_v33, %v2869_v12  ;;  %v3140_v36 = vsub.f32 %v6834_v25, %v3139_v26  ;;  %5021 = vmatpush1.bf16.msra.mxu1 %v6912_v55  ;;  %v5034_v34 = vpack.c.bf16 %v3132_v54, %v6719_v17  ;;  %v3129_v41 = vand.u32 4294901760, %v3128_v50  ;;  %v289_v12 = vld [vmem:[%s7458_s4 + $0x28] sm:$0xff] }
 0x41e   : > { %v2918_v14 = vadd.f32 %v2910_v47, %v2870_v46  ;;  %v3134_v30 = vsub.f32 %v3132_v54, %v3133_v13  ;;  %v3123_v62 = vand.u32 4294901760, %v3122_v48  ;;  %v3145_v37 = vand.u32 4294901760, %v6927_v38  ;;  %v290_v48 = vld [vmem:[%s7458_s4 + $0x30] sm:$0xff] }
 0x41f   : > { %v2961_v59 = vand.u32 4294901760, %v2917_v53  ;;  %v3141_v39 = vand.u32 4294901760, %v3140_v36  ;;  %v5036_v35 = vpack.c.bf16 %v6834_v25, %v6656_v5  ;;  %v3152_v19 = vsub.f32 %v6903_v56, %v3151_v4 }
 0x420   : > { %v2959_v63 = vand.u32 4294901760, %v2918_v14  ;;  %v3135_v6 = vand.u32 4294901760, %v3134_v30  ;;  %v3146_v25 = vsub.f32 %v6927_v38, %v3145_v37  ;;  %v6965_v0 = vpack.c.bf16 %v3139_v26, %v3127_v31 }
 0x421   : > { %v3162_v51 = vsub.f32 %v2917_v53, %v2961_v59  ;;  %v6940_v18 = vpack.c.bf16 %v2961_v59, %v2957_v32  ;;  %v5028_v49 = vpack.c.bf16 %v3141_v39, %v3129_v41  ;;  %v3153_v61 = vand.u32 4294901760, %v3152_v19  ;;  %v291_v59 = vld [vmem:[%s7458_s4 + $0x38] sm:$0xff] }
 0x422   : > { %v3156_v44 = vsub.f32 %v2918_v14, %v2959_v63  ;;  %v6944_v17 = vpack.c.bf16 %v2959_v63, %v2955_v27  ;;  %v5026_v42 = vpack.c.bf16 %v3135_v6, %v3123_v62  ;;  %v284_v27 = vld [vmem:[%s7458_s4] sm:$0xff]  ;;  %v3147_v28 = vand.u32 4294901760, %v3146_v25 }
 0x423   : > { %v3163_v60 = vand.u32 4294901760, %v3162_v51  ;;  %v5040_v16 = vpack.c.bf16 %v3162_v51, %v6903_v56  ;;  %v2921_v45 = vsel %vm2919_vm5, %v284_v27, 0  ;;  %v6959_v56 = vpack.c.bf16 %v3133_v13, %v3121_v24 }
 0x424   : > { %5023 = vmatprep.subr.bf16.mxu1 %v6944_v17  ;;  %v3157_v40 = vand.u32 4294901760, %v3156_v44  ;;  %v5038_v20 = vpack.c.bf16 %v3156_v44, %v6927_v38  ;;  %5027 = vmatprep.subr.bf16.mxu0 %v5026_v42  ;;  %v6961_v57 = vand.u32 4294901760, %v2921_v45  ;;  %v2924_v43 = vsel %vm2919_vm5, %v285_v11, 0 }
 0x425   : > { %5025 = vmatpush1.bf16.msra.mxu1 %v6940_v18  ;;  %v3164_v32 = vsub.f32 %v3162_v51, %v3163_v60  ;;  %5029 = vmatpush1.bf16.msra.mxu0 %v5028_v49  ;;  %v6970_v15 = vpack.c.bf16 %v3163_v60, %v3151_v4  ;;  %v6976_v3 = vand.u32 4294901760, %v2924_v43  ;;  %v7685_v5 = vmov 0.0  }
 0x426   : > { %v3158_v10 = vsub.f32 %v3156_v44, %v3157_v40  ;;  %v6967_v2 = vpack.c.bf16 %v3157_v40, %v3145_v37  ;;  %v2927_v31 = vsel %vm2919_vm5, %v286_v21, 0  ;;  %v2930_v33 = vsel %vm2919_vm5, %v287_v9, 0 }
 0x427   : > { %v3165_v29 = vand.u32 4294901760, %v3164_v32  ;;  %v6984_v7 = vand.u32 4294901760, %v2927_v31  ;;  %v6993_v52 = vsub.f32 %v2921_v45, %v6961_v57  ;;  %v6996_v24 = vand.u32 4294901760, %v2930_v33 }
 0x428   : > { %v3159_v1 = vand.u32 4294901760, %v3158_v10  ;;  %v2933_v50 = vsel %vm2919_vm5, %v288_v58, 0  ;;  %v7008_v38 = vsub.f32 %v2924_v43, %v6976_v3  ;;  %v2936_v47 = vsel %vm2919_vm5, %v289_v12, 0 }
 0x429   : > { %v5032_v23 = vpack.c.bf16 %v3165_v29, %v3153_v61  ;;  %v3022_v54 = vand.u32 4294901760, %v6993_v52  ;;  %v7005_v26 = vand.u32 4294901760, %v2933_v50  ;;  %v7020_v36 = vand.u32 4294901760, %v2936_v47 }
 0x42a   : > { %v5030_v8 = vpack.c.bf16 %v3159_v1, %v3147_v28  ;;  %v3033_v53 = vand.u32 4294901760, %v7008_v38  ;;  %v7023_v4 = vsub.f32 %v2927_v31, %v6984_v7  ;;  %v7039_v63 = vsub.f32 %v2930_v33, %v6996_v24 }
 0x42b   : > { %v3023_v46 = vsub.f32 %v6993_v52, %v3022_v54  ;;  %v2942_v37 = vsel %vm2919_vm5, %v291_v59, 0  ;;  %v7055_v44 = vsub.f32 %v2933_v50, %v7005_v26 }
 0x42c   : > { %5031 = vmatprep.subr.bf16.mxu0 %v5030_v8  ;;  %v3034_v14 = vsub.f32 %v7008_v38, %v3033_v53  ;;  %v3044_v30 = vand.u32 4294901760, %v7023_v4  ;;  %v3055_v51 = vand.u32 4294901760, %v7039_v63  ;;  %v7052_v49 = vand.u32 4294901760, %v2942_v37 }
 0x42d   : > { %5033 = vmatpush1.bf16.msra.mxu0 %v5032_v23  ;;  %v3024_v13 = vand.u32 4294901760, %v3023_v46  ;;  %v3066_v19 = vand.u32 4294901760, %v7055_v44 }
 0x42e   : > { %5035 = vmatprep.subr.bf16.mxu0 %v5034_v34  ;;  %v2939_v34 = vsel %vm2919_vm5, %v290_v48, 0  ;;  %v3035_v41 = vand.u32 4294901760, %v3034_v14  ;;  %v3045_v62 = vsub.f32 %v7023_v4, %v3044_v30  ;;  %v3056_v60 = vsub.f32 %v7039_v63, %v3055_v51 }
 0x42f   : > { %3025 = vmatmul.mubr.f32.vlgmr.msra.gmra.mrb[8].mxu1 %v3024_v13  ;;  %v7036_v39 = vand.u32 4294901760, %v2939_v34  ;;  %v3098_v1 = vsub.f32 %v2942_v37, %v7052_v49 }
 0x430   : > { %3225 = vmatmul.mubr.f32.vlgmr.msra.gmra.mrb[2].mxu0 %v6961_v57  ;;  %3030 = vmatprep.mubr.f32.mxu1 %v7685_v5  ;;  %v3046_v6 = vand.u32 4294901760, %v3045_v62  ;;  %v3057_v25 = vand.u32 4294901760, %v3056_v60 }
 0x431   : > { %5037 = vmatpush1.bf16.msra.mxu0 %v5036_v35  ;;  %3230 = vmatprep.mubr.f32.mxu0 %v7685_v5  ;;  %v292_v35 = vld [vmem:[%s7458_s4 + $0x40] sm:$0xff]  ;;  %v7078_v27 = vsub.f32 %v2939_v34, %v7036_v39  ;;  %v3099_v45 = vand.u32 4294901760, %v3098_v1 }
 0x432   : > { %5039 = vmatprep.subr.bf16.mxu0 %v5038_v20  ;;  %v2945_v42 = vsel %vm2919_vm5, %v292_v35, 0  ;;  %v7068_v20 = vsub.f32 %v2936_v47, %v7020_v36  ;;  %vm3966_vm5 = vcmask 64512  }
 0x433   : > { %3036 = vmatmul.mubr.f32.gmra.mrb[10].mxu1 %v3035_v41  ;;  %v7065_v40 = vand.u32 4294901760, %v2945_v42  ;;  %v3088_v29 = vand.u32 4294901760, %v7078_v27  ;;  %v3100_v43 = vsub.f32 %v3098_v1, %v3099_v45 }
 0x434   : > { %3232 = vmatmul.mubr.f32.gmra.mrb[4].mxu0 %v6976_v3  ;;  %3041 = vmatprep.mubr.f32.mxu1 %v7685_v5  ;;  %v3077_v32 = vand.u32 4294901760, %v7068_v20 }
 0x435   : > { %5041 = vmatpush1.bf16.msra.mxu0 %v5040_v16  ;;  %3237 = vmatprep.mubr.f32.mxu0 %v7685_v5  ;;  %v3067_v16 = vsub.f32 %v7055_v44, %v3066_v19  ;;  %v3089_v23 = vsub.f32 %v7078_v27, %v3088_v29  ;;  %v3109_v11 = vsub.f32 %v2945_v42, %v7065_v40  ;;  %v3101_v31 = vand.u32 4294901760, %v3100_v43 }
 0x436   : > { %5043 = vmatprep.subr.bf16.mxu0 %v6920_v22  ;;  %v3078_v61 = vsub.f32 %v7068_v20, %v3077_v32 }
 0x437   : > { %3047 = vmatmul.mubr.f32.gmra.mrb[12].mxu1 %v3046_v6  ;;  %v3068_v10 = vand.u32 4294901760, %v3067_v16  ;;  %v3090_v8 = vand.u32 4294901760, %v3089_v23  ;;  %v3110_v21 = vand.u32 4294901760, %v3109_v11 }
 0x438   : > { %3239 = vmatmul.mubr.f32.gmra.mrb[6].mxu0 %v6984_v7  ;;  %3052 = vmatprep.mubr.f32.mxu1 %v7685_v5  ;;  %v3079_v28 = vand.u32 4294901760, %v3078_v61 }
 0x439   : > { %3244 = vmatprep.mubr.f32.mxu0 %v7685_v5  ;;  %v3111_v9 = vsub.f32 %v3109_v11, %v3110_v21 }
 0x43b   : > { %3058 = vmatmul.mubr.f32.gmra.mrb[14].mxu1 %v3057_v25  ;;  %v3112_v33 = vand.u32 4294901760, %v3111_v9 }
 0x43c   : > { %3246 = vmatmul.mubr.f32.gmra.mrb[8].mxu0 %v6996_v24  ;;  %3063 = vmatprep.mubr.f32.mxu1 %v7685_v5 }
 0x43d   : > { %3251 = vmatprep.mubr.f32.mxu0 %v7685_v5 }
 0x43f   : > { %3069 = vmatmul.mubr.f32.gmra.mrb[16].mxu1 %v3068_v10 }
 0x440   : > { %3253 = vmatmul.mubr.f32.gmra.mrb[10].mxu0 %v7005_v26  ;;  %3074 = vmatprep.mubr.f32.mxu1 %v7685_v5 }
 0x441   : > { %3258 = vmatprep.mubr.f32.mxu0 %v7685_v5 }
 0x443   : > { %3080 = vmatmul.mubr.f32.gmra.mrb[18].mxu1 %v3079_v28 }
 0x444   : > { %3260 = vmatmul.mubr.f32.gmra.mrb[12].mxu0 %v7020_v36  ;;  %3085 = vmatprep.mubr.f32.mxu1 %v7685_v5 }
 0x445   : > { %3265 = vmatprep.mubr.f32.mxu0 %v7685_v5 }
 0x447   : > { %3091 = vmatmul.mubr.f32.gmra.mrb[20].mxu1 %v3090_v8 }
 0x448   : > { %3267 = vmatmul.mubr.f32.gmra.mrb[14].mxu0 %v7036_v39  ;;  %3096 = vmatprep.mubr.f32.mxu1 %v7685_v5 }
 0x449   : > { %3272 = vmatprep.mubr.f32.mxu0 %v7685_v5 }
 0x44b   : > { %3102 = vmatmul.mubr.f32.gmra.mrb[22].mxu1 %v3101_v31 }
 0x44c   : > { %3274 = vmatmul.mubr.f32.gmra.mrb[16].mxu0 %v7052_v49  ;;  %3107 = vmatprep.mubr.f32.mxu1 %v7685_v5 }
 0x44d   : > { %3279 = vmatprep.mubr.f32.mxu0 %v7685_v5 }
 0x44f   : > { %3113 = vmatmul.mubr.f32.gmra.mrb[24].mxu1 %v3112_v33 }
 0x450   : > { %3281 = vmatmul.mubr.f32.gmra.mrb[18].mxu0 %v7065_v40  ;;  %4039 = vmatprep.mubr.f32.mxu1 %v7685_v5 }
 0x451   : > { %3367 = vmatprep.mubr.f32.mxu0 %v7685_v5 }
 0x454   : > { %3370 = vmatmul.mubr.f32.vlgmr.msra.gmra.mrb[2].mxu0 %v6993_v52 }
 0x455   : > { %5045 = vmatpush1.bf16.msra.mxu0 %v6912_v55  ;;  %3375 = vmatprep.mubr.f32.mxu0 %v7685_v5 }
 0x456   : > { %5047 = vmatprep.subr.bf16.mxu0 %v6944_v17 }
 0x458   : > { %3378 = vmatmul.mubr.f32.gmra.mrb[4].mxu0 %v7008_v38 }
 0x459   : > { %5049 = vmatpush1.bf16.msra.mxu0 %v6940_v18  ;;  %3383 = vmatprep.mubr.f32.mxu0 %v7685_v5 }
 0x45a   : > { %5051 = vmatprep.subr.bf16.mxu0 %v6959_v56 }
 0x45c   : > { %3386 = vmatmul.mubr.f32.gmra.mrb[6].mxu0 %v7023_v4 }
 0x45d   : > { %3391 = vmatprep.mubr.f32.mxu0 %v7685_v5 }
 0x460   : > { %3394 = vmatmul.mubr.f32.gmra.mrb[8].mxu0 %v7039_v63 }
 0x461   : > { %3399 = vmatprep.mubr.f32.mxu0 %v7685_v5 }
 0x464   : > { %3402 = vmatmul.mubr.f32.gmra.mrb[10].mxu0 %v7055_v44 }
 0x465   : > { %3407 = vmatprep.mubr.f32.mxu0 %v7685_v5 }
 0x468   : > { %3410 = vmatmul.mubr.f32.gmra.mrb[12].mxu0 %v7068_v20 }
 0x469   : > { %3415 = vmatprep.mubr.f32.mxu0 %v7685_v5 }
 0x46c   : > { %3418 = vmatmul.mubr.f32.gmra.mrb[14].mxu0 %v7078_v27 }
 0x46d   : > { %3423 = vmatprep.mubr.f32.mxu0 %v7685_v5 }
 0x470   : > { %3426 = vmatmul.mubr.f32.gmra.mrb[16].mxu0 %v3098_v1 }
 0x471   : > { %3431 = vmatprep.mubr.f32.mxu0 %v7685_v5 }
 0x474   : > { %3434 = vmatmul.mubr.f32.gmra.mrb[18].mxu0 %v3109_v11 }
 0x475   : > { %3512 = vmatprep.mubr.f32.mxu0 %v7685_v5 }
 0x478   : > { %3516 = vmatmul.mubr.f32.vlgmr.msra.gmra.mrb[2].mxu0 %v3022_v54 }
 0x479   : > { %5053 = vmatpush1.bf16.msra.mxu0 %v6965_v0  ;;  %3521 = vmatprep.mubr.f32.mxu0 %v7685_v5 }
 0x47a   : > { %5055 = vmatprep.subr.bf16.mxu0 %v6967_v2 }
 0x47c   : > { %3525 = vmatmul.mubr.f32.gmra.mrb[4].mxu0 %v3033_v53 }
 0x47d   : > { %5057 = vmatpush1.bf16.msra.mxu0 %v6970_v15  ;;  %3530 = vmatprep.mubr.f32.mxu0 %v7685_v5 }
 0x47e   : > { %5059 = vmatprep.subr.bf16.mxu0 %v6920_v22 }
 0x480   : > { %3534 = vmatmul.mubr.f32.gmra.mrb[6].mxu0 %v3044_v30 }
 0x481   : > { %3539 = vmatprep.mubr.f32.mxu0 %v7685_v5 }
 0x484   : > { %3543 = vmatmul.mubr.f32.gmra.mrb[8].mxu0 %v3055_v51 }
 0x485   : > { %3548 = vmatprep.mubr.f32.mxu0 %v7685_v5 }
 0x488   : > { %3552 = vmatmul.mubr.f32.gmra.mrb[10].mxu0 %v3066_v19 }
 0x489   : > { %3557 = vmatprep.mubr.f32.mxu0 %v7685_v5 }
 0x48c   : > { %3561 = vmatmul.mubr.f32.gmra.mrb[12].mxu0 %v3077_v32 }
 0x48d   : > { %3566 = vmatprep.mubr.f32.mxu0 %v7685_v5 }
 0x490   : > { %3570 = vmatmul.mubr.f32.gmra.mrb[14].mxu0 %v3088_v29 }
 0x491   : > { %3575 = vmatprep.mubr.f32.mxu0 %v7685_v5 }
 0x494   : > { %3579 = vmatmul.mubr.f32.gmra.mrb[16].mxu0 %v3099_v45 }
 0x495   : > { %3584 = vmatprep.mubr.f32.mxu0 %v7685_v5 }
 0x498   : > { %3588 = vmatmul.mubr.f32.gmra.mrb[18].mxu0 %v3110_v21 }
 0x499   : > { %3682 = vmatprep.mubr.f32.mxu0 %v7685_v5 }
 0x49c   : > { %3684 = vmatmul.mubr.f32.vlgmr.msra.gmra.mrb[2].mxu0 %v6961_v57 }
 0x49d   : > { %5061 = vmatpush1.bf16.msra.mxu0 %v6912_v55  ;;  %3689 = vmatprep.mubr.f32.mxu0 %v7685_v5 }
 0x49e   : > { %5063 = vmatprep.subr.bf16.mxu0 %v6944_v17 }
 0x4a0   : > { %3691 = vmatmul.mubr.f32.gmra.mrb[4].mxu0 %v6976_v3 }
 0x4a1   : > { %5065 = vmatpush1.bf16.msra.mxu0 %v6940_v18  ;;  %3696 = vmatprep.mubr.f32.mxu0 %v7685_v5 }
 0x4a4   : > { %3698 = vmatmul.mubr.f32.gmra.mrb[6].mxu0 %v6984_v7 }
 0x4a5   : > { %3703 = vmatprep.mubr.f32.mxu0 %v7685_v5 }
 0x4a8   : > { %3705 = vmatmul.mubr.f32.gmra.mrb[8].mxu0 %v6996_v24 }
 0x4a9   : > { %3710 = vmatprep.mubr.f32.mxu0 %v7685_v5 }
 0x4ac   : > { %3712 = vmatmul.mubr.f32.gmra.mrb[10].mxu0 %v7005_v26 }
 0x4ad   : > { %3717 = vmatprep.mubr.f32.mxu0 %v7685_v5 }
 0x4b0   : > { %3719 = vmatmul.mubr.f32.gmra.mrb[12].mxu0 %v7020_v36 }
 0x4b1   : > { %3724 = vmatprep.mubr.f32.mxu0 %v7685_v5 }
 0x4b4   : > { %3726 = vmatmul.mubr.f32.gmra.mrb[14].mxu0 %v7036_v39 }
 0x4b5   : > { %3731 = vmatprep.mubr.f32.mxu0 %v7685_v5 }
 0x4b8   : > { %3733 = vmatmul.mubr.f32.gmra.mrb[16].mxu0 %v7052_v49 }
 0x4b9   : > { %3738 = vmatprep.mubr.f32.mxu0 %v7685_v5 }
 0x4bc   : > { %3740 = vmatmul.mubr.f32.gmra.mrb[18].mxu0 %v7065_v40 }
 0x4bd   : > { %3818 = vmatprep.mubr.f32.mxu0 %v7685_v5 }
 0x4c0   : > { %3820 = vmatmul.mubr.f32.vlgmr.msra.gmra.mrb[2].mxu0 %v6961_v57 }
 0x4c1   : > { %3825 = vmatprep.mubr.f32.mxu0 %v7685_v5 }
 0x4c4   : > { %3827 = vmatmul.mubr.f32.gmra.mrb[4].mxu0 %v6976_v3 }
 0x4c5   : > { %3832 = vmatprep.mubr.f32.mxu0 %v7685_v5 }
 0x4c8   : > { %3834 = vmatmul.mubr.f32.gmra.mrb[6].mxu0 %v6984_v7 }
 0x4c9   : > { %3839 = vmatprep.mubr.f32.mxu0 %v7685_v5 }
 0x4cc   : > { %3841 = vmatmul.mubr.f32.gmra.mrb[8].mxu0 %v6996_v24 }
 0x4cd   : > { %3846 = vmatprep.mubr.f32.mxu0 %v7685_v5 }
 0x4d0   : > { %3848 = vmatmul.mubr.f32.gmra.mrb[10].mxu0 %v7005_v26 }
 0x4d1   : > { %3853 = vmatprep.mubr.f32.mxu0 %v7685_v5 }
 0x4d4   : > { %3855 = vmatmul.mubr.f32.gmra.mrb[12].mxu0 %v7020_v36 }
 0x4d5   : > { %3860 = vmatprep.mubr.f32.mxu0 %v7685_v5 }
 0x4d8   : > { %3862 = vmatmul.mubr.f32.gmra.mrb[14].mxu0 %v7036_v39 }
 0x4d9   : > { %3867 = vmatprep.mubr.f32.mxu0 %v7685_v5 }
 0x4dc   : > { %3869 = vmatmul.mubr.f32.gmra.mrb[16].mxu0 %v7052_v49 }
 0x4dd   : > { %3874 = vmatprep.mubr.f32.mxu0 %v7685_v5 }
 0x4e0   : > { %3876 = vmatmul.mubr.f32.gmra.mrb[18].mxu0 %v7065_v40 }
 0x502   : > { %v3026_v55 = vpop.f32.mrb[8].mxu1 }
 0x503   : > { %v3028_v22 = vpop.f32.mrb[9].mxu1 }
 0x506   : > { %v3037_v18 = vpop.f32.mrb[10].mxu1 }
 0x507   : > { %v3039_v17 = vpop.f32.mrb[11].mxu1 }
 0x50a   : > { %v3048_v56 = vpop.f32.mrb[12].mxu1 }
 0x50b   : > { %v3050_v57 = vpop.f32.mrb[13].mxu1 }
 0x50e   : > { %v3059_v0 = vpop.f32.mrb[14].mxu1 }
 0x50f   : > { %v3061_v2 = vpop.f32.mrb[15].mxu1 }
 0x512   : > { %v3070_v15 = vpop.f32.mrb[16].mxu1 }
 0x513   : > { %v3072_v3 = vpop.f32.mrb[17].mxu1 }
 0x516   : > { %v3081_v7 = vpop.f32.mrb[18].mxu1 }
 0x517   : > { %v3083_v58 = vpop.f32.mrb[19].mxu1 }
 0x51a   : > { %v3092_v52 = vpop.f32.mrb[20].mxu1 }
 0x51b   : > { %v3094_v24 = vpop.f32.mrb[21].mxu1 }
 0x51e   : > { %v3103_v50 = vpop.f32.mrb[22].mxu1 }
 0x51f   : > { %v3105_v12 = vpop.f32.mrb[23].mxu1 }
 0x522   : > { %v3114_v54 = vpop.f32.mrb[24].mxu1 }
 0x523   : > { %v3116_v26 = vpop.f32.mrb[25].mxu1 }
 0x593   : > { %v3821_v38 = vpop.f32.mrb[2].mxu0 }
 0x594   : > { %v5066_v46 = vadd.f32 %v3821_v38, %v3026_v55  ;;  %v3823_v47 = vpop.f32.mrb[3].mxu0  ;;  %v7691_v38 = vld [vmem:[#allocation21_spill] sm:$0xff] }
 0x595   : > { %v5067_v48 = vadd.f32 %v3823_v47, %v3028_v22  ;;  %v7692_v47 = vld [vmem:[#allocation22_spill] sm:$0xff] }
 0x596   : > { %3882 = vrot.lane.b32.xlu0 %v5066_v46, %s5432_s8 }
 0x597   : > { %v3828_v53 = vpop.f32.mrb[4].mxu0  ;;  %3884 = vrot.lane.b32.xlu1 %v5067_v48, %s5432_s8 }
 0x598   : > { %v5068_v13 = vadd.f32 %v3828_v53, %v3037_v18  ;;  %v3830_v36 = vpop.f32.mrb[5].mxu0  ;;  %v293_v18 = vld [vmem:[%s7459_s5] sm:$0xff] }
 0x599   : > { %v5069_v4 = vadd.f32 %v3830_v36, %v3039_v17 }
 0x59a   : > { %3892 = vrot.lane.b32.xlu0 %v5068_v13, %s5430_s29  ;;  %v294_v13 = vld [vmem:[%s7459_s5 + $0x8] sm:$0xff] }
 0x59b   : > { %v3835_v14 = vpop.f32.mrb[6].mxu0  ;;  %3894 = vrot.lane.b32.xlu1 %v5069_v4, %s5430_s29 }
 0x59c   : > { %v5070_v34 = vadd.f32 %v3835_v14, %v3048_v56  ;;  %v3837_v59 = vpop.f32.mrb[7].mxu0  ;;  %v7693_v14 = vld [vmem:[#allocation19_spill] sm:$0xff] }
 0x59d   : > { %v5071_v30 = vadd.f32 %v3837_v59, %v3050_v57  ;;  %v7694_v59 = vld [vmem:[#allocation20_spill] sm:$0xff] }
 0x59e   : > { %3902 = vrot.lane.b32.xlu0 %v5070_v34, %s5429_s23 }
 0x59f   : > { %v3842_v41 = vpop.f32.mrb[8].mxu0  ;;  %3904 = vrot.lane.b32.xlu1 %v5071_v30, %s5429_s23 }
 0x5a0   : > { %v5072_v39 = vadd.f32 %v3842_v41, %v3059_v0  ;;  %v3844_v63 = vpop.f32.mrb[9].mxu0 }
 0x5a1   : > { %v5073_v62 = vadd.f32 %v3844_v63, %v3061_v2  ;;  %v7687_v2 = vld [vmem:[#allocation23_spill] sm:$0xff] }
 0x5a2   : > { %3912 = vrot.lane.b32.xlu0 %v5072_v39, %s5428_s22 }
 0x5a3   : > { %v3849_v37 = vpop.f32.mrb[10].mxu0  ;;  %3914 = vrot.lane.b32.xlu1 %v5073_v62, %s5428_s22 }
 0x5a4   : > { %v7184_v35 = vadd.f32 %v3849_v37, %v3070_v15  ;;  %v3851_v51 = vpop.f32.mrb[11].mxu0  ;;  %v3971_v37 = vsel %vm3966_vm5, %v294_v13, 0 }
 0x5a5   : > { %v7186_v6 = vadd.f32 %v3851_v51, %v3072_v3  ;;  %v7688_v3 = vld [vmem:[#allocation24_spill] sm:$0xff] }
 0x5a7   : > { %v3856_v49 = vpop.f32.mrb[12].mxu0 }
 0x5a8   : > { %v5076_v44 = vadd.f32 %v3856_v49, %v3081_v7  ;;  %v3858_v60 = vpop.f32.mrb[13].mxu0 }
 0x5a9   : > { %v5077_v42 = vadd.f32 %v3858_v60, %v3083_v58 }
 0x5aa   : > { %3926 = vrot.lane.b32.xlu0 %v5076_v44, %s5427_s21 }
 0x5ab   : > { %v3863_v19 = vpop.f32.mrb[14].mxu0  ;;  %3928 = vrot.lane.b32.xlu1 %v5077_v42, %s5427_s21 }
 0x5ac   : > { %v5078_v25 = vadd.f32 %v3863_v19, %v3092_v52  ;;  %v3865_v40 = vpop.f32.mrb[15].mxu0 }
 0x5ad   : > { %v5079_v20 = vadd.f32 %v3865_v40, %v3094_v24  ;;  %v3968_v24 = vsel %vm3966_vm5, %v293_v18, 0 }
 0x5ae   : > { %3936 = vrot.lane.b32.xlu0 %v5078_v25, %s5424_s18  ;;  %v7227_v39 = vand.u32 4294901760, %v3968_v24 }
 0x5af   : > { %v3870_v16 = vpop.f32.mrb[16].mxu0  ;;  %3938 = vrot.lane.b32.xlu1 %v5079_v20, %s5424_s18 }
 0x5b0   : > { %v5080_v32 = vadd.f32 %v3870_v16, %v3103_v50  ;;  %v3872_v10 = vpop.f32.mrb[17].mxu0  ;;  %v7689_v50 = vld [vmem:[#allocation25_spill] sm:$0xff]  ;;  %v7239_v20 = vsub.f32 %v3968_v24, %v7227_v39  ;;  %v7241_v16 = vand.u32 4294901760, %v3971_v37 }
 0x5b1   : > { %v5081_v27 = vadd.f32 %v3872_v10, %v3105_v12 }
 0x5b2   : > { %3946 = vrot.lane.b32.xlu0 %v5080_v32, %s5425_s19  ;;  %v7695_v32 = vld [vmem:[#allocation10_spill] sm:$0xff]  ;;  %v4052_v18 = vsub.f32 %v3971_v37, %v7241_v16 }
 0x5b3   : > { %v3877_v61 = vpop.f32.mrb[18].mxu0  ;;  %3948 = vrot.lane.b32.xlu1 %v5081_v27, %s5425_s19  ;;  %v3922_v10 = vmul.f32 %v7184_v35, %v7695_v32  ;;  %v7696_v27 = vld [vmem:[#allocation9_spill] sm:$0xff] }
 0x5b4   : > { %v5082_v29 = vadd.f32 %v3877_v61, %v3114_v54  ;;  %v3879_v28 = vpop.f32.mrb[19].mxu0  ;;  %v7690_v54 = vld [vmem:[#allocation26_spill] sm:$0xff]  ;;  %v3923_v61 = vmul.f32 %v7186_v6, %v7696_v27  ;;  %v4042_v6 = vand.u32 4294901760, %v7239_v20 }
 0x5b5   : > { %v5083_v1 = vadd.f32 %v3879_v28, %v3116_v26 }
 0x5b6   : > { %3956 = vrot.lane.b32.xlu0 %v5082_v29, %s5426_s20  ;;  %v7697_v29 = vld [vmem:[#allocation17_spill] sm:$0xff] }
 0x5b7   : > { %3958 = vrot.lane.b32.xlu1 %v5083_v1, %s5426_s20  ;;  %v7698_v1 = vld [vmem:[#allocation18_spill] sm:$0xff] }
 0x608   : > { %v3883_v23 = vpop.permute.xlu0 %3882 }
 0x609   : > { %v3885_v45 = vpop.permute.xlu1 %3884 }
 0x60a   : > { %v3886_v17 = vsel %vm422_vm13, %v3883_v23, %v3885_v45  ;;  %v3887_v56 = vsel %vm422_vm13, %v3885_v45, %v3883_v23 }
 0x60b   : > { %v3888_v12 = vmul.f32 %v3886_v17, %v7689_v50  ;;  %v3889_v26 = vmul.f32 %v3887_v56, %v7690_v54  ;;  %v4053_v54 = vand.u32 4294901760, %v4052_v18 }
 0x60c   : > { %v3893_v8 = vpop.permute.xlu0 %3892 }
 0x60d   : > { %v3895_v11 = vpop.permute.xlu1 %3894 }
 0x60e   : > { %v3896_v9 = vsel %vm409_vm12, %v3893_v8, %v3895_v11  ;;  %v3897_v33 = vsel %vm409_vm12, %v3895_v11, %v3893_v8 }
 0x60f   : > { %v3898_v15 = vmul.f32 %v3896_v9, %v7687_v2  ;;  %v3899_v7 = vmul.f32 %v3897_v33, %v7688_v3  ;;  %v7700_v9 = vld [vmem:[#allocation16_spill] sm:$0xff]  ;;  %v7702_v2 = vld [vmem:[#allocation14_spill] sm:$0xff] }
 0x610   : > { %v3903_v43 = vpop.permute.xlu0 %3902 }
 0x611   : > { %v3905_v21 = vpop.permute.xlu1 %3904  ;;  %v3900_v36 = vadd.f32 %v3898_v15, %v3888_v12  ;;  %v3901_v4 = vadd.f32 %v3899_v7, %v3889_v26  ;;  %v4043_v12 = vsub.f32 %v7239_v20, %v4042_v6 }
 0x612   : > { %v3906_v57 = vsel %vm396_vm11, %v3903_v43, %v3905_v21  ;;  %v3907_v0 = vsel %vm396_vm11, %v3905_v21, %v3903_v43  ;;  %v7699_v43 = vld [vmem:[#allocation15_spill] sm:$0xff] }
 0x613   : > { %v3908_v46 = vmul.f32 %v3906_v57, %v7691_v38  ;;  %v3909_v48 = vmul.f32 %v3907_v0, %v7692_v47  ;;  %v7701_v57 = vld [vmem:[#allocation13_spill] sm:$0xff] }
 0x614   : > { %v3913_v55 = vpop.permute.xlu0 %3912 }
 0x615   : > { %v3915_v22 = vpop.permute.xlu1 %3914  ;;  %v3910_v63 = vadd.f32 %v3908_v46, %v3900_v36  ;;  %v3911_v62 = vadd.f32 %v3909_v48, %v3901_v4  ;;  %v7703_v46 = vld [vmem:[#allocation12_spill] sm:$0xff]  ;;  %v7704_v48 = vld [vmem:[#allocation11_spill] sm:$0xff] }
 0x616   : > { %v3916_v58 = vsel %vm383_vm8, %v3913_v55, %v3915_v22  ;;  %v3917_v52 = vsel %vm383_vm8, %v3915_v22, %v3913_v55 }
 0x617   : > { %v3918_v34 = vmul.f32 %v3916_v58, %v7693_v14  ;;  %v3919_v30 = vmul.f32 %v3917_v52, %v7694_v59  ;;  %v4054_v59 = vsub.f32 %v4052_v18, %v4053_v54 }
 0x619   : > { %v3920_v60 = vadd.f32 %v3918_v34, %v3910_v63  ;;  %v3921_v42 = vadd.f32 %v3919_v30, %v3911_v62  ;;  %v4044_v34 = vand.u32 4294901760, %v4043_v12  ;;  %v4055_v63 = vand.u32 4294901760, %v4054_v59  ;;  %v5356_v59 = vld [vmem:[%s7455_s1 + $0x10] sm:$0xff] }
 0x61b   : > { %v3924_v8 = vadd.f32 %v3922_v10, %v3920_v60  ;;  %v3925_v11 = vadd.f32 %v3923_v61, %v3921_v42 }
 0x61c   : > { %v3927_v53 = vpop.permute.xlu0 %3926 }
 0x61d   : > { %v3929_v41 = vpop.permute.xlu1 %3928 }
 0x61e   : > { %v3930_v51 = vsel %vm353_vm3, %v3927_v53, %v3929_v41  ;;  %v3931_v49 = vsel %vm353_vm3, %v3929_v41, %v3927_v53 }
 0x61f   : > { %v3932_v28 = vmul.f32 %v3931_v49, %v7697_v29  ;;  %v3933_v23 = vmul.f32 %v3930_v51, %v7698_v1 }
 0x620   : > { %v3937_v44 = vpop.permute.xlu0 %3936 }
 0x621   : > { %v3939_v19 = vpop.permute.xlu1 %3938  ;;  %v3934_v17 = vadd.f32 %v3932_v28, %v3924_v8  ;;  %v3935_v56 = vadd.f32 %v3933_v23, %v3925_v11 }
 0x622   : > { %v3940_v25 = vsel %vm340_vm1, %v3937_v44, %v3939_v19  ;;  %v3941_v40 = vsel %vm340_vm1, %v3939_v19, %v3937_v44 }
 0x623   : > { %v3942_v21 = vmul.f32 %v3941_v40, %v7699_v43  ;;  %v3943_v33 = vmul.f32 %v3940_v25, %v7700_v9 }
 0x624   : > { %v3947_v45 = vpop.permute.xlu0 %3946 }
 0x625   : > { %v3949_v55 = vpop.permute.xlu1 %3948  ;;  %v3944_v7 = vadd.f32 %v3942_v21, %v3934_v17  ;;  %v3945_v58 = vadd.f32 %v3943_v33, %v3935_v56 }
 0x626   : > { %v3950_v22 = vsel %vm325_vm0, %v3947_v45, %v3949_v55  ;;  %v3951_v35 = vsel %vm325_vm0, %v3949_v55, %v3947_v45 }
 0x627   : > { %v3952_v0 = vmul.f32 %v3951_v35, %v7701_v57  ;;  %v3953_v15 = vmul.f32 %v3950_v22, %v7702_v2  ;;  %v7705_v57 = vld [vmem:[#allocation5_spill] sm:$0xff] }
 0x628   : > { %v3957_v3 = vpop.permute.xlu0 %3956 }
 0x629   : > { %v3959_v52 = vpop.permute.xlu1 %3958  ;;  %v3954_v26 = vadd.f32 %v3952_v0, %v3944_v7  ;;  %v3955_v38 = vadd.f32 %v3953_v15, %v3945_v58  ;;  %v7706_v0 = vrot.slane %v7705_v57, 7  ;;  %v7707_v15 = vld [vmem:[#allocation6_spill] sm:$0xff] }
 0x62a   : > { %v3960_v24 = vsel %vm316_vm2, %v3957_v3, %v3959_v52  ;;  %v3961_v50 = vsel %vm316_vm2, %v3959_v52, %v3957_v3  ;;  %v7708_v3 = vrot.slane %v7707_v15, 7  ;;  %v7709_v52 = vrot.slane %v7705_v57, 6 }
 0x62b   : > { %v3962_v47 = vmul.f32 %v3961_v50, %v7703_v46  ;;  %v3963_v53 = vmul.f32 %v3960_v24, %v7704_v48  ;;  %v7710_v50 = vrot.slane %v7707_v15, 6  ;;  %v7711_v46 = vrot.slane %v7705_v57, 5 }
 0x62c   : > { %v7712_v48 = vrot.slane %v7707_v15, 5 }
 0x62d   : > { %v3964_v13 = vadd.f32 %v3962_v47, %v3954_v26  ;;  %v3965_v36 = vadd.f32 %v3963_v53, %v3955_v38 }
 0x62f   : > { %v3973_v4 = vand.u32 4294901760, %v3965_v36  ;;  %v3975_v14 = vand.u32 4294901760, %v3964_v13 }
 0x631   : > { %v4063_v30 = vsub.f32 %v3965_v36, %v3973_v4  ;;  %v4069_v41 = vsub.f32 %v3964_v13, %v3975_v14  ;;  %3974 = vmatprep.subr.mxu1 %v3973_v4 }
 0x632   : > { %3976 = vmatpush1.msra.mxu1 %v3975_v14 }
 0x633   : > { %4045 = vmatmul.mubr.f32.vlgmr.msra.gmra.mrb[26].mxu1 %v4044_v34  ;;  %v4064_v62 = vand.u32 4294901760, %v4063_v30  ;;  %v4070_v37 = vand.u32 4294901760, %v4069_v41 }
 0x634   : > { %4050 = vmatprep.mubr.f32.mxu1 %v7685_v5 }
 0x635   : > { %v4065_v51 = vsub.f32 %v4063_v30, %v4064_v62  ;;  %v4071_v49 = vsub.f32 %v4069_v41, %v4070_v37 }
 0x637   : > { %4056 = vmatmul.mubr.f32.gmra.mrb[28].mxu1 %v4055_v63  ;;  %v4066_v44 = vand.u32 4294901760, %v4065_v51  ;;  %v4072_v60 = vand.u32 4294901760, %v4071_v49 }
 0x638   : > { %4136 = vmatprep.mubr.f32.mxu1 %v7685_v5 }
 0x639   : > { %4067 = vmatprep.subr.mxu1 %v4066_v44 }
 0x63a   : > { %4073 = vmatpush1.msra.mxu1 %v4072_v60 }
 0x63b   : > { %4138 = vmatmul.mubr.f32.vlgmr.msra.gmra.mrb[26].mxu1 %v7227_v39  ;;  %4153 = vmatprep.subr.mxu1 %v4063_v30 }
 0x63c   : > { %4156 = vmatpush1.msra.mxu1 %v4069_v41  ;;  %4143 = vmatprep.mubr.f32.mxu1 %v7685_v5  ;;  %v5357_v41 = vld [vmem:[%s7455_s1 + $0x18] sm:$0xff] }
 0x63d   : > { %4237 = vmatprep.subr.mxu1 %v3973_v4 }
 0x63f   : > { %4145 = vmatmul.mubr.f32.gmra.mrb[28].mxu1 %v7241_v16 }
 0x640   : > { %4219 = vmatprep.mubr.f32.mxu1 %v7685_v5 }
 0x643   : > { %4222 = vmatmul.mubr.f32.vlgmr.msra.gmra.mrb[26].mxu1 %v7239_v20 }
 0x644   : > { %4239 = vmatpush1.msra.mxu1 %v3975_v14  ;;  %4227 = vmatprep.mubr.f32.mxu1 %v7685_v5 }
 0x645   : > { %4324 = vmatprep.subr.mxu1 %v4064_v62 }
 0x647   : > { %4230 = vmatmul.mubr.f32.gmra.mrb[28].mxu1 %v4052_v18 }
 0x648   : > { %4302 = vmatprep.mubr.f32.mxu1 %v7685_v5 }
 0x64b   : > { %4306 = vmatmul.mubr.f32.vlgmr.msra.gmra.mrb[26].mxu1 %v4042_v6 }
 0x64c   : > { %4328 = vmatpush1.msra.mxu1 %v4070_v37  ;;  %4311 = vmatprep.mubr.f32.mxu1 %v7685_v5 }
 0x64d   : > { %4407 = vmatprep.subr.mxu1 %v3973_v4 }
 0x64f   : > { %4315 = vmatmul.mubr.f32.gmra.mrb[28].mxu1 %v4053_v54 }
 0x650   : > { %4391 = vmatprep.mubr.f32.mxu1 %v7685_v5 }
 0x653   : > { %4393 = vmatmul.mubr.f32.vlgmr.msra.gmra.mrb[26].mxu1 %v7227_v39 }
 0x654   : > { %4409 = vmatpush1.msra.mxu1 %v3975_v14  ;;  %4398 = vmatprep.mubr.f32.mxu1 %v7685_v5 }
 0x657   : > { %4400 = vmatmul.mubr.f32.gmra.mrb[28].mxu1 %v7241_v16 }
 0x658   : > { %4472 = vmatprep.mubr.f32.mxu1 %v7685_v5 }
 0x65b   : > { %4474 = vmatmul.mubr.f32.vlgmr.msra.gmra.mrb[26].mxu1 %v7227_v39 }
 0x65c   : > { %4479 = vmatprep.mubr.f32.mxu1 %v7685_v5 }
 0x65f   : > { %4481 = vmatmul.mubr.f32.gmra.mrb[28].mxu1 %v7241_v16 }
 0x72e   : > { %v7284_v42 = vpop.f32.mrb[26].mxu1 }
 0x72f   : > { %4487 = vrot.lane.b32.xlu0 %v7284_v42, %s5432_s8  ;;  %v7288_v19 = vpop.f32.mrb[27].mxu1  ;;  %v4497_v25 = vrot.slane %v7284_v42, 1  ;;  %v4509_v39 = vrot.slane %v7284_v42, 2  ;;  %v4521_v32 = vrot.slane %v7284_v42, 3  ;;  %v4535_v27 = vrot.slane %v7284_v42, 5 }
 0x730   : > { %4489 = vrot.lane.b32.xlu1 %v7288_v19, %s5432_s8  ;;  %v4498_v20 = vrot.slane %v7288_v19, 1  ;;  %v4510_v16 = vrot.slane %v7288_v19, 2  ;;  %v4522_v10 = vrot.slane %v7288_v19, 3  ;;  %v4536_v61 = vrot.slane %v7288_v19, 5 }
 0x731   : > { %v4547_v29 = vrot.slane %v7284_v42, 6  ;;  %v4548_v28 = vrot.slane %v7288_v19, 6  ;;  %v4559_v1 = vrot.slane %v7284_v42, 7  ;;  %v4560_v23 = vrot.slane %v7288_v19, 7 }
 0x732   : > { %v4482_v40 = vpop.f32.mrb[28].mxu1 }
 0x733   : > { %4501 = vrot.lane.b32.xlu0 %v4497_v25, %s5430_s29  ;;  %v4484_v5 = vpop.f32.mrb[29].mxu1 }
 0x734   : > { %4503 = vrot.lane.b32.xlu1 %v4498_v20, %s5430_s29 }
 0x737   : > { %4513 = vrot.lane.b32.xlu0 %v4509_v39, %s5429_s23 }
 0x738   : > { %4515 = vrot.lane.b32.xlu1 %v4510_v16, %s5429_s23 }
 0x73b   : > { %4525 = vrot.lane.b32.xlu0 %v4521_v32, %s5428_s22 }
 0x73c   : > { %4527 = vrot.lane.b32.xlu1 %v4522_v10, %s5428_s22  ;;  %v7715_v10 = vrot.slane %v7705_v57, 2 }
 0x73f   : > { %4539 = vrot.lane.b32.xlu0 %v4535_v27, %s5427_s21 }
 0x740   : > { %4541 = vrot.lane.b32.xlu1 %v4536_v61, %s5427_s21  ;;  %v7716_v61 = vrot.slane %v7707_v15, 2  ;;  %s5455_s21 = smov [#allocation2]  }
 0x741   : > { %s5364_s22 = sshll.u32 %s5455_s21, 4  ;;  %s5365_s22 = int_to_ptr.vmem [resolvable:$false] %s5364_s22 }
 0x742   : > { %s5366_s23 = scalar_lea.vmem %s5365_s22, 64  ;;  %p5367_p0 = scmp.lt.s32.totalorder %s7414_s16, %s5365_s22 }
 0x743   : > { %4551 = vrot.lane.b32.xlu0 %v4547_v29, %s5424_s18 }
 0x744   : > { %4553 = vrot.lane.b32.xlu1 %v4548_v28, %s5424_s18 }
 0x747   : > { %4563 = vrot.lane.b32.xlu0 %v4559_v1, %s5425_s19 }
 0x748   : > { %4565 = vrot.lane.b32.xlu1 %v4560_v23, %s5425_s19  ;;  %s7412_s19 = scalar_lea.hbm %s7461_s7, %s4897_s14 }
 0x74b   : > { %4571 = vrot.lane.b32.xlu0 %v4482_v40, %s5426_s20  ;;  %v7713_v40 = vrot.slane %v7705_v57, 3 }
 0x74c   : > { %4573 = vrot.lane.b32.xlu1 %v4484_v5, %s5426_s20  ;;  %v7714_v5 = vrot.slane %v7707_v15, 3  ;;  %s5360_s20 = scalar_lea.vmem %s7414_s16, 32 }
 0x74d   : > { %p5361_p11 = scmp.ne.s32.totalorder %s7414_s16, %s5360_s20  ;;  %p5368_p1 = scmp.lt.s32.totalorder %s5366_s23, %s5360_s20 }
 0x74f   : > { %p5362_p12 = pnand %p5361_p11, %p5534_p5  ;;  %p5369_p2 = por %p5368_p1, %p5367_p0 }
 0x751   : > { %p5363_p13 = pneg %p5362_p12 }
 0x753   : > { %p5370_p3 = pnand %p5369_p2, %p5363_p13 }
 0x7a1   : > { %v4488_v45 = vpop.permute.xlu0 %4487 }
 0x7a2   : > { %v4490_v8 = vpop.permute.xlu1 %4489 }
 0x7a3   : > { %v4491_v26 = vsel %vm422_vm13, %v4488_v45, %v4490_v8  ;;  %v4492_v38 = vsel %vm422_vm13, %v4490_v8, %v4488_v45 }
 0x7a4   : > { %v4493_v30 = vmul.f32 %v5356_v59, %v4491_v26  ;;  %v4494_v63 = vmul.f32 %v5357_v41, %v4492_v38 }
 0x7a5   : > { %v4502_v11 = vpop.permute.xlu0 %4501 }
 0x7a6   : > { %v4504_v43 = vpop.permute.xlu1 %4503 }
 0x7a7   : > { %v4505_v55 = vsel %vm409_vm12, %v4502_v11, %v4504_v43  ;;  %v4506_v22 = vsel %vm409_vm12, %v4504_v43, %v4502_v11 }
 0x7a8   : > { %v4507_v2 = vmul.f32 %v4505_v55, %v7706_v0  ;;  %v4508_v7 = vmul.f32 %v4506_v22, %v7708_v3  ;;  %v7717_v55 = vrot.slane %v7705_v57, 1 }
 0x7a9   : > { %v4514_v21 = vpop.permute.xlu0 %4513 }
 0x7aa   : > { %v4516_v9 = vpop.permute.xlu1 %4515  ;;  %v4581_v13 = vrot.slane %v4507_v2, 7  ;;  %v4582_v36 = vrot.slane %v4508_v7, 7 }
 0x7ab   : > { %v4517_v6 = vsel %vm396_vm11, %v4514_v21, %v4516_v9  ;;  %v4518_v18 = vsel %vm396_vm11, %v4516_v9, %v4514_v21 }
 0x7ac   : > { %v4519_v24 = vmul.f32 %v4517_v6, %v7709_v52  ;;  %v4520_v12 = vmul.f32 %v4518_v18, %v7710_v50  ;;  %v4615_v16 = vsel %vm474_vm4, %v4493_v30, %v4581_v13  ;;  %v4616_v32 = vsel %vm474_vm4, %v4494_v63, %v4582_v36  ;;  %v5358_v18 = vld [vmem:[%s7455_s1] sm:$0xff] }
 0x7ad   : > { %v4526_v33 = vpop.permute.xlu0 %4525 }
 0x7ae   : > { %v4528_v35 = vpop.permute.xlu1 %4527  ;;  %v4587_v62 = vrot.slane %v4519_v24, 6  ;;  %v4588_v37 = vrot.slane %v4520_v12, 6 }
 0x7af   : > { %v4529_v17 = vsel %vm383_vm8, %v4526_v33, %v4528_v35  ;;  %v4530_v56 = vsel %vm383_vm8, %v4528_v35, %v4526_v33  ;;  %v7718_v35 = vrot.slane %v7707_v15, 1 }
 0x7b0   : > { %v4531_v47 = vmul.f32 %v4529_v17, %v7711_v46  ;;  %v4532_v53 = vmul.f32 %v4530_v56, %v7712_v48  ;;  %v4617_v1 = vsel %vm477_vm6, %v4615_v16, %v4587_v62  ;;  %v4618_v23 = vsel %vm477_vm6, %v4616_v32, %v4588_v37  ;;  %v5359_v56 = vld [vmem:[%s7455_s1 + $0x8] sm:$0xff] }
 0x7b1   : > { %v4540_v58 = vpop.permute.xlu0 %4539  ;;  %v4533_v17 = vmul.f32 %v5358_v18, %v7284_v42  ;;  %v4534_v0 = vmul.f32 %v5359_v56, %v7288_v19 }
 0x7b2   : > { %v4542_v54 = vpop.permute.xlu1 %4541  ;;  %v4593_v49 = vrot.slane %v4531_v47, 5  ;;  %v4594_v44 = vrot.slane %v4532_v53, 5 }
 0x7b3   : > { %v4543_v4 = vsel %vm353_vm3, %v4540_v58, %v4542_v54  ;;  %v4544_v14 = vsel %vm353_vm3, %v4542_v54, %v4540_v58 }
 0x7b4   : > { %v4545_v20 = vmul.f32 %v4544_v14, %v7713_v40  ;;  %v4546_v39 = vmul.f32 %v4543_v4, %v7714_v5  ;;  %v4619_v8 = vsel %vm480_vm7, %v4617_v1, %v4593_v49  ;;  %v4620_v11 = vsel %vm480_vm7, %v4618_v23, %v4594_v44 }
 0x7b5   : > { %v4552_v34 = vpop.permute.xlu0 %4551  ;;  %v4621_v15 = vsel %vm483_vm9, %v4619_v8, %v4533_v17  ;;  %v4622_v24 = vsel %vm483_vm9, %v4620_v11, %v4534_v0 }
 0x7b6   : > { %v4554_v51 = vpop.permute.xlu1 %4553  ;;  %v4599_v9 = vrot.slane %v4545_v20, 3  ;;  %v4600_v33 = vrot.slane %v4546_v39, 3  ;;  %v7720_v20 = vlaneseq }
 0x7b7   : > { %v4555_v60 = vsel %vm340_vm1, %v4552_v34, %v4554_v51  ;;  %v4556_v25 = vsel %vm340_vm1, %v4554_v51, %v4552_v34 }
 0x7b8   : > { %v4557_v27 = vmul.f32 %v4556_v25, %v7715_v10  ;;  %v4558_v29 = vmul.f32 %v4555_v60, %v7716_v61  ;;  %v4623_v12 = vsel %vm486_vm10, %v4621_v15, %v4599_v9  ;;  %v4624_v19 = vsel %vm486_vm10, %v4622_v24, %v4600_v33  ;;  %v7719_v25 = vld [vmem:[#allocation7_spill] sm:$0xff] }
 0x7b9   : > { %v4564_v28 = vpop.permute.xlu0 %4563 }
 0x7ba   : > { %v4566_v45 = vpop.permute.xlu1 %4565  ;;  %v4605_v2 = vrot.slane %v4557_v27, 2  ;;  %v4606_v3 = vrot.slane %v4558_v29, 2 }
 0x7bb   : > { %v4567_v43 = vsel %vm325_vm0, %v4564_v28, %v4566_v45  ;;  %v4568_v21 = vsel %vm325_vm0, %v4566_v45, %v4564_v28  ;;  %vm4665_vm0 = vcmp.lt.s32.totalorder %v7720_v20, 256 }
 0x7bc   : > { %v4569_v22 = vmul.f32 %v4568_v21, %v7717_v55  ;;  %v4570_v6 = vmul.f32 %v4567_v43, %v7718_v35  ;;  %v4625_v38 = vsel %vm489_vm14, %v4623_v12, %v4605_v2  ;;  %v4626_v46 = vsel %vm489_vm14, %v4624_v19, %v4606_v3 }
 0x7bd   : > { %v4572_v7 = vpop.permute.xlu0 %4571 }
 0x7be   : > { %v4611_v57 = vrot.slane %v4569_v22, 1  ;;  %v4612_v58 = vrot.slane %v4570_v6, 1  ;;  %v4574_v52 = vpop.permute.xlu1 %4573 }
 0x7bf   : > { %v4575_v50 = vsel %vm316_vm2, %v4572_v7, %v4574_v52  ;;  %v4576_v42 = vsel %vm316_vm2, %v4574_v52, %v4572_v7 }
 0x7c0   : > { %v4577_v54 = vmul.f32 %v5358_v18, %v4576_v42  ;;  %v4578_v26 = vmul.f32 %v5359_v56, %v4575_v50  ;;  %v4627_v47 = vsel %vm492_vm15, %v4625_v38, %v4611_v57  ;;  %v4628_v48 = vsel %vm492_vm15, %v4626_v46, %v4612_v58 }
 0x7c2   : > { %v4629_v53 = vsel %vm474_vm4, %v4577_v54, 0.0  ;;  %v4637_v31 = vsel %vm474_vm4, %v4578_v26, 0.0 }
 0x7c3   : > { %v4630_v13 = vadd.f32 %v4629_v53, %v4627_v47  ;;  %v4638_v36 = vadd.f32 %v4637_v31, %v4628_v48 }
 0x7c5   : > { %v4631_v4 = vrot.slane %v4630_v13, 4  ;;  %v4639_v14 = vrot.slane %v4638_v36, 4 }
 0x7c7   : > { %v4632_v34 = vadd.f32 %v4631_v4, %v4630_v13  ;;  %v4640_v59 = vadd.f32 %v4639_v14, %v4638_v36 }
 0x7c9   : > { %v4633_v30 = vrot.slane %v4632_v34, 2  ;;  %v4641_v41 = vrot.slane %v4640_v59, 2 }
 0x7cb   : > { %v4634_v63 = vadd.f32 %v4633_v30, %v4632_v34  ;;  %v4642_v62 = vadd.f32 %v4641_v41, %v4640_v59 }
 0x7cd   : > { %v4635_v37 = vrot.slane %v4634_v63, 1  ;;  %v4643_v51 = vrot.slane %v4642_v62, 1 }
 0x7cf   : > { %v4636_v49 = vadd.f32 %v4635_v37, %v4634_v63  ;;  %v4644_v44 = vadd.f32 %v4643_v51, %v4642_v62 }
 0x7d1   : > { %v4647_v60 = vcombine.low %v4636_v49, %v4644_v44 }
 0x7d3   : > { %v4654_v40 = vrot.slane %v4647_v60, %v7719_v25 }
 0x7d5   : > { %v4661_v5 = vrot.slane %v4654_v40, %v7719_v25 }
 0x7d7   : > { %4667 = vst.msk [vmem:[%s269_s15] sm:$0x3] %vm4665_vm0, %v4661_v5 }
 0x7d8   : > { %5373 = shalt.err (!%p5370_p3)
}
 0x7d9   : > { %s5374_s29 = scalar_lea.hbm %s7412_s19, 32  ;;  %s5378_s13 = scalar_lea.hbm %s7461_s7, 64 }
 0x7da   : > { %p5375_p4 = scmp.ne.s32.totalorder %s7412_s19, %s5374_s29  ;;  %p5379_p9 = scmp.lt.u32.totalorder %s7412_s19, %s7461_s7 }
 0x7db   : > { %p5380_p10 = scmp.lt.u32.totalorder %s5378_s13, %s5374_s29  ;;  %p5382_p12 = scmp.lt.u32.totalorder %s5374_s29, %s7412_s19 }
 0x7dc   : > { %p5376_p7 = pnand %p5375_p4, %p5534_p5 }
 0x7dd   : > { %p5381_p11 = por %p5380_p10, %p5379_p9 }
 0x7de   : > { %p5377_p8 = pneg %p5376_p7 }
 0x7df   : > { %p5383_p13 = por %p5382_p12, %p5381_p11 }
 0x7e1   : > { %p5384_p0 = pnand %p5383_p13, %p5377_p8 }
 0x7e3   : > { %5387 = shalt.err (!%p5384_p0)
}
 0x7e4   : > { %5226 = dma.vmem_to_hbm [thread:$0]  (%p5534_p5), %s7414_s16, 32, %s7412_s19, %s4669_s28  }
 0x7e5 PF: > { %p5232_p1 = scmp.ge.s32.totalorder %s5422_s27, 2  ;;  %s4695_s17 = sand.u32 1, %s5410_s24  }
 0x7e6   : > { %s4696_s18 = scalar_lea.sflag [#allocation3], %s4695_s17 }
 0x7e7   : > { %p5229_p2 = pnand %p5232_p1, %p5538_p6 }
 0x7e9   : > { %5405 = dma.done.wait (!%p5229_p2), %s4696_s18, 32  }
 0x7ea   : > { %5407 = vsyncadd (!%p5229_p2), %s4696_s18, 4294967264  ;;  %p17_p3 = scmp.ge.s32.totalorder %s5521_s30, 4   ;;  %s7721_s24 = smov %s5414_s25 }
 0x7eb   : > { %s7722_s25 = smov %s5418_s26  ;;  %s7723_s26 = smov %s5532_s10 }
 0x7ec   : > { %s7724_s27 = smov %s5521_s30  ;;  %19 = sbr.rel (!%p17_p3) target bundleno = 3 (0x3), region = 83 }
 0x7f3   :  { %4701 = vsyncpa [#allocation3], 1 }
 0x7f4   :  { %4703 = vsyncpa [#allocation3 + $0x1], 1 }

</bundles_post_ra>
